<compile_context>
chip_gen: v5e
topology: v5e:2x2
jax: 0.10.0
libtpu: 0.0.40
codegen_flags: <defaults>
</compile_context>

<pallas_src>
import functools

import jax
import jax.numpy as jnp
from jax.experimental import pallas as pl
from jax.experimental.pallas import tpu as pltpu


# ----------------------------- Fused forward kernel ---------------------------
def _fused_forward_kernel(*refs, num_layers, T, B, H):
    # refs: x, cnn_w, cnn_b, (w_ih, w_hh, b) * num_layers, fc_w, fc_b,
    #       out_fc, out_h, hseq_scratch
    x_ref = refs[0]
    cnn_w_ref = refs[1]
    cnn_b_ref = refs[2]
    layer_refs = refs[3:3 + 3 * num_layers]
    fc_w_ref = refs[3 + 3 * num_layers]
    fc_b_ref = refs[4 + 3 * num_layers]
    out_fc_ref = refs[5 + 3 * num_layers]
    out_h_ref = refs[6 + 3 * num_layers]
    hseq_scr = refs[7 + 3 * num_layers]

    # (1) cnn_fc + sigmoid over all T*B rows at once (good MXU row utilization).
    y = jnp.dot(x_ref[...], cnn_w_ref[...], preferred_element_type=jnp.float32)
    y = jax.nn.sigmoid(y + cnn_b_ref[...])          # (T*B, INPUT_SIZE), time-major

    # (2) stacked LSTM; h0 = c0 = 0 as in the PyTorch forward.
    seq = y
    h_last = None
    for layer in range(num_layers):
        w_ih = layer_refs[3 * layer][...]
        w_hh = layer_refs[3 * layer + 1][...]
        bias = layer_refs[3 * layer + 2][...]

        # Hoisted input projection + bias: one matmul for all timesteps.
        gx = jnp.dot(seq, w_ih, preferred_element_type=jnp.float32) + bias  # (T*B, 4H)

        h = jnp.zeros((B, H), jnp.float32)
        c = jnp.zeros((B, H), jnp.float32)
        for t in range(T):  # T is small & static -> fully unrolled recurrence
            g = gx[t * B:(t + 1) * B, :] + jnp.dot(
                h, w_hh, preferred_element_type=jnp.float32)
            # PyTorch gate order: i, f, g, o (H=128 -> lane-aligned slices).
            i_g = jax.nn.sigmoid(g[:, 0 * H:1 * H])
            f_g = jax.nn.sigmoid(g[:, 1 * H:2 * H])
            g_g = jnp.tanh(g[:, 2 * H:3 * H])
            o_g = jax.nn.sigmoid(g[:, 3 * H:4 * H])
            c = f_g * c + i_g * g_g
            h = o_g * jnp.tanh(c)
            if layer < num_layers - 1:
                # Keep the inter-layer hidden sequence in VMEM only.
                hseq_scr[t * B:(t + 1) * B, :] = h
        h_last = h
        if layer < num_layers - 1:
            seq = hseq_scr[...]

    # (3) last-step hidden + fc head + sigmoid (fc output lane-padded to 128).
    out_h_ref[...] = h_last
    out_fc_ref[...] = jax.nn.sigmoid(
        jnp.dot(h_last, fc_w_ref[...], preferred_element_type=jnp.float32)
        + fc_b_ref[...])


# ----------------------------- Wrapper -----------------------------------------
def lstm_module_forward(x, params, num_layers):
    """x: (B, T, CNN_IN) float32. Returns (out_fc (B, NC), out_lstm (B, H))."""
    B, T, F_in = x.shape
    H = params["w_hh_0"].shape[0]
    NC = params["fc_w"].shape[1]

    B_pad = ((B + 7) // 8) * 8          # sublane-dense batch
    NC_pad = ((NC + 127) // 128) * 128  # lane-dense fc output

    # Zero-pad batch and lay the sequence out time-major as (T*B_pad, F_in)
    # so each timestep slice inside the kernel is a contiguous row block.
    x_pad = jnp.zeros((B_pad, T, F_in), x.dtype).at[:B].set(x)
    x_tm = jnp.transpose(x_pad, (1, 0, 2)).reshape(T * B_pad, F_in)

    fc_w_pad = jnp.zeros((H, NC_pad), jnp.float32).at[:, :NC].set(params["fc_w"])
    fc_b_pad = jnp.zeros((NC_pad,), jnp.float32).at[:NC].set(params["fc_b"])

    inputs = [x_tm, params["cnn_fc_w"], params["cnn_fc_b"].reshape(1, -1)]
    for layer in range(num_layers):
        inputs += [
            params[f"w_ih_{layer}"],
            params[f"w_hh_{layer}"],
            params[f"b_{layer}"].reshape(1, -1),
        ]
    inputs += [fc_w_pad, fc_b_pad.reshape(1, NC_pad)]

    vmem_spec = pl.BlockSpec(memory_space=pltpu.MemorySpace.VMEM)

    out_fc_pad, out_h_pad = pl.pallas_call(
        functools.partial(
            _fused_forward_kernel, num_layers=num_layers, T=T, B=B_pad, H=H),
        out_shape=(
            jax.ShapeDtypeStruct((B_pad, NC_pad), jnp.float32),
            jax.ShapeDtypeStruct((B_pad, H), jnp.float32),
        ),
        in_specs=[vmem_spec] * len(inputs),
        out_specs=(vmem_spec, vmem_spec),
        scratch_shapes=[pltpu.VMEM((T * B_pad, H), jnp.float32)],
    )(*inputs)

    return out_fc_pad[:B, :NC], out_h_pad[:B]


# ----------------------------- Pure-JAX reference ------------------------------
def _reference_forward(x, params, num_layers):
    B, T, F_in = x.shape
    y = jax.nn.sigmoid(
        x.reshape(B * T, F_in) @ params["cnn_fc_w"] + params["cnn_fc_b"])
    seq = y.reshape(B, T, -1)
    for layer in range(num_layers):
        w_ih = params[f"w_ih_{layer}"]
        w_hh = params[f"w_hh_{layer}"]
        bias = params[f"b_{layer}"]
        H = w_hh.shape[0]
        h = jnp.zeros((B, H), jnp.float32)
        c = jnp.zeros((B, H), jnp.float32)
        outs = []
        for t in range(T):
            g = seq[:, t, :] @ w_ih + h @ w_hh + bias
            i_g = jax.nn.sigmoid(g[:, 0 * H:1 * H])
            f_g = jax.nn.sigmoid(g[:, 1 * H:2 * H])
            g_g = jnp.tanh(g[:, 2 * H:3 * H])
            o_g = jax.nn.sigmoid(g[:, 3 * H:4 * H])
            c = f_g * c + i_g * g_g
            h = o_g * jnp.tanh(c)
            outs.append(h)
        seq = jnp.stack(outs, axis=1)
    out_lstm = seq[:, -1, :]
    out_fc = jax.nn.sigmoid(out_lstm @ params["fc_w"] + params["fc_b"])
    return out_fc, out_lstm


# ----------------------------- Deterministic parameter init --------------------
def init_params(key, cnn_in, input_size, hidden_size, num_layers, num_classes):
    params = {}
    n_keys = 4 + 4 * num_layers
    keys = jax.random.split(key, n_keys)
    ki = iter(range(n_keys))

    def uni(k, shape, fan_in):
        bound = 1.0 / jnp.sqrt(jnp.float32(fan_in))
        return jax.random.uniform(k, shape, jnp.float32, -bound, bound)

    # cnn_fc: Linear(cnn_in -> input_size); stored transposed as (in, out)
    params["cnn_fc_w"] = uni(keys[next(ki)], (cnn_in, input_size), cnn_in)
    params["cnn_fc_b"] = uni(keys[next(ki)], (input_size,), cnn_in)

    # LSTM layers; PyTorch weights are (4H, in); stored transposed as (in, 4H)
    for layer in range(num_layers):
        in_sz = input_size if layer == 0 else hidden_size
        params[f"w_ih_{layer}"] = uni(keys[next(ki)], (in_sz, 4 * hidden_size), hidden_size)
        params[f"w_hh_{layer}"] = uni(keys[next(ki)], (hidden_size, 4 * hidden_size), hidden_size)
        b_ih = uni(keys[next(ki)], (4 * hidden_size,), hidden_size)
        b_hh = uni(keys[next(ki)], (4 * hidden_size,), hidden_size)
        params[f"b_{layer}"] = b_ih + b_hh  # biases always appear summed

    # fc: Linear(hidden -> num_classes)
    params["fc_w"] = uni(keys[next(ki)], (hidden_size, num_classes), hidden_size)
    params["fc_b"] = uni(keys[next(ki)], (num_classes,), hidden_size)
    return params


if __name__ == "__main__":
    B, T = 2, 8
    CNN_IN = 256        # stands for 512*7*7
    INPUT_SIZE = 128    # stands for 1000
    HIDDEN = 128        # stands for 300
    NUM_LAYERS = 2
    NUM_CLASSES = 1

    root = jax.random.PRNGKey(0)
    k_x, k_p = jax.random.split(root)
    x = jax.random.normal(k_x, (B, T, CNN_IN), jnp.float32)
    params = init_params(k_p, CNN_IN, INPUT_SIZE, HIDDEN, NUM_LAYERS, NUM_CLASSES)

    fwd = jax.jit(functools.partial(lstm_module_forward, num_layers=NUM_LAYERS))
    out_fc, out_lstm = fwd(x, params)
    jax.block_until_ready((out_fc, out_lstm))

    assert out_fc.shape == (B, NUM_CLASSES)
    assert out_lstm.shape == (B, HIDDEN)

    # Correctness check against a pure-JAX reference of the same module.
    ref_fc, ref_lstm = _reference_forward(x, params, NUM_LAYERS)
    assert jnp.allclose(out_fc, ref_fc, atol=1e-3, rtol=1e-3)
    assert jnp.allclose(out_lstm, ref_lstm, atol=1e-3, rtol=1e-3)

    print("KERNEL_OK")
</pallas_src>

<mosaic_0001>
module attributes {stable_mosaic.version = 11 : i64} {
  func.func @_fused_forward_kernel(%arg0: memref<64x256xf32, #tpu.memory_space<vmem>>, %arg1: memref<256x128xf32, #tpu.memory_space<vmem>>, %arg2: memref<1x128xf32, #tpu.memory_space<vmem>>, %arg3: memref<128x512xf32, #tpu.memory_space<vmem>>, %arg4: memref<128x512xf32, #tpu.memory_space<vmem>>, %arg5: memref<1x512xf32, #tpu.memory_space<vmem>>, %arg6: memref<128x512xf32, #tpu.memory_space<vmem>>, %arg7: memref<128x512xf32, #tpu.memory_space<vmem>>, %arg8: memref<1x512xf32, #tpu.memory_space<vmem>>, %arg9: memref<128x128xf32, #tpu.memory_space<vmem>>, %arg10: memref<1x128xf32, #tpu.memory_space<vmem>>, %arg11: memref<8x128xf32, #tpu.memory_space<vmem>>, %arg12: memref<8x128xf32, #tpu.memory_space<vmem>>, %arg13: memref<64x128xf32, #tpu.memory_space<vmem>>) attributes {dimension_semantics = [], scalar_prefetch = 0 : i64, scratch_operands = 1 : i64, tpu.core_type = #tpu.core_type<tc>} {
    %c0 = arith.constant 0 : index
    %c0_0 = arith.constant 0 : index
    %0 = vector.load %arg0[%c0, %c0_0] : memref<64x256xf32, #tpu.memory_space<vmem>>, vector<64x256xf32>
    %c0_1 = arith.constant 0 : index
    %c0_2 = arith.constant 0 : index
    %1 = vector.load %arg1[%c0_1, %c0_2] : memref<256x128xf32, #tpu.memory_space<vmem>>, vector<256x128xf32>
    %cst = arith.constant dense<0.000000e+00> : vector<64x128xf32>
    %2 = tpu.matmul %0, %1, %cst {dimension_numbers = #tpu.dot_dimension_numbers<[1], [0], [0], [1], [0, 0, 1, 1], [], []>} : vector<64x256xf32>, vector<256x128xf32>, vector<64x128xf32> -> vector<64x128xf32>
    %c0_3 = arith.constant 0 : index
    %c0_4 = arith.constant 0 : index
    %3 = vector.load %arg2[%c0_3, %c0_4] : memref<1x128xf32, #tpu.memory_space<vmem>>, vector<1x128xf32>
    %4 = vector.broadcast %3 : vector<1x128xf32> to vector<64x128xf32>
    %5 = arith.addf %2, %4 : vector<64x128xf32>
    %6 = arith.negf %5 : vector<64x128xf32>
    %7 = math.exp %6 : vector<64x128xf32>
    %cst_5 = arith.constant 1.000000e+00 : f32
    %8 = vector.broadcast %cst_5 : f32 to vector<64x128xf32>
    %9 = arith.addf %8, %7 : vector<64x128xf32>
    %10 = arith.divf %8, %9 : vector<64x128xf32>
    %c0_6 = arith.constant 0 : index
    %c0_7 = arith.constant 0 : index
    %11 = vector.load %arg3[%c0_6, %c0_7] : memref<128x512xf32, #tpu.memory_space<vmem>>, vector<128x512xf32>
    %c0_8 = arith.constant 0 : index
    %c0_9 = arith.constant 0 : index
    %12 = vector.load %arg4[%c0_8, %c0_9] : memref<128x512xf32, #tpu.memory_space<vmem>>, vector<128x512xf32>
    %c0_10 = arith.constant 0 : index
    %c0_11 = arith.constant 0 : index
    %13 = vector.load %arg5[%c0_10, %c0_11] : memref<1x512xf32, #tpu.memory_space<vmem>>, vector<1x512xf32>
    %cst_12 = arith.constant dense<0.000000e+00> : vector<64x512xf32>
    %14 = tpu.matmul %10, %11, %cst_12 {dimension_numbers = #tpu.dot_dimension_numbers<[1], [0], [0], [1], [0, 0, 1, 1], [], []>} : vector<64x128xf32>, vector<128x512xf32>, vector<64x512xf32> -> vector<64x512xf32>
    %15 = vector.broadcast %13 : vector<1x512xf32> to vector<64x512xf32>
    %16 = arith.addf %14, %15 : vector<64x512xf32>
    %cst_13 = arith.constant 0.000000e+00 : f32
    %17 = vector.broadcast %cst_13 : f32 to vector<8x128xf32>
    %cst_14 = arith.constant 0.000000e+00 : f32
    %18 = vector.broadcast %cst_14 : f32 to vector<8x128xf32>
    %19 = vector.extract_strided_slice %16 {offsets = [0, 0], sizes = [8, 512], strides = [1, 1]} : vector<64x512xf32> to vector<8x512xf32>
    %cst_15 = arith.constant dense<0.000000e+00> : vector<8x512xf32>
    %20 = tpu.matmul %17, %12, %cst_15 {dimension_numbers = #tpu.dot_dimension_numbers<[1], [0], [0], [1], [0, 0, 1, 1], [], []>} : vector<8x128xf32>, vector<128x512xf32>, vector<8x512xf32> -> vector<8x512xf32>
    %21 = arith.addf %19, %20 : vector<8x512xf32>
    %22 = vector.extract_strided_slice %21 {offsets = [0, 0], sizes = [8, 128], strides = [1, 1]} : vector<8x512xf32> to vector<8x128xf32>
    %23 = arith.negf %22 : vector<8x128xf32>
    %24 = math.exp %23 : vector<8x128xf32>
    %cst_16 = arith.constant 1.000000e+00 : f32
    %25 = vector.broadcast %cst_16 : f32 to vector<8x128xf32>
    %26 = arith.addf %25, %24 : vector<8x128xf32>
    %27 = arith.divf %25, %26 : vector<8x128xf32>
    %28 = vector.extract_strided_slice %21 {offsets = [0, 128], sizes = [8, 128], strides = [1, 1]} : vector<8x512xf32> to vector<8x128xf32>
    %29 = arith.negf %28 : vector<8x128xf32>
    %30 = math.exp %29 : vector<8x128xf32>
    %cst_17 = arith.constant 1.000000e+00 : f32
    %31 = vector.broadcast %cst_17 : f32 to vector<8x128xf32>
    %32 = arith.addf %31, %30 : vector<8x128xf32>
    %33 = arith.divf %31, %32 : vector<8x128xf32>
    %34 = vector.extract_strided_slice %21 {offsets = [0, 256], sizes = [8, 128], strides = [1, 1]} : vector<8x512xf32> to vector<8x128xf32>
    %35 = math.tanh %34 : vector<8x128xf32>
    %36 = vector.extract_strided_slice %21 {offsets = [0, 384], sizes = [8, 128], strides = [1, 1]} : vector<8x512xf32> to vector<8x128xf32>
    %37 = arith.negf %36 : vector<8x128xf32>
    %38 = math.exp %37 : vector<8x128xf32>
    %cst_18 = arith.constant 1.000000e+00 : f32
    %39 = vector.broadcast %cst_18 : f32 to vector<8x128xf32>
    %40 = arith.addf %39, %38 : vector<8x128xf32>
    %41 = arith.divf %39, %40 : vector<8x128xf32>
    %42 = arith.mulf %33, %18 : vector<8x128xf32>
    %43 = arith.mulf %27, %35 : vector<8x128xf32>
    %44 = arith.addf %42, %43 : vector<8x128xf32>
    %45 = math.tanh %44 : vector<8x128xf32>
    %46 = arith.mulf %41, %45 : vector<8x128xf32>
    %c0_19 = arith.constant 0 : index
    %c0_20 = arith.constant 0 : index
    %47 = vector.load %arg13[%c0_19, %c0_20] : memref<64x128xf32, #tpu.memory_space<vmem>>, vector<8x128xf32>
    tpu.vector_store %arg13[%c0_19, %c0_20], %46 {strides = array<i32>} : memref<64x128xf32, #tpu.memory_space<vmem>>, vector<8x128xf32>,
    %48 = vector.extract_strided_slice %16 {offsets = [8, 0], sizes = [8, 512], strides = [1, 1]} : vector<64x512xf32> to vector<8x512xf32>
    %cst_21 = arith.constant dense<0.000000e+00> : vector<8x512xf32>
    %49 = tpu.matmul %46, %12, %cst_21 {dimension_numbers = #tpu.dot_dimension_numbers<[1], [0], [0], [1], [0, 0, 1, 1], [], []>} : vector<8x128xf32>, vector<128x512xf32>, vector<8x512xf32> -> vector<8x512xf32>
    %50 = arith.addf %48, %49 : vector<8x512xf32>
    %51 = vector.extract_strided_slice %50 {offsets = [0, 0], sizes = [8, 128], strides = [1, 1]} : vector<8x512xf32> to vector<8x128xf32>
    %52 = arith.negf %51 : vector<8x128xf32>
    %53 = math.exp %52 : vector<8x128xf32>
    %cst_22 = arith.constant 1.000000e+00 : f32
    %54 = vector.broadcast %cst_22 : f32 to vector<8x128xf32>
    %55 = arith.addf %54, %53 : vector<8x128xf32>
    %56 = arith.divf %54, %55 : vector<8x128xf32>
    %57 = vector.extract_strided_slice %50 {offsets = [0, 128], sizes = [8, 128], strides = [1, 1]} : vector<8x512xf32> to vector<8x128xf32>
    %58 = arith.negf %57 : vector<8x128xf32>
    %59 = math.exp %58 : vector<8x128xf32>
    %cst_23 = arith.constant 1.000000e+00 : f32
    %60 = vector.broadcast %cst_23 : f32 to vector<8x128xf32>
    %61 = arith.addf %60, %59 : vector<8x128xf32>
    %62 = arith.divf %60, %61 : vector<8x128xf32>
    %63 = vector.extract_strided_slice %50 {offsets = [0, 256], sizes = [8, 128], strides = [1, 1]} : vector<8x512xf32> to vector<8x128xf32>
    %64 = math.tanh %63 : vector<8x128xf32>
    %65 = vector.extract_strided_slice %50 {offsets = [0, 384], sizes = [8, 128], strides = [1, 1]} : vector<8x512xf32> to vector<8x128xf32>
    %66 = arith.negf %65 : vector<8x128xf32>
    %67 = math.exp %66 : vector<8x128xf32>
    %cst_24 = arith.constant 1.000000e+00 : f32
    %68 = vector.broadcast %cst_24 : f32 to vector<8x128xf32>
    %69 = arith.addf %68, %67 : vector<8x128xf32>
    %70 = arith.divf %68, %69 : vector<8x128xf32>
    %71 = arith.mulf %62, %44 : vector<8x128xf32>
    %72 = arith.mulf %56, %64 : vector<8x128xf32>
    %73 = arith.addf %71, %72 : vector<8x128xf32>
    %74 = math.tanh %73 : vector<8x128xf32>
    %75 = arith.mulf %70, %74 : vector<8x128xf32>
    %c8 = arith.constant 8 : index
    %c0_25 = arith.constant 0 : index
    %76 = vector.load %arg13[%c8, %c0_25] : memref<64x128xf32, #tpu.memory_space<vmem>>, vector<8x128xf32>
    tpu.vector_store %arg13[%c8, %c0_25], %75 {strides = array<i32>} : memref<64x128xf32, #tpu.memory_space<vmem>>, vector<8x128xf32>,
    %77 = vector.extract_strided_slice %16 {offsets = [16, 0], sizes = [8, 512], strides = [1, 1]} : vector<64x512xf32> to vector<8x512xf32>
    %cst_26 = arith.constant dense<0.000000e+00> : vector<8x512xf32>
    %78 = tpu.matmul %75, %12, %cst_26 {dimension_numbers = #tpu.dot_dimension_numbers<[1], [0], [0], [1], [0, 0, 1, 1], [], []>} : vector<8x128xf32>, vector<128x512xf32>, vector<8x512xf32> -> vector<8x512xf32>
    %79 = arith.addf %77, %78 : vector<8x512xf32>
    %80 = vector.extract_strided_slice %79 {offsets = [0, 0], sizes = [8, 128], strides = [1, 1]} : vector<8x512xf32> to vector<8x128xf32>
    %81 = arith.negf %80 : vector<8x128xf32>
    %82 = math.exp %81 : vector<8x128xf32>
    %cst_27 = arith.constant 1.000000e+00 : f32
    %83 = vector.broadcast %cst_27 : f32 to vector<8x128xf32>
    %84 = arith.addf %83, %82 : vector<8x128xf32>
    %85 = arith.divf %83, %84 : vector<8x128xf32>
    %86 = vector.extract_strided_slice %79 {offsets = [0, 128], sizes = [8, 128], strides = [1, 1]} : vector<8x512xf32> to vector<8x128xf32>
    %87 = arith.negf %86 : vector<8x128xf32>
    %88 = math.exp %87 : vector<8x128xf32>
    %cst_28 = arith.constant 1.000000e+00 : f32
    %89 = vector.broadcast %cst_28 : f32 to vector<8x128xf32>
    %90 = arith.addf %89, %88 : vector<8x128xf32>
    %91 = arith.divf %89, %90 : vector<8x128xf32>
    %92 = vector.extract_strided_slice %79 {offsets = [0, 256], sizes = [8, 128], strides = [1, 1]} : vector<8x512xf32> to vector<8x128xf32>
    %93 = math.tanh %92 : vector<8x128xf32>
    %94 = vector.extract_strided_slice %79 {offsets = [0, 384], sizes = [8, 128], strides = [1, 1]} : vector<8x512xf32> to vector<8x128xf32>
    %95 = arith.negf %94 : vector<8x128xf32>
    %96 = math.exp %95 : vector<8x128xf32>
    %cst_29 = arith.constant 1.000000e+00 : f32
    %97 = vector.broadcast %cst_29 : f32 to vector<8x128xf32>
    %98 = arith.addf %97, %96 : vector<8x128xf32>
    %99 = arith.divf %97, %98 : vector<8x128xf32>
    %100 = arith.mulf %91, %73 : vector<8x128xf32>
    %101 = arith.mulf %85, %93 : vector<8x128xf32>
    %102 = arith.addf %100, %101 : vector<8x128xf32>
    %103 = math.tanh %102 : vector<8x128xf32>
    %104 = arith.mulf %99, %103 : vector<8x128xf32>
    %c16 = arith.constant 16 : index
    %c0_30 = arith.constant 0 : index
    %105 = vector.load %arg13[%c16, %c0_30] : memref<64x128xf32, #tpu.memory_space<vmem>>, vector<8x128xf32>
    tpu.vector_store %arg13[%c16, %c0_30], %104 {strides = array<i32>} : memref<64x128xf32, #tpu.memory_space<vmem>>, vector<8x128xf32>,
    %106 = vector.extract_strided_slice %16 {offsets = [24, 0], sizes = [8, 512], strides = [1, 1]} : vector<64x512xf32> to vector<8x512xf32>
    %cst_31 = arith.constant dense<0.000000e+00> : vector<8x512xf32>
    %107 = tpu.matmul %104, %12, %cst_31 {dimension_numbers = #tpu.dot_dimension_numbers<[1], [0], [0], [1], [0, 0, 1, 1], [], []>} : vector<8x128xf32>, vector<128x512xf32>, vector<8x512xf32> -> vector<8x512xf32>
    %108 = arith.addf %106, %107 : vector<8x512xf32>
    %109 = vector.extract_strided_slice %108 {offsets = [0, 0], sizes = [8, 128], strides = [1, 1]} : vector<8x512xf32> to vector<8x128xf32>
    %110 = arith.negf %109 : vector<8x128xf32>
    %111 = math.exp %110 : vector<8x128xf32>
    %cst_32 = arith.constant 1.000000e+00 : f32
    %112 = vector.broadcast %cst_32 : f32 to vector<8x128xf32>
    %113 = arith.addf %112, %111 : vector<8x128xf32>
    %114 = arith.divf %112, %113 : vector<8x128xf32>
    %115 = vector.extract_strided_slice %108 {offsets = [0, 128], sizes = [8, 128], strides = [1, 1]} : vector<8x512xf32> to vector<8x128xf32>
    %116 = arith.negf %115 : vector<8x128xf32>
    %117 = math.exp %116 : vector<8x128xf32>
    %cst_33 = arith.constant 1.000000e+00 : f32
    %118 = vector.broadcast %cst_33 : f32 to vector<8x128xf32>
    %119 = arith.addf %118, %117 : vector<8x128xf32>
    %120 = arith.divf %118, %119 : vector<8x128xf32>
    %121 = vector.extract_strided_slice %108 {offsets = [0, 256], sizes = [8, 128], strides = [1, 1]} : vector<8x512xf32> to vector<8x128xf32>
    %122 = math.tanh %121 : vector<8x128xf32>
    %123 = vector.extract_strided_slice %108 {offsets = [0, 384], sizes = [8, 128], strides = [1, 1]} : vector<8x512xf32> to vector<8x128xf32>
    %124 = arith.negf %123 : vector<8x128xf32>
    %125 = math.exp %124 : vector<8x128xf32>
    %cst_34 = arith.constant 1.000000e+00 : f32
    %126 = vector.broadcast %cst_34 : f32 to vector<8x128xf32>
    %127 = arith.addf %126, %125 : vector<8x128xf32>
    %128 = arith.divf %126, %127 : vector<8x128xf32>
    %129 = arith.mulf %120, %102 : vector<8x128xf32>
    %130 = arith.mulf %114, %122 : vector<8x128xf32>
    %131 = arith.addf %129, %130 : vector<8x128xf32>
    %132 = math.tanh %131 : vector<8x128xf32>
    %133 = arith.mulf %128, %132 : vector<8x128xf32>
    %c24 = arith.constant 24 : index
    %c0_35 = arith.constant 0 : index
    %134 = vector.load %arg13[%c24, %c0_35] : memref<64x128xf32, #tpu.memory_space<vmem>>, vector<8x128xf32>
    tpu.vector_store %arg13[%c24, %c0_35], %133 {strides = array<i32>} : memref<64x128xf32, #tpu.memory_space<vmem>>, vector<8x128xf32>,
    %135 = vector.extract_strided_slice %16 {offsets = [32, 0], sizes = [8, 512], strides = [1, 1]} : vector<64x512xf32> to vector<8x512xf32>
    %cst_36 = arith.constant dense<0.000000e+00> : vector<8x512xf32>
    %136 = tpu.matmul %133, %12, %cst_36 {dimension_numbers = #tpu.dot_dimension_numbers<[1], [0], [0], [1], [0, 0, 1, 1], [], []>} : vector<8x128xf32>, vector<128x512xf32>, vector<8x512xf32> -> vector<8x512xf32>
    %137 = arith.addf %135, %136 : vector<8x512xf32>
    %138 = vector.extract_strided_slice %137 {offsets = [0, 0], sizes = [8, 128], strides = [1, 1]} : vector<8x512xf32> to vector<8x128xf32>
    %139 = arith.negf %138 : vector<8x128xf32>
    %140 = math.exp %139 : vector<8x128xf32>
    %cst_37 = arith.constant 1.000000e+00 : f32
    %141 = vector.broadcast %cst_37 : f32 to vector<8x128xf32>
    %142 = arith.addf %141, %140 : vector<8x128xf32>
    %143 = arith.divf %141, %142 : vector<8x128xf32>
    %144 = vector.extract_strided_slice %137 {offsets = [0, 128], sizes = [8, 128], strides = [1, 1]} : vector<8x512xf32> to vector<8x128xf32>
    %145 = arith.negf %144 : vector<8x128xf32>
    %146 = math.exp %145 : vector<8x128xf32>
    %cst_38 = arith.constant 1.000000e+00 : f32
    %147 = vector.broadcast %cst_38 : f32 to vector<8x128xf32>
    %148 = arith.addf %147, %146 : vector<8x128xf32>
    %149 = arith.divf %147, %148 : vector<8x128xf32>
    %150 = vector.extract_strided_slice %137 {offsets = [0, 256], sizes = [8, 128], strides = [1, 1]} : vector<8x512xf32> to vector<8x128xf32>
    %151 = math.tanh %150 : vector<8x128xf32>
    %152 = vector.extract_strided_slice %137 {offsets = [0, 384], sizes = [8, 128], strides = [1, 1]} : vector<8x512xf32> to vector<8x128xf32>
    %153 = arith.negf %152 : vector<8x128xf32>
    %154 = math.exp %153 : vector<8x128xf32>
    %cst_39 = arith.constant 1.000000e+00 : f32
    %155 = vector.broadcast %cst_39 : f32 to vector<8x128xf32>
    %156 = arith.addf %155, %154 : vector<8x128xf32>
    %157 = arith.divf %155, %156 : vector<8x128xf32>
    %158 = arith.mulf %149, %131 : vector<8x128xf32>
    %159 = arith.mulf %143, %151 : vector<8x128xf32>
    %160 = arith.addf %158, %159 : vector<8x128xf32>
    %161 = math.tanh %160 : vector<8x128xf32>
    %162 = arith.mulf %157, %161 : vector<8x128xf32>
    %c32 = arith.constant 32 : index
    %c0_40 = arith.constant 0 : index
    %163 = vector.load %arg13[%c32, %c0_40] : memref<64x128xf32, #tpu.memory_space<vmem>>, vector<8x128xf32>
    tpu.vector_store %arg13[%c32, %c0_40], %162 {strides = array<i32>} : memref<64x128xf32, #tpu.memory_space<vmem>>, vector<8x128xf32>,
    %164 = vector.extract_strided_slice %16 {offsets = [40, 0], sizes = [8, 512], strides = [1, 1]} : vector<64x512xf32> to vector<8x512xf32>
    %cst_41 = arith.constant dense<0.000000e+00> : vector<8x512xf32>
    %165 = tpu.matmul %162, %12, %cst_41 {dimension_numbers = #tpu.dot_dimension_numbers<[1], [0], [0], [1], [0, 0, 1, 1], [], []>} : vector<8x128xf32>, vector<128x512xf32>, vector<8x512xf32> -> vector<8x512xf32>
    %166 = arith.addf %164, %165 : vector<8x512xf32>
    %167 = vector.extract_strided_slice %166 {offsets = [0, 0], sizes = [8, 128], strides = [1, 1]} : vector<8x512xf32> to vector<8x128xf32>
    %168 = arith.negf %167 : vector<8x128xf32>
    %169 = math.exp %168 : vector<8x128xf32>
    %cst_42 = arith.constant 1.000000e+00 : f32
    %170 = vector.broadcast %cst_42 : f32 to vector<8x128xf32>
    %171 = arith.addf %170, %169 : vector<8x128xf32>
    %172 = arith.divf %170, %171 : vector<8x128xf32>
    %173 = vector.extract_strided_slice %166 {offsets = [0, 128], sizes = [8, 128], strides = [1, 1]} : vector<8x512xf32> to vector<8x128xf32>
    %174 = arith.negf %173 : vector<8x128xf32>
    %175 = math.exp %174 : vector<8x128xf32>
    %cst_43 = arith.constant 1.000000e+00 : f32
    %176 = vector.broadcast %cst_43 : f32 to vector<8x128xf32>
    %177 = arith.addf %176, %175 : vector<8x128xf32>
    %178 = arith.divf %176, %177 : vector<8x128xf32>
    %179 = vector.extract_strided_slice %166 {offsets = [0, 256], sizes = [8, 128], strides = [1, 1]} : vector<8x512xf32> to vector<8x128xf32>
    %180 = math.tanh %179 : vector<8x128xf32>
    %181 = vector.extract_strided_slice %166 {offsets = [0, 384], sizes = [8, 128], strides = [1, 1]} : vector<8x512xf32> to vector<8x128xf32>
    %182 = arith.negf %181 : vector<8x128xf32>
    %183 = math.exp %182 : vector<8x128xf32>
    %cst_44 = arith.constant 1.000000e+00 : f32
    %184 = vector.broadcast %cst_44 : f32 to vector<8x128xf32>
    %185 = arith.addf %184, %183 : vector<8x128xf32>
    %186 = arith.divf %184, %185 : vector<8x128xf32>
    %187 = arith.mulf %178, %160 : vector<8x128xf32>
    %188 = arith.mulf %172, %180 : vector<8x128xf32>
    %189 = arith.addf %187, %188 : vector<8x128xf32>
    %190 = math.tanh %189 : vector<8x128xf32>
    %191 = arith.mulf %186, %190 : vector<8x128xf32>
    %c40 = arith.constant 40 : index
    %c0_45 = arith.constant 0 : index
    %192 = vector.load %arg13[%c40, %c0_45] : memref<64x128xf32, #tpu.memory_space<vmem>>, vector<8x128xf32>
    tpu.vector_store %arg13[%c40, %c0_45], %191 {strides = array<i32>} : memref<64x128xf32, #tpu.memory_space<vmem>>, vector<8x128xf32>,
    %193 = vector.extract_strided_slice %16 {offsets = [48, 0], sizes = [8, 512], strides = [1, 1]} : vector<64x512xf32> to vector<8x512xf32>
    %cst_46 = arith.constant dense<0.000000e+00> : vector<8x512xf32>
    %194 = tpu.matmul %191, %12, %cst_46 {dimension_numbers = #tpu.dot_dimension_numbers<[1], [0], [0], [1], [0, 0, 1, 1], [], []>} : vector<8x128xf32>, vector<128x512xf32>, vector<8x512xf32> -> vector<8x512xf32>
    %195 = arith.addf %193, %194 : vector<8x512xf32>
    %196 = vector.extract_strided_slice %195 {offsets = [0, 0], sizes = [8, 128], strides = [1, 1]} : vector<8x512xf32> to vector<8x128xf32>
    %197 = arith.negf %196 : vector<8x128xf32>
    %198 = math.exp %197 : vector<8x128xf32>
    %cst_47 = arith.constant 1.000000e+00 : f32
    %199 = vector.broadcast %cst_47 : f32 to vector<8x128xf32>
    %200 = arith.addf %199, %198 : vector<8x128xf32>
    %201 = arith.divf %199, %200 : vector<8x128xf32>
    %202 = vector.extract_strided_slice %195 {offsets = [0, 128], sizes = [8, 128], strides = [1, 1]} : vector<8x512xf32> to vector<8x128xf32>
    %203 = arith.negf %202 : vector<8x128xf32>
    %204 = math.exp %203 : vector<8x128xf32>
    %cst_48 = arith.constant 1.000000e+00 : f32
    %205 = vector.broadcast %cst_48 : f32 to vector<8x128xf32>
    %206 = arith.addf %205, %204 : vector<8x128xf32>
    %207 = arith.divf %205, %206 : vector<8x128xf32>
    %208 = vector.extract_strided_slice %195 {offsets = [0, 256], sizes = [8, 128], strides = [1, 1]} : vector<8x512xf32> to vector<8x128xf32>
    %209 = math.tanh %208 : vector<8x128xf32>
    %210 = vector.extract_strided_slice %195 {offsets = [0, 384], sizes = [8, 128], strides = [1, 1]} : vector<8x512xf32> to vector<8x128xf32>
    %211 = arith.negf %210 : vector<8x128xf32>
    %212 = math.exp %211 : vector<8x128xf32>
    %cst_49 = arith.constant 1.000000e+00 : f32
    %213 = vector.broadcast %cst_49 : f32 to vector<8x128xf32>
    %214 = arith.addf %213, %212 : vector<8x128xf32>
    %215 = arith.divf %213, %214 : vector<8x128xf32>
    %216 = arith.mulf %207, %189 : vector<8x128xf32>
    %217 = arith.mulf %201, %209 : vector<8x128xf32>
    %218 = arith.addf %216, %217 : vector<8x128xf32>
    %219 = math.tanh %218 : vector<8x128xf32>
    %220 = arith.mulf %215, %219 : vector<8x128xf32>
    %c48 = arith.constant 48 : index
    %c0_50 = arith.constant 0 : index
    %221 = vector.load %arg13[%c48, %c0_50] : memref<64x128xf32, #tpu.memory_space<vmem>>, vector<8x128xf32>
    tpu.vector_store %arg13[%c48, %c0_50], %220 {strides = array<i32>} : memref<64x128xf32, #tpu.memory_space<vmem>>, vector<8x128xf32>,
    %222 = vector.extract_strided_slice %16 {offsets = [56, 0], sizes = [8, 512], strides = [1, 1]} : vector<64x512xf32> to vector<8x512xf32>
    %cst_51 = arith.constant dense<0.000000e+00> : vector<8x512xf32>
    %223 = tpu.matmul %220, %12, %cst_51 {dimension_numbers = #tpu.dot_dimension_numbers<[1], [0], [0], [1], [0, 0, 1, 1], [], []>} : vector<8x128xf32>, vector<128x512xf32>, vector<8x512xf32> -> vector<8x512xf32>
    %224 = arith.addf %222, %223 : vector<8x512xf32>
    %225 = vector.extract_strided_slice %224 {offsets = [0, 0], sizes = [8, 128], strides = [1, 1]} : vector<8x512xf32> to vector<8x128xf32>
    %226 = arith.negf %225 : vector<8x128xf32>
    %227 = math.exp %226 : vector<8x128xf32>
    %cst_52 = arith.constant 1.000000e+00 : f32
    %228 = vector.broadcast %cst_52 : f32 to vector<8x128xf32>
    %229 = arith.addf %228, %227 : vector<8x128xf32>
    %230 = arith.divf %228, %229 : vector<8x128xf32>
    %231 = vector.extract_strided_slice %224 {offsets = [0, 128], sizes = [8, 128], strides = [1, 1]} : vector<8x512xf32> to vector<8x128xf32>
    %232 = arith.negf %231 : vector<8x128xf32>
    %233 = math.exp %232 : vector<8x128xf32>
    %cst_53 = arith.constant 1.000000e+00 : f32
    %234 = vector.broadcast %cst_53 : f32 to vector<8x128xf32>
    %235 = arith.addf %234, %233 : vector<8x128xf32>
    %236 = arith.divf %234, %235 : vector<8x128xf32>
    %237 = vector.extract_strided_slice %224 {offsets = [0, 256], sizes = [8, 128], strides = [1, 1]} : vector<8x512xf32> to vector<8x128xf32>
    %238 = math.tanh %237 : vector<8x128xf32>
    %239 = vector.extract_strided_slice %224 {offsets = [0, 384], sizes = [8, 128], strides = [1, 1]} : vector<8x512xf32> to vector<8x128xf32>
    %240 = arith.negf %239 : vector<8x128xf32>
    %241 = math.exp %240 : vector<8x128xf32>
    %cst_54 = arith.constant 1.000000e+00 : f32
    %242 = vector.broadcast %cst_54 : f32 to vector<8x128xf32>
    %243 = arith.addf %242, %241 : vector<8x128xf32>
    %244 = arith.divf %242, %243 : vector<8x128xf32>
    %245 = arith.mulf %236, %218 : vector<8x128xf32>
    %246 = arith.mulf %230, %238 : vector<8x128xf32>
    %247 = arith.addf %245, %246 : vector<8x128xf32>
    %248 = math.tanh %247 : vector<8x128xf32>
    %249 = arith.mulf %244, %248 : vector<8x128xf32>
    %c56 = arith.constant 56 : index
    %c0_55 = arith.constant 0 : index
    %250 = vector.load %arg13[%c56, %c0_55] : memref<64x128xf32, #tpu.memory_space<vmem>>, vector<8x128xf32>
    tpu.vector_store %arg13[%c56, %c0_55], %249 {strides = array<i32>} : memref<64x128xf32, #tpu.memory_space<vmem>>, vector<8x128xf32>,
    %c0_56 = arith.constant 0 : index
    %c0_57 = arith.constant 0 : index
    %251 = vector.load %arg13[%c0_56, %c0_57] : memref<64x128xf32, #tpu.memory_space<vmem>>, vector<64x128xf32>
    %c0_58 = arith.constant 0 : index
    %c0_59 = arith.constant 0 : index
    %252 = vector.load %arg6[%c0_58, %c0_59] : memref<128x512xf32, #tpu.memory_space<vmem>>, vector<128x512xf32>
    %c0_60 = arith.constant 0 : index
    %c0_61 = arith.constant 0 : index
    %253 = vector.load %arg7[%c0_60, %c0_61] : memref<128x512xf32, #tpu.memory_space<vmem>>, vector<128x512xf32>
    %c0_62 = arith.constant 0 : index
    %c0_63 = arith.constant 0 : index
    %254 = vector.load %arg8[%c0_62, %c0_63] : memref<1x512xf32, #tpu.memory_space<vmem>>, vector<1x512xf32>
    %cst_64 = arith.constant dense<0.000000e+00> : vector<64x512xf32>
    %255 = tpu.matmul %251, %252, %cst_64 {dimension_numbers = #tpu.dot_dimension_numbers<[1], [0], [0], [1], [0, 0, 1, 1], [], []>} : vector<64x128xf32>, vector<128x512xf32>, vector<64x512xf32> -> vector<64x512xf32>
    %256 = vector.broadcast %254 : vector<1x512xf32> to vector<64x512xf32>
    %257 = arith.addf %255, %256 : vector<64x512xf32>
    %cst_65 = arith.constant 0.000000e+00 : f32
    %258 = vector.broadcast %cst_65 : f32 to vector<8x128xf32>
    %cst_66 = arith.constant 0.000000e+00 : f32
    %259 = vector.broadcast %cst_66 : f32 to vector<8x128xf32>
    %260 = vector.extract_strided_slice %257 {offsets = [0, 0], sizes = [8, 512], strides = [1, 1]} : vector<64x512xf32> to vector<8x512xf32>
    %cst_67 = arith.constant dense<0.000000e+00> : vector<8x512xf32>
    %261 = tpu.matmul %258, %253, %cst_67 {dimension_numbers = #tpu.dot_dimension_numbers<[1], [0], [0], [1], [0, 0, 1, 1], [], []>} : vector<8x128xf32>, vector<128x512xf32>, vector<8x512xf32> -> vector<8x512xf32>
    %262 = arith.addf %260, %261 : vector<8x512xf32>
    %263 = vector.extract_strided_slice %262 {offsets = [0, 0], sizes = [8, 128], strides = [1, 1]} : vector<8x512xf32> to vector<8x128xf32>
    %264 = arith.negf %263 : vector<8x128xf32>
    %265 = math.exp %264 : vector<8x128xf32>
    %cst_68 = arith.constant 1.000000e+00 : f32
    %266 = vector.broadcast %cst_68 : f32 to vector<8x128xf32>
    %267 = arith.addf %266, %265 : vector<8x128xf32>
    %268 = arith.divf %266, %267 : vector<8x128xf32>
    %269 = vector.extract_strided_slice %262 {offsets = [0, 128], sizes = [8, 128], strides = [1, 1]} : vector<8x512xf32> to vector<8x128xf32>
    %270 = arith.negf %269 : vector<8x128xf32>
    %271 = math.exp %270 : vector<8x128xf32>
    %cst_69 = arith.constant 1.000000e+00 : f32
    %272 = vector.broadcast %cst_69 : f32 to vector<8x128xf32>
    %273 = arith.addf %272, %271 : vector<8x128xf32>
    %274 = arith.divf %272, %273 : vector<8x128xf32>
    %275 = vector.extract_strided_slice %262 {offsets = [0, 256], sizes = [8, 128], strides = [1, 1]} : vector<8x512xf32> to vector<8x128xf32>
    %276 = math.tanh %275 : vector<8x128xf32>
    %277 = vector.extract_strided_slice %262 {offsets = [0, 384], sizes = [8, 128], strides = [1, 1]} : vector<8x512xf32> to vector<8x128xf32>
    %278 = arith.negf %277 : vector<8x128xf32>
    %279 = math.exp %278 : vector<8x128xf32>
    %cst_70 = arith.constant 1.000000e+00 : f32
    %280 = vector.broadcast %cst_70 : f32 to vector<8x128xf32>
    %281 = arith.addf %280, %279 : vector<8x128xf32>
    %282 = arith.divf %280, %281 : vector<8x128xf32>
    %283 = arith.mulf %274, %259 : vector<8x128xf32>
    %284 = arith.mulf %268, %276 : vector<8x128xf32>
    %285 = arith.addf %283, %284 : vector<8x128xf32>
    %286 = math.tanh %285 : vector<8x128xf32>
    %287 = arith.mulf %282, %286 : vector<8x128xf32>
    %288 = vector.extract_strided_slice %257 {offsets = [8, 0], sizes = [8, 512], strides = [1, 1]} : vector<64x512xf32> to vector<8x512xf32>
    %cst_71 = arith.constant dense<0.000000e+00> : vector<8x512xf32>
    %289 = tpu.matmul %287, %253, %cst_71 {dimension_numbers = #tpu.dot_dimension_numbers<[1], [0], [0], [1], [0, 0, 1, 1], [], []>} : vector<8x128xf32>, vector<128x512xf32>, vector<8x512xf32> -> vector<8x512xf32>
    %290 = arith.addf %288, %289 : vector<8x512xf32>
    %291 = vector.extract_strided_slice %290 {offsets = [0, 0], sizes = [8, 128], strides = [1, 1]} : vector<8x512xf32> to vector<8x128xf32>
    %292 = arith.negf %291 : vector<8x128xf32>
    %293 = math.exp %292 : vector<8x128xf32>
    %cst_72 = arith.constant 1.000000e+00 : f32
    %294 = vector.broadcast %cst_72 : f32 to vector<8x128xf32>
    %295 = arith.addf %294, %293 : vector<8x128xf32>
    %296 = arith.divf %294, %295 : vector<8x128xf32>
    %297 = vector.extract_strided_slice %290 {offsets = [0, 128], sizes = [8, 128], strides = [1, 1]} : vector<8x512xf32> to vector<8x128xf32>
    %298 = arith.negf %297 : vector<8x128xf32>
    %299 = math.exp %298 : vector<8x128xf32>
    %cst_73 = arith.constant 1.000000e+00 : f32
    %300 = vector.broadcast %cst_73 : f32 to vector<8x128xf32>
    %301 = arith.addf %300, %299 : vector<8x128xf32>
    %302 = arith.divf %300, %301 : vector<8x128xf32>
    %303 = vector.extract_strided_slice %290 {offsets = [0, 256], sizes = [8, 128], strides = [1, 1]} : vector<8x512xf32> to vector<8x128xf32>
    %304 = math.tanh %303 : vector<8x128xf32>
    %305 = vector.extract_strided_slice %290 {offsets = [0, 384], sizes = [8, 128], strides = [1, 1]} : vector<8x512xf32> to vector<8x128xf32>
    %306 = arith.negf %305 : vector<8x128xf32>
    %307 = math.exp %306 : vector<8x128xf32>
    %cst_74 = arith.constant 1.000000e+00 : f32
    %308 = vector.broadcast %cst_74 : f32 to vector<8x128xf32>
    %309 = arith.addf %308, %307 : vector<8x128xf32>
    %310 = arith.divf %308, %309 : vector<8x128xf32>
    %311 = arith.mulf %302, %285 : vector<8x128xf32>
    %312 = arith.mulf %296, %304 : vector<8x128xf32>
    %313 = arith.addf %311, %312 : vector<8x128xf32>
    %314 = math.tanh %313 : vector<8x128xf32>
    %315 = arith.mulf %310, %314 : vector<8x128xf32>
    %316 = vector.extract_strided_slice %257 {offsets = [16, 0], sizes = [8, 512], strides = [1, 1]} : vector<64x512xf32> to vector<8x512xf32>
    %cst_75 = arith.constant dense<0.000000e+00> : vector<8x512xf32>
    %317 = tpu.matmul %315, %253, %cst_75 {dimension_numbers = #tpu.dot_dimension_numbers<[1], [0], [0], [1], [0, 0, 1, 1], [], []>} : vector<8x128xf32>, vector<128x512xf32>, vector<8x512xf32> -> vector<8x512xf32>
    %318 = arith.addf %316, %317 : vector<8x512xf32>
    %319 = vector.extract_strided_slice %318 {offsets = [0, 0], sizes = [8, 128], strides = [1, 1]} : vector<8x512xf32> to vector<8x128xf32>
    %320 = arith.negf %319 : vector<8x128xf32>
    %321 = math.exp %320 : vector<8x128xf32>
    %cst_76 = arith.constant 1.000000e+00 : f32
    %322 = vector.broadcast %cst_76 : f32 to vector<8x128xf32>
    %323 = arith.addf %322, %321 : vector<8x128xf32>
    %324 = arith.divf %322, %323 : vector<8x128xf32>
    %325 = vector.extract_strided_slice %318 {offsets = [0, 128], sizes = [8, 128], strides = [1, 1]} : vector<8x512xf32> to vector<8x128xf32>
    %326 = arith.negf %325 : vector<8x128xf32>
    %327 = math.exp %326 : vector<8x128xf32>
    %cst_77 = arith.constant 1.000000e+00 : f32
    %328 = vector.broadcast %cst_77 : f32 to vector<8x128xf32>
    %329 = arith.addf %328, %327 : vector<8x128xf32>
    %330 = arith.divf %328, %329 : vector<8x128xf32>
    %331 = vector.extract_strided_slice %318 {offsets = [0, 256], sizes = [8, 128], strides = [1, 1]} : vector<8x512xf32> to vector<8x128xf32>
    %332 = math.tanh %331 : vector<8x128xf32>
    %333 = vector.extract_strided_slice %318 {offsets = [0, 384], sizes = [8, 128], strides = [1, 1]} : vector<8x512xf32> to vector<8x128xf32>
    %334 = arith.negf %333 : vector<8x128xf32>
    %335 = math.exp %334 : vector<8x128xf32>
    %cst_78 = arith.constant 1.000000e+00 : f32
    %336 = vector.broadcast %cst_78 : f32 to vector<8x128xf32>
    %337 = arith.addf %336, %335 : vector<8x128xf32>
    %338 = arith.divf %336, %337 : vector<8x128xf32>
    %339 = arith.mulf %330, %313 : vector<8x128xf32>
    %340 = arith.mulf %324, %332 : vector<8x128xf32>
    %341 = arith.addf %339, %340 : vector<8x128xf32>
    %342 = math.tanh %341 : vector<8x128xf32>
    %343 = arith.mulf %338, %342 : vector<8x128xf32>
    %344 = vector.extract_strided_slice %257 {offsets = [24, 0], sizes = [8, 512], strides = [1, 1]} : vector<64x512xf32> to vector<8x512xf32>
    %cst_79 = arith.constant dense<0.000000e+00> : vector<8x512xf32>
    %345 = tpu.matmul %343, %253, %cst_79 {dimension_numbers = #tpu.dot_dimension_numbers<[1], [0], [0], [1], [0, 0, 1, 1], [], []>} : vector<8x128xf32>, vector<128x512xf32>, vector<8x512xf32> -> vector<8x512xf32>
    %346 = arith.addf %344, %345 : vector<8x512xf32>
    %347 = vector.extract_strided_slice %346 {offsets = [0, 0], sizes = [8, 128], strides = [1, 1]} : vector<8x512xf32> to vector<8x128xf32>
    %348 = arith.negf %347 : vector<8x128xf32>
    %349 = math.exp %348 : vector<8x128xf32>
    %cst_80 = arith.constant 1.000000e+00 : f32
    %350 = vector.broadcast %cst_80 : f32 to vector<8x128xf32>
    %351 = arith.addf %350, %349 : vector<8x128xf32>
    %352 = arith.divf %350, %351 : vector<8x128xf32>
    %353 = vector.extract_strided_slice %346 {offsets = [0, 128], sizes = [8, 128], strides = [1, 1]} : vector<8x512xf32> to vector<8x128xf32>
    %354 = arith.negf %353 : vector<8x128xf32>
    %355 = math.exp %354 : vector<8x128xf32>
    %cst_81 = arith.constant 1.000000e+00 : f32
    %356 = vector.broadcast %cst_81 : f32 to vector<8x128xf32>
    %357 = arith.addf %356, %355 : vector<8x128xf32>
    %358 = arith.divf %356, %357 : vector<8x128xf32>
    %359 = vector.extract_strided_slice %346 {offsets = [0, 256], sizes = [8, 128], strides = [1, 1]} : vector<8x512xf32> to vector<8x128xf32>
    %360 = math.tanh %359 : vector<8x128xf32>
    %361 = vector.extract_strided_slice %346 {offsets = [0, 384], sizes = [8, 128], strides = [1, 1]} : vector<8x512xf32> to vector<8x128xf32>
    %362 = arith.negf %361 : vector<8x128xf32>
    %363 = math.exp %362 : vector<8x128xf32>
    %cst_82 = arith.constant 1.000000e+00 : f32
    %364 = vector.broadcast %cst_82 : f32 to vector<8x128xf32>
    %365 = arith.addf %364, %363 : vector<8x128xf32>
    %366 = arith.divf %364, %365 : vector<8x128xf32>
    %367 = arith.mulf %358, %341 : vector<8x128xf32>
    %368 = arith.mulf %352, %360 : vector<8x128xf32>
    %369 = arith.addf %367, %368 : vector<8x128xf32>
    %370 = math.tanh %369 : vector<8x128xf32>
    %371 = arith.mulf %366, %370 : vector<8x128xf32>
    %372 = vector.extract_strided_slice %257 {offsets = [32, 0], sizes = [8, 512], strides = [1, 1]} : vector<64x512xf32> to vector<8x512xf32>
    %cst_83 = arith.constant dense<0.000000e+00> : vector<8x512xf32>
    %373 = tpu.matmul %371, %253, %cst_83 {dimension_numbers = #tpu.dot_dimension_numbers<[1], [0], [0], [1], [0, 0, 1, 1], [], []>} : vector<8x128xf32>, vector<128x512xf32>, vector<8x512xf32> -> vector<8x512xf32>
    %374 = arith.addf %372, %373 : vector<8x512xf32>
    %375 = vector.extract_strided_slice %374 {offsets = [0, 0], sizes = [8, 128], strides = [1, 1]} : vector<8x512xf32> to vector<8x128xf32>
    %376 = arith.negf %375 : vector<8x128xf32>
    %377 = math.exp %376 : vector<8x128xf32>
    %cst_84 = arith.constant 1.000000e+00 : f32
    %378 = vector.broadcast %cst_84 : f32 to vector<8x128xf32>
    %379 = arith.addf %378, %377 : vector<8x128xf32>
    %380 = arith.divf %378, %379 : vector<8x128xf32>
    %381 = vector.extract_strided_slice %374 {offsets = [0, 128], sizes = [8, 128], strides = [1, 1]} : vector<8x512xf32> to vector<8x128xf32>
    %382 = arith.negf %381 : vector<8x128xf32>
    %383 = math.exp %382 : vector<8x128xf32>
    %cst_85 = arith.constant 1.000000e+00 : f32
    %384 = vector.broadcast %cst_85 : f32 to vector<8x128xf32>
    %385 = arith.addf %384, %383 : vector<8x128xf32>
    %386 = arith.divf %384, %385 : vector<8x128xf32>
    %387 = vector.extract_strided_slice %374 {offsets = [0, 256], sizes = [8, 128], strides = [1, 1]} : vector<8x512xf32> to vector<8x128xf32>
    %388 = math.tanh %387 : vector<8x128xf32>
    %389 = vector.extract_strided_slice %374 {offsets = [0, 384], sizes = [8, 128], strides = [1, 1]} : vector<8x512xf32> to vector<8x128xf32>
    %390 = arith.negf %389 : vector<8x128xf32>
    %391 = math.exp %390 : vector<8x128xf32>
    %cst_86 = arith.constant 1.000000e+00 : f32
    %392 = vector.broadcast %cst_86 : f32 to vector<8x128xf32>
    %393 = arith.addf %392, %391 : vector<8x128xf32>
    %394 = arith.divf %392, %393 : vector<8x128xf32>
    %395 = arith.mulf %386, %369 : vector<8x128xf32>
    %396 = arith.mulf %380, %388 : vector<8x128xf32>
    %397 = arith.addf %395, %396 : vector<8x128xf32>
    %398 = math.tanh %397 : vector<8x128xf32>
    %399 = arith.mulf %394, %398 : vector<8x128xf32>
    %400 = vector.extract_strided_slice %257 {offsets = [40, 0], sizes = [8, 512], strides = [1, 1]} : vector<64x512xf32> to vector<8x512xf32>
    %cst_87 = arith.constant dense<0.000000e+00> : vector<8x512xf32>
    %401 = tpu.matmul %399, %253, %cst_87 {dimension_numbers = #tpu.dot_dimension_numbers<[1], [0], [0], [1], [0, 0, 1, 1], [], []>} : vector<8x128xf32>, vector<128x512xf32>, vector<8x512xf32> -> vector<8x512xf32>
    %402 = arith.addf %400, %401 : vector<8x512xf32>
    %403 = vector.extract_strided_slice %402 {offsets = [0, 0], sizes = [8, 128], strides = [1, 1]} : vector<8x512xf32> to vector<8x128xf32>
    %404 = arith.negf %403 : vector<8x128xf32>
    %405 = math.exp %404 : vector<8x128xf32>
    %cst_88 = arith.constant 1.000000e+00 : f32
    %406 = vector.broadcast %cst_88 : f32 to vector<8x128xf32>
    %407 = arith.addf %406, %405 : vector<8x128xf32>
    %408 = arith.divf %406, %407 : vector<8x128xf32>
    %409 = vector.extract_strided_slice %402 {offsets = [0, 128], sizes = [8, 128], strides = [1, 1]} : vector<8x512xf32> to vector<8x128xf32>
    %410 = arith.negf %409 : vector<8x128xf32>
    %411 = math.exp %410 : vector<8x128xf32>
    %cst_89 = arith.constant 1.000000e+00 : f32
    %412 = vector.broadcast %cst_89 : f32 to vector<8x128xf32>
    %413 = arith.addf %412, %411 : vector<8x128xf32>
    %414 = arith.divf %412, %413 : vector<8x128xf32>
    %415 = vector.extract_strided_slice %402 {offsets = [0, 256], sizes = [8, 128], strides = [1, 1]} : vector<8x512xf32> to vector<8x128xf32>
    %416 = math.tanh %415 : vector<8x128xf32>
    %417 = vector.extract_strided_slice %402 {offsets = [0, 384], sizes = [8, 128], strides = [1, 1]} : vector<8x512xf32> to vector<8x128xf32>
    %418 = arith.negf %417 : vector<8x128xf32>
    %419 = math.exp %418 : vector<8x128xf32>
    %cst_90 = arith.constant 1.000000e+00 : f32
    %420 = vector.broadcast %cst_90 : f32 to vector<8x128xf32>
    %421 = arith.addf %420, %419 : vector<8x128xf32>
    %422 = arith.divf %420, %421 : vector<8x128xf32>
    %423 = arith.mulf %414, %397 : vector<8x128xf32>
    %424 = arith.mulf %408, %416 : vector<8x128xf32>
    %425 = arith.addf %423, %424 : vector<8x128xf32>
    %426 = math.tanh %425 : vector<8x128xf32>
    %427 = arith.mulf %422, %426 : vector<8x128xf32>
    %428 = vector.extract_strided_slice %257 {offsets = [48, 0], sizes = [8, 512], strides = [1, 1]} : vector<64x512xf32> to vector<8x512xf32>
    %cst_91 = arith.constant dense<0.000000e+00> : vector<8x512xf32>
    %429 = tpu.matmul %427, %253, %cst_91 {dimension_numbers = #tpu.dot_dimension_numbers<[1], [0], [0], [1], [0, 0, 1, 1], [], []>} : vector<8x128xf32>, vector<128x512xf32>, vector<8x512xf32> -> vector<8x512xf32>
    %430 = arith.addf %428, %429 : vector<8x512xf32>
    %431 = vector.extract_strided_slice %430 {offsets = [0, 0], sizes = [8, 128], strides = [1, 1]} : vector<8x512xf32> to vector<8x128xf32>
    %432 = arith.negf %431 : vector<8x128xf32>
    %433 = math.exp %432 : vector<8x128xf32>
    %cst_92 = arith.constant 1.000000e+00 : f32
    %434 = vector.broadcast %cst_92 : f32 to vector<8x128xf32>
    %435 = arith.addf %434, %433 : vector<8x128xf32>
    %436 = arith.divf %434, %435 : vector<8x128xf32>
    %437 = vector.extract_strided_slice %430 {offsets = [0, 128], sizes = [8, 128], strides = [1, 1]} : vector<8x512xf32> to vector<8x128xf32>
    %438 = arith.negf %437 : vector<8x128xf32>
    %439 = math.exp %438 : vector<8x128xf32>
    %cst_93 = arith.constant 1.000000e+00 : f32
    %440 = vector.broadcast %cst_93 : f32 to vector<8x128xf32>
    %441 = arith.addf %440, %439 : vector<8x128xf32>
    %442 = arith.divf %440, %441 : vector<8x128xf32>
    %443 = vector.extract_strided_slice %430 {offsets = [0, 256], sizes = [8, 128], strides = [1, 1]} : vector<8x512xf32> to vector<8x128xf32>
    %444 = math.tanh %443 : vector<8x128xf32>
    %445 = vector.extract_strided_slice %430 {offsets = [0, 384], sizes = [8, 128], strides = [1, 1]} : vector<8x512xf32> to vector<8x128xf32>
    %446 = arith.negf %445 : vector<8x128xf32>
    %447 = math.exp %446 : vector<8x128xf32>
    %cst_94 = arith.constant 1.000000e+00 : f32
    %448 = vector.broadcast %cst_94 : f32 to vector<8x128xf32>
    %449 = arith.addf %448, %447 : vector<8x128xf32>
    %450 = arith.divf %448, %449 : vector<8x128xf32>
    %451 = arith.mulf %442, %425 : vector<8x128xf32>
    %452 = arith.mulf %436, %444 : vector<8x128xf32>
    %453 = arith.addf %451, %452 : vector<8x128xf32>
    %454 = math.tanh %453 : vector<8x128xf32>
    %455 = arith.mulf %450, %454 : vector<8x128xf32>
    %456 = vector.extract_strided_slice %257 {offsets = [56, 0], sizes = [8, 512], strides = [1, 1]} : vector<64x512xf32> to vector<8x512xf32>
    %cst_95 = arith.constant dense<0.000000e+00> : vector<8x512xf32>
    %457 = tpu.matmul %455, %253, %cst_95 {dimension_numbers = #tpu.dot_dimension_numbers<[1], [0], [0], [1], [0, 0, 1, 1], [], []>} : vector<8x128xf32>, vector<128x512xf32>, vector<8x512xf32> -> vector<8x512xf32>
    %458 = arith.addf %456, %457 : vector<8x512xf32>
    %459 = vector.extract_strided_slice %458 {offsets = [0, 0], sizes = [8, 128], strides = [1, 1]} : vector<8x512xf32> to vector<8x128xf32>
    %460 = arith.negf %459 : vector<8x128xf32>
    %461 = math.exp %460 : vector<8x128xf32>
    %cst_96 = arith.constant 1.000000e+00 : f32
    %462 = vector.broadcast %cst_96 : f32 to vector<8x128xf32>
    %463 = arith.addf %462, %461 : vector<8x128xf32>
    %464 = arith.divf %462, %463 : vector<8x128xf32>
    %465 = vector.extract_strided_slice %458 {offsets = [0, 128], sizes = [8, 128], strides = [1, 1]} : vector<8x512xf32> to vector<8x128xf32>
    %466 = arith.negf %465 : vector<8x128xf32>
    %467 = math.exp %466 : vector<8x128xf32>
    %cst_97 = arith.constant 1.000000e+00 : f32
    %468 = vector.broadcast %cst_97 : f32 to vector<8x128xf32>
    %469 = arith.addf %468, %467 : vector<8x128xf32>
    %470 = arith.divf %468, %469 : vector<8x128xf32>
    %471 = vector.extract_strided_slice %458 {offsets = [0, 256], sizes = [8, 128], strides = [1, 1]} : vector<8x512xf32> to vector<8x128xf32>
    %472 = math.tanh %471 : vector<8x128xf32>
    %473 = vector.extract_strided_slice %458 {offsets = [0, 384], sizes = [8, 128], strides = [1, 1]} : vector<8x512xf32> to vector<8x128xf32>
    %474 = arith.negf %473 : vector<8x128xf32>
    %475 = math.exp %474 : vector<8x128xf32>
    %cst_98 = arith.constant 1.000000e+00 : f32
    %476 = vector.broadcast %cst_98 : f32 to vector<8x128xf32>
    %477 = arith.addf %476, %475 : vector<8x128xf32>
    %478 = arith.divf %476, %477 : vector<8x128xf32>
    %479 = arith.mulf %470, %453 : vector<8x128xf32>
    %480 = arith.mulf %464, %472 : vector<8x128xf32>
    %481 = arith.addf %479, %480 : vector<8x128xf32>
    %482 = math.tanh %481 : vector<8x128xf32>
    %483 = arith.mulf %478, %482 : vector<8x128xf32>
    %c0_99 = arith.constant 0 : index
    %c0_100 = arith.constant 0 : index
    %484 = vector.load %arg12[%c0_99, %c0_100] : memref<8x128xf32, #tpu.memory_space<vmem>>, vector<8x128xf32>
    tpu.vector_store %arg12[%c0_99, %c0_100], %483 {strides = array<i32>} : memref<8x128xf32, #tpu.memory_space<vmem>>, vector<8x128xf32>,
    %c0_101 = arith.constant 0 : index
    %c0_102 = arith.constant 0 : index
    %485 = vector.load %arg9[%c0_101, %c0_102] : memref<128x128xf32, #tpu.memory_space<vmem>>, vector<128x128xf32>
    %cst_103 = arith.constant dense<0.000000e+00> : vector<8x128xf32>
    %486 = tpu.matmul %483, %485, %cst_103 {dimension_numbers = #tpu.dot_dimension_numbers<[1], [0], [0], [1], [0, 0, 1, 1], [], []>} : vector<8x128xf32>, vector<128x128xf32>, vector<8x128xf32> -> vector<8x128xf32>
    %c0_104 = arith.constant 0 : index
    %c0_105 = arith.constant 0 : index
    %487 = vector.load %arg10[%c0_104, %c0_105] : memref<1x128xf32, #tpu.memory_space<vmem>>, vector<1x128xf32>
    %488 = vector.broadcast %487 : vector<1x128xf32> to vector<8x128xf32>
    %489 = arith.addf %486, %488 : vector<8x128xf32>
    %490 = arith.negf %489 : vector<8x128xf32>
    %491 = math.exp %490 : vector<8x128xf32>
    %cst_106 = arith.constant 1.000000e+00 : f32
    %492 = vector.broadcast %cst_106 : f32 to vector<8x128xf32>
    %493 = arith.addf %492, %491 : vector<8x128xf32>
    %494 = arith.divf %492, %493 : vector<8x128xf32>
    %c0_107 = arith.constant 0 : index
    %c0_108 = arith.constant 0 : index
    %495 = vector.load %arg11[%c0_107, %c0_108] : memref<8x128xf32, #tpu.memory_space<vmem>>, vector<8x128xf32>
    tpu.vector_store %arg11[%c0_107, %c0_108], %494 {strides = array<i32>} : memref<8x128xf32, #tpu.memory_space<vmem>>, vector<8x128xf32>,
    return
  }
}

</mosaic_0001>

<bundles_post_ra>
// kernel: lstm_module_forward.1
= control target key start
LH: loop header
LB: loop body
LE: loop exit
PB: predicated region body
PF: predicated region fallthrough
CT: control target
= control target key end

     0   :  { %18 = vsyncpa [#allocation4], 0  ;;  %s6851_s0 = inlined_call_operand.vmem [shape: f32[64,256], index: 0, kind: input, shape index: {}]   ;;  %s6852_s1 = inlined_call_operand.hbm [shape: f32[256,128], index: 1, kind: input, shape index: {}]   ;;  %s6853_s2 = inlined_call_operand.vmem [shape: f32[1,128], index: 2, kind: input, shape index: {}]   ;;  %s6854_s3 = inlined_call_operand.vmem [shape: f32[128,512], index: 3, kind: input, shape index: {}]   ;;  %s6855_s4 = inlined_call_operand.vmem [shape: f32[128,512], index: 4, kind: input, shape index: {}]   ;;  %s6856_s5 = inlined_call_operand.vmem [shape: f32[1,512], index: 5, kind: input, shape index: {}]   ;;  %s6857_s6 = inlined_call_operand.hbm [shape: f32[128,512], index: 6, kind: input, shape index: {}]   ;;  %s6858_s7 = inlined_call_operand.hbm [shape: f32[128,512], index: 7, kind: input, shape index: {}]   ;;  %s6859_s8 = inlined_call_operand.vmem [shape: f32[1,512], index: 8, kind: input, shape index: {}]   ;;  %s6860_s9 = inlined_call_operand.vmem [shape: f32[128,128], index: 9, kind: input, shape index: {}]   ;;  %s6861_s10 = inlined_call_operand.vmem [shape: f32[1,128], index: 10, kind: input, shape index: {}]   ;;  %s6862_s11 = inlined_call_operand.vmem [shape: f32[8,128], index: 11, kind: output, shape index: {0}]   ;;  %s6863_s12 = inlined_call_operand.vmem [shape: f32[8,128], index: 12, kind: output, shape index: {1}]  }
   0x1   :  { %19 = vsyncpa [#allocation6], 0  ;;  %s47_s23 = sshll.u32 %s6857_s6, 4  ;;  %s4001_s24 = smov [#allocation5]   ;;  %s48_s23 = int_to_ptr.hbm [resolvable:$true] %s47_s23 }
   0x2   :  { %s49_s25 = sshll.u32 %s4001_s24, 4  ;;  %s26_s28 = sshll.u32 %s6852_s1, 4  ;;  %s50_s25 = int_to_ptr.vmem [resolvable:$true] %s49_s25  ;;  %s27_s28 = int_to_ptr.hbm [resolvable:$true] %s26_s28 }
   0x3   :  { %s4002_s29 = smov 512   ;;  %s4003_s30 = smov 32  }
   0x4   :  { %55 = dma.hbm_to_vmem [thread:$0]  %s48_s23, 8192, %s50_s25, [#allocation6], %s4002_s29, %s4002_s29, %s4003_s30  }
   0x5   :  { %s4004_s13 = smov [#allocation3]   ;;  %s4005_s15 = smov 128  }
   0x6   :  { %s28_s14 = sshll.u32 %s4004_s13, 4  ;;  %s4006_s16 = smov 8   ;;  %s29_s14 = int_to_ptr.vmem [resolvable:$true] %s28_s14 }
   0x7   :  { %34 = dma.hbm_to_vmem [thread:$0]  %s27_s28, 4096, %s29_s14, [#allocation4], %s4005_s15, %s4005_s15, %s4006_s16  }
   0x8   :  { %s60_s18 = sshll.u32 %s6858_s7, 4  ;;  %s4007_s19 = smov [#allocation7]   ;;  %s61_s18 = int_to_ptr.hbm [resolvable:$true] %s60_s18 }
   0x9   :  { %s62_s20 = sshll.u32 %s4007_s19, 4  ;;  %s63_s20 = int_to_ptr.vmem [resolvable:$true] %s62_s20 }
   0xa   :  { %68 = dma.hbm_to_vmem [thread:$0]  %s61_s18, 8192, %s63_s20, [#allocation6], %s4002_s29, %s4002_s29, %s4003_s30  }
   0xb   :  { %3997 = dma.done.wait [#allocation4], 4096  }
   0xc   :  { %3998 = vsyncadd [#allocation4], 4294963200 }
   0xd   :  { %3999 = dma.done.wait [#allocation6], 16384  }
   0xe   :  { %4000 = vsyncadd [#allocation6], 4294950912  ;;  %v118_v0 = vld [vmem:[#allocation3 + $0x78] sm:$0xff]  ;;  %v117_v1 = vld [vmem:[#allocation3 + $0x70] sm:$0xff] }
   0xf   :  { %v134_v2 = vld [vmem:[#allocation3 + $0xf8] sm:$0xff]  ;;  %139 = vmatpush.msra.mxu0 %v118_v0  ;;  %v133_v3 = vld [vmem:[#allocation3 + $0xf0] sm:$0xff]  ;;  %v116_v4 = vld [vmem:[#allocation3 + $0x68] sm:$0xff] }
  0x10   :  { %180 = vmatpush.msra.mxu1 %v134_v2  ;;  %v132_v5 = vld [vmem:[#allocation3 + $0xe8] sm:$0xff]  ;;  %v115_v6 = vld [vmem:[#allocation3 + $0x60] sm:$0xff]  ;;  %v114_v8 = vld [vmem:[#allocation3 + $0x58] sm:$0xff] }
  0x11   :  { %140 = vmatpush.msra.mxu0 %v117_v1  ;;  %v131_v7 = vld [vmem:[#allocation3 + $0xe0] sm:$0xff]  ;;  %v130_v9 = vld [vmem:[#allocation3 + $0xd8] sm:$0xff]  ;;  %v113_v10 = vld [vmem:[#allocation3 + $0x50] sm:$0xff] }
  0x12   :  { %181 = vmatpush.msra.mxu1 %v133_v3  ;;  %v129_v11 = vld [vmem:[#allocation3 + $0xd0] sm:$0xff]  ;;  %v112_v12 = vld [vmem:[#allocation3 + $0x48] sm:$0xff]  ;;  %v111_v14 = vld [vmem:[#allocation3 + $0x40] sm:$0xff] }
  0x13   :  { %141 = vmatpush.msra.mxu0 %v116_v4  ;;  %v128_v13 = vld [vmem:[#allocation3 + $0xc8] sm:$0xff]  ;;  %v127_v15 = vld [vmem:[#allocation3 + $0xc0] sm:$0xff]  ;;  %v110_v16 = vld [vmem:[#allocation3 + $0x38] sm:$0xff] }
  0x14   :  { %182 = vmatpush.msra.mxu1 %v132_v5  ;;  %v126_v17 = vld [vmem:[#allocation3 + $0xb8] sm:$0xff]  ;;  %v109_v18 = vld [vmem:[#allocation3 + $0x30] sm:$0xff]  ;;  %v108_v20 = vld [vmem:[#allocation3 + $0x28] sm:$0xff] }
  0x15   :  { %142 = vmatpush.msra.mxu0 %v115_v6  ;;  %v125_v19 = vld [vmem:[#allocation3 + $0xb0] sm:$0xff]  ;;  %v124_v21 = vld [vmem:[#allocation3 + $0xa8] sm:$0xff]  ;;  %v107_v22 = vld [vmem:[#allocation3 + $0x20] sm:$0xff] }
  0x16   :  { %183 = vmatpush.msra.mxu1 %v131_v7  ;;  %v123_v23 = vld [vmem:[#allocation3 + $0xa0] sm:$0xff]  ;;  %v106_v24 = vld [vmem:[#allocation3 + $0x18] sm:$0xff]  ;;  %v105_v26 = vld [vmem:[#allocation3 + $0x10] sm:$0xff] }
  0x17   :  { %143 = vmatpush.msra.mxu0 %v114_v8  ;;  %v122_v25 = vld [vmem:[#allocation3 + $0x98] sm:$0xff]  ;;  %v121_v27 = vld [vmem:[#allocation3 + $0x90] sm:$0xff]  ;;  %v104_v28 = vld [vmem:[#allocation3 + $0x8] sm:$0xff] }
  0x18   :  { %184 = vmatpush.msra.mxu1 %v130_v9  ;;  %v120_v29 = vld [vmem:[#allocation3 + $0x88] sm:$0xff]  ;;  %v103_v30 = vld [vmem:[#allocation3] sm:$0xff]  ;;  %v89_v34 = vld [vmem:[%s6851_s0 + $0x10] sm:$0xff] }
  0x19   :  { %144 = vmatpush.msra.mxu0 %v113_v10  ;;  %v119_v31 = vld [vmem:[#allocation3 + $0x80] sm:$0xff]  ;;  %v88_v33 = vld [vmem:[%s6851_s0 + $0x8] sm:$0xff]  ;;  %v90_v35 = vld [vmem:[%s6851_s0 + $0x18] sm:$0xff] }
  0x1a   :  { %185 = vmatpush.msra.mxu1 %v129_v11  ;;  %v87_v32 = vld [vmem:[%s6851_s0] sm:$0xff]  ;;  %v92_v37 = vld [vmem:[%s6851_s0 + $0x28] sm:$0xff]  ;;  %v93_v38 = vld [vmem:[%s6851_s0 + $0x30] sm:$0xff] }
  0x1b   :  { %145 = vmatpush.msra.mxu0 %v112_v12  ;;  %v91_v36 = vld [vmem:[%s6851_s0 + $0x20] sm:$0xff]  ;;  %v94_v39 = vld [vmem:[%s6851_s0 + $0x38] sm:$0xff]  ;;  %v96_v41 = vld [vmem:[%s6851_s0 + $0x48] sm:$0xff] }
  0x1c   :  { %186 = vmatpush.msra.mxu1 %v128_v13  ;;  %v95_v40 = vld [vmem:[%s6851_s0 + $0x40] sm:$0xff]  ;;  %v97_v42 = vld [vmem:[%s6851_s0 + $0x50] sm:$0xff]  ;;  %v98_v43 = vld [vmem:[%s6851_s0 + $0x58] sm:$0xff] }
  0x1d   :  { %146 = vmatpush.msra.mxu0 %v111_v14  ;;  %v99_v44 = vld [vmem:[%s6851_s0 + $0x60] sm:$0xff]  ;;  %v100_v45 = vld [vmem:[%s6851_s0 + $0x68] sm:$0xff]  ;;  %v101_v46 = vld [vmem:[%s6851_s0 + $0x70] sm:$0xff] }
  0x1e   :  { %187 = vmatpush.msra.mxu1 %v127_v15  ;;  %v102_v47 = vld [vmem:[%s6851_s0 + $0x78] sm:$0xff]  ;;  %v433_v48 = vld [vmem:[%s6854_s3 + $0x1e0] sm:$0xff]  ;;  %v434_v49 = vld [vmem:[%s6854_s3 + $0x1e8] sm:$0xff] }
  0x1f   :  { %147 = vmatpush.msra.mxu0 %v110_v16  ;;  %v435_v50 = vld [vmem:[%s6854_s3 + $0x1f0] sm:$0xff]  ;;  %511 = vmatpush.msra.mxu2 %v433_v48  ;;  %v436_v51 = vld [vmem:[%s6854_s3 + $0x1f8] sm:$0xff]  ;;  %v429_v52 = vld [vmem:[%s6854_s3 + $0x1c0] sm:$0xff] }
  0x20   :  { %188 = vmatpush.msra.mxu1 %v126_v17  ;;  %552 = vmatpush.msra.mxu3 %v434_v49  ;;  %v430_v53 = vld [vmem:[%s6854_s3 + $0x1c8] sm:$0xff]  ;;  %v431_v54 = vld [vmem:[%s6854_s3 + $0x1d0] sm:$0xff]  ;;  %v432_v55 = vld [vmem:[%s6854_s3 + $0x1d8] sm:$0xff] }
  0x21   :  { %148 = vmatpush.msra.mxu0 %v109_v18  ;;  %512 = vmatpush.msra.mxu2 %v429_v52  ;;  %v425_v56 = vld [vmem:[%s6854_s3 + $0x1a0] sm:$0xff]  ;;  %v426_v57 = vld [vmem:[%s6854_s3 + $0x1a8] sm:$0xff]  ;;  %v427_v58 = vld [vmem:[%s6854_s3 + $0x1b0] sm:$0xff] }
  0x22   :  { %189 = vmatpush.msra.mxu1 %v125_v19  ;;  %553 = vmatpush.msra.mxu3 %v430_v53  ;;  %v428_v59 = vld [vmem:[%s6854_s3 + $0x1b8] sm:$0xff]  ;;  %v421_v60 = vld [vmem:[%s6854_s3 + $0x180] sm:$0xff]  ;;  %v422_v61 = vld [vmem:[%s6854_s3 + $0x188] sm:$0xff] }
  0x23   :  { %149 = vmatpush.msra.mxu0 %v108_v20  ;;  %513 = vmatpush.msra.mxu2 %v425_v56  ;;  %v423_v62 = vld [vmem:[%s6854_s3 + $0x190] sm:$0xff]  ;;  %v424_v63 = vld [vmem:[%s6854_s3 + $0x198] sm:$0xff]  ;;  %v417_v0 = vld [vmem:[%s6854_s3 + $0x160] sm:$0xff] }
  0x24   :  { %190 = vmatpush.msra.mxu1 %v124_v21  ;;  %554 = vmatpush.msra.mxu3 %v426_v57  ;;  %v418_v1 = vld [vmem:[%s6854_s3 + $0x168] sm:$0xff]  ;;  %v419_v2 = vld [vmem:[%s6854_s3 + $0x170] sm:$0xff]  ;;  %v420_v3 = vld [vmem:[%s6854_s3 + $0x178] sm:$0xff] }
  0x25   :  { %150 = vmatpush.msra.mxu0 %v107_v22  ;;  %514 = vmatpush.msra.mxu2 %v421_v60  ;;  %v413_v4 = vld [vmem:[%s6854_s3 + $0x140] sm:$0xff]  ;;  %v414_v5 = vld [vmem:[%s6854_s3 + $0x148] sm:$0xff]  ;;  %v415_v6 = vld [vmem:[%s6854_s3 + $0x150] sm:$0xff] }
  0x26   :  { %191 = vmatpush.msra.mxu1 %v123_v23  ;;  %555 = vmatpush.msra.mxu3 %v422_v61  ;;  %v416_v7 = vld [vmem:[%s6854_s3 + $0x158] sm:$0xff]  ;;  %v409_v8 = vld [vmem:[%s6854_s3 + $0x120] sm:$0xff]  ;;  %v410_v9 = vld [vmem:[%s6854_s3 + $0x128] sm:$0xff] }
  0x27   :  { %151 = vmatpush.msra.mxu0 %v106_v24  ;;  %515 = vmatpush.msra.mxu2 %v417_v0  ;;  %v411_v10 = vld [vmem:[%s6854_s3 + $0x130] sm:$0xff]  ;;  %v412_v11 = vld [vmem:[%s6854_s3 + $0x138] sm:$0xff]  ;;  %v405_v12 = vld [vmem:[%s6854_s3 + $0x100] sm:$0xff] }
  0x28   :  { %192 = vmatpush.msra.mxu1 %v122_v25  ;;  %556 = vmatpush.msra.mxu3 %v418_v1  ;;  %v406_v13 = vld [vmem:[%s6854_s3 + $0x108] sm:$0xff]  ;;  %v407_v14 = vld [vmem:[%s6854_s3 + $0x110] sm:$0xff]  ;;  %v408_v15 = vld [vmem:[%s6854_s3 + $0x118] sm:$0xff] }
  0x29   :  { %152 = vmatpush.msra.mxu0 %v105_v26  ;;  %516 = vmatpush.msra.mxu2 %v413_v4  ;;  %v401_v16 = vld [vmem:[%s6854_s3 + $0xe0] sm:$0xff]  ;;  %v402_v17 = vld [vmem:[%s6854_s3 + $0xe8] sm:$0xff]  ;;  %v403_v18 = vld [vmem:[%s6854_s3 + $0xf0] sm:$0xff] }
  0x2a   :  { %193 = vmatpush.msra.mxu1 %v121_v27  ;;  %557 = vmatpush.msra.mxu3 %v414_v5  ;;  %v404_v19 = vld [vmem:[%s6854_s3 + $0xf8] sm:$0xff]  ;;  %v397_v20 = vld [vmem:[%s6854_s3 + $0xc0] sm:$0xff]  ;;  %v398_v21 = vld [vmem:[%s6854_s3 + $0xc8] sm:$0xff] }
  0x2b   :  { %153 = vmatpush.msra.mxu0 %v104_v28  ;;  %517 = vmatpush.msra.mxu2 %v409_v8  ;;  %v399_v22 = vld [vmem:[%s6854_s3 + $0xd0] sm:$0xff]  ;;  %v400_v23 = vld [vmem:[%s6854_s3 + $0xd8] sm:$0xff]  ;;  %v393_v24 = vld [vmem:[%s6854_s3 + $0xa0] sm:$0xff] }
  0x2c   :  { %194 = vmatpush.msra.mxu1 %v120_v29  ;;  %558 = vmatpush.msra.mxu3 %v410_v9  ;;  %v394_v25 = vld [vmem:[%s6854_s3 + $0xa8] sm:$0xff]  ;;  %v395_v26 = vld [vmem:[%s6854_s3 + $0xb0] sm:$0xff]  ;;  %v396_v27 = vld [vmem:[%s6854_s3 + $0xb8] sm:$0xff] }
  0x2d   :  { %154 = vmatpush.msra.mxu0 %v103_v30  ;;  %518 = vmatpush.msra.mxu2 %v405_v12  ;;  %v389_v28 = vld [vmem:[%s6854_s3 + $0x80] sm:$0xff]  ;;  %v390_v29 = vld [vmem:[%s6854_s3 + $0x88] sm:$0xff]  ;;  %v391_v30 = vld [vmem:[%s6854_s3 + $0x90] sm:$0xff] }
  0x2e   :  { %195 = vmatpush.msra.mxu1 %v119_v31  ;;  %155 = vmatmul.f32.vlgmr.msra.gmra.mxu0 %v87_v32  ;;  %v392_v31 = vld [vmem:[%s6854_s3 + $0x98] sm:$0xff]  ;;  %v385_v32 = vld [vmem:[%s6854_s3 + $0x60] sm:$0xff]  ;;  %v4337_v57 = vld [vmem:[%s6855_s4 + $0x1e8] sm:$0xff] }
  0x2f   :  { %196 = vmatmul.f32.vlgmr.msra.gmra.mxu1 %v88_v33  ;;  %593 = vmatpush.msrb.mxu0 %v435_v50  ;;  %v386_v33 = vld [vmem:[%s6854_s3 + $0x68] sm:$0xff]  ;;  %v376_v50 = vld [vmem:[%s6854_s3 + $0x18] sm:$0xff]  ;;  %v4332_v56 = vld [vmem:[%s6855_s4 + $0x1e0] sm:$0xff] }
  0x30   :  { %634 = vmatpush.msrb.mxu1 %v436_v51  ;;  %559 = vmatpush.msra.mxu3 %v406_v13  ;;  %v4361_v1 = vld [vmem:[%s6855_s4 + $0x1a0] sm:$0xff] }
  0x31   :  { %594 = vmatpush.msrb.mxu0 %v431_v54  ;;  %519 = vmatpush.msra.mxu2 %v401_v16  ;;  %v4391_v9 = vld [vmem:[%s6855_s4 + $0x160] sm:$0xff] }
  0x32   :  { %635 = vmatpush.msrb.mxu1 %v432_v55  ;;  %560 = vmatpush.msra.mxu3 %v402_v17  ;;  %v4405_v13 = vld [vmem:[%s6855_s4 + $0x140] sm:$0xff] }
  0x33   :  { %595 = vmatpush.msrb.mxu0 %v427_v58  ;;  %520 = vmatpush.msra.mxu2 %v397_v20 }
  0x34   :  { %636 = vmatpush.msrb.mxu1 %v428_v59  ;;  %561 = vmatpush.msra.mxu3 %v398_v21 }
  0x35   :  { %596 = vmatpush.msrb.mxu0 %v423_v62  ;;  %521 = vmatpush.msra.mxu2 %v393_v24  ;;  %v4347_v62 = vld [vmem:[%s6855_s4 + $0x1c0] sm:$0xff] }
  0x36   :  { %158 = vmatmul.f32.gmra.mxu0 %v89_v34  ;;  %637 = vmatpush.msrb.mxu1 %v424_v63  ;;  %v387_v34 = vld [vmem:[%s6854_s3 + $0x70] sm:$0xff]  ;;  %v4352_v63 = vld [vmem:[%s6855_s4 + $0x1c8] sm:$0xff]  ;;  %v4438_v24 = vld [vmem:[%s6855_s4 + $0x100] sm:$0xff] }
  0x37   :  { %199 = vmatmul.f32.gmra.mxu1 %v90_v35  ;;  %597 = vmatpush.msrb.mxu0 %v419_v2  ;;  %v388_v35 = vld [vmem:[%s6854_s3 + $0x78] sm:$0xff]  ;;  %v4366_v2 = vld [vmem:[%s6855_s4 + $0x1a8] sm:$0xff] }
  0x38   :  { %638 = vmatpush.msrb.mxu1 %v420_v3  ;;  %562 = vmatpush.msra.mxu3 %v394_v25  ;;  %v4443_v25 = vld [vmem:[%s6855_s4 + $0x108] sm:$0xff] }
  0x39   :  { %598 = vmatpush.msrb.mxu0 %v415_v6  ;;  %522 = vmatpush.msra.mxu2 %v389_v28  ;;  %v4377_v6 = vld [vmem:[%s6855_s4 + $0x180] sm:$0xff] }
  0x3a   :  { %639 = vmatpush.msrb.mxu1 %v416_v7  ;;  %563 = vmatpush.msra.mxu3 %v390_v29  ;;  %v4382_v7 = vld [vmem:[%s6855_s4 + $0x188] sm:$0xff] }
  0x3b   :  { %599 = vmatpush.msrb.mxu0 %v411_v10  ;;  %523 = vmatpush.msra.mxu2 %v385_v32  ;;  %v4396_v10 = vld [vmem:[%s6855_s4 + $0x168] sm:$0xff] }
  0x3c   :  { %640 = vmatpush.msrb.mxu1 %v412_v11  ;;  %564 = vmatpush.msra.mxu3 %v386_v33 }
  0x3d   :  { %600 = vmatpush.msrb.mxu0 %v407_v14  ;;  %v4410_v14 = vld [vmem:[%s6855_s4 + $0x148] sm:$0xff] }
  0x3e   :  { %161 = vmatmul.f32.gmra.mxu0 %v91_v36  ;;  %641 = vmatpush.msrb.mxu1 %v408_v15  ;;  %v381_v36 = vld [vmem:[%s6854_s3 + $0x40] sm:$0xff] }
  0x3f   :  { %202 = vmatmul.f32.gmra.mxu1 %v92_v37  ;;  %601 = vmatpush.msrb.mxu0 %v403_v18  ;;  %v382_v37 = vld [vmem:[%s6854_s3 + $0x48] sm:$0xff]  ;;  %v4422_v18 = vld [vmem:[%s6855_s4 + $0x120] sm:$0xff] }
  0x40   :  { %642 = vmatpush.msrb.mxu1 %v404_v19  ;;  %524 = vmatpush.msra.mxu2 %v381_v36  ;;  %v4427_v19 = vld [vmem:[%s6855_s4 + $0x128] sm:$0xff] }
  0x41   :  { %602 = vmatpush.msrb.mxu0 %v399_v22  ;;  %565 = vmatpush.msra.mxu3 %v382_v37  ;;  %v4474_v36 = vld [vmem:[%s6855_s4 + $0xc8] sm:$0xff] }
  0x42   :  { %643 = vmatpush.msrb.mxu1 %v400_v23 }
  0x43   :  { %603 = vmatpush.msrb.mxu0 %v395_v26 }
  0x44   :  { %644 = vmatpush.msrb.mxu1 %v396_v27 }
  0x45   :  { %604 = vmatpush.msrb.mxu0 %v391_v30  ;;  %v4454_v30 = vld [vmem:[%s6855_s4 + $0xe0] sm:$0xff] }
  0x46   :  { %164 = vmatmul.f32.gmra.mxu0 %v93_v38  ;;  %645 = vmatpush.msrb.mxu1 %v392_v31  ;;  %v383_v38 = vld [vmem:[%s6854_s3 + $0x50] sm:$0xff]  ;;  %v4459_v31 = vld [vmem:[%s6855_s4 + $0xe8] sm:$0xff] }
  0x47   :  { %205 = vmatmul.f32.gmra.mxu1 %v94_v39  ;;  %605 = vmatpush.msrb.mxu0 %v387_v34  ;;  %v4299_v39 = vld [vmem:[%s6853_s2] ss:$0 sm:$0xff] }
  0x48   :  { %646 = vmatpush.msrb.mxu1 %v388_v35  ;;  %v4469_v35 = vld [vmem:[%s6855_s4 + $0xc0] sm:$0xff] }
  0x49   :  { %606 = vmatpush.msrb.mxu0 %v383_v38 }
  0x4e   :  { %167 = vmatmul.f32.gmra.mxu0 %v95_v40  ;;  %v384_v40 = vld [vmem:[%s6854_s3 + $0x58] sm:$0xff] }
  0x4f   :  { %208 = vmatmul.f32.gmra.mxu1 %v96_v41  ;;  %v377_v41 = vld [vmem:[%s6854_s3 + $0x20] sm:$0xff] }
  0x50   :  { %647 = vmatpush.msrb.mxu1 %v384_v40  ;;  %525 = vmatpush.msra.mxu2 %v377_v41 }
  0x56   :  { %170 = vmatmul.f32.gmra.mxu0 %v97_v42  ;;  %v378_v42 = vld [vmem:[%s6854_s3 + $0x28] sm:$0xff] }
  0x57   :  { %211 = vmatmul.f32.gmra.mxu1 %v98_v43  ;;  %v379_v43 = vld [vmem:[%s6854_s3 + $0x30] sm:$0xff]  ;;  %566 = vmatpush.msra.mxu3 %v378_v42 }
  0x58   :  { %607 = vmatpush.msrb.mxu0 %v379_v43  ;;  %v4490_v43 = vld [vmem:[%s6855_s4 + $0xa0] sm:$0xff] }
  0x5e   :  { %173 = vmatmul.f32.gmra.mxu0 %v99_v44  ;;  %v380_v44 = vld [vmem:[%s6854_s3 + $0x38] sm:$0xff] }
  0x5f   :  { %214 = vmatmul.f32.gmra.mxu1 %v100_v45  ;;  %v373_v45 = vld [vmem:[%s6854_s3] sm:$0xff] }
  0x60   :  { %648 = vmatpush.msrb.mxu1 %v380_v44  ;;  %526 = vmatpush.msra.mxu2 %v373_v45  ;;  %v4495_v44 = vld [vmem:[%s6855_s4 + $0xa8] sm:$0xff] }
  0x62   :  { %649 = vmatpush.msrb.mxu1 %v376_v50  ;;  %675 = vmatpush.msrb.mxu2 %v4332_v56  ;;  %v4506_v50 = vld [vmem:[%s6855_s4 + $0x80] sm:$0xff] }
  0x64   :  { %843 = vmatpush.msra.mxu1 %v4337_v57  ;;  %676 = vmatpush.msrb.mxu2 %v4347_v62 }
  0x66   :  { %176 = vmatmul.f32.gmra.mxu0 %v101_v46  ;;  %v374_v46 = vld [vmem:[%s6854_s3 + $0x8] sm:$0xff]  ;;  %844 = vmatpush.msra.mxu1 %v4352_v63 }
  0x67   :  { %217 = vmatmul.f32.gmra.mxu1 %v102_v47  ;;  %v375_v47 = vld [vmem:[%s6854_s3 + $0x10] sm:$0xff]  ;;  %567 = vmatpush.msra.mxu3 %v374_v46 }
  0x68   :  { %608 = vmatpush.msrb.mxu0 %v375_v47  ;;  %677 = vmatpush.msrb.mxu2 %v4361_v1 }
  0x69   :  { %695 = vmatpush.msrb.mxu3 %v4337_v57  ;;  %845 = vmatpush.msra.mxu1 %v4366_v2 }
  0x6a   :  { %823 = vmatpush.msra.mxu0 %v4332_v56  ;;  %678 = vmatpush.msrb.mxu2 %v4377_v6 }
  0x6b   :  { %696 = vmatpush.msrb.mxu3 %v4352_v63  ;;  %846 = vmatpush.msra.mxu1 %v4382_v7 }
  0x6c   :  { %824 = vmatpush.msra.mxu0 %v4347_v62  ;;  %679 = vmatpush.msrb.mxu2 %v4391_v9 }
  0x6d   :  { %697 = vmatpush.msrb.mxu3 %v4366_v2  ;;  %847 = vmatpush.msra.mxu1 %v4396_v10 }
  0x6e   :  { %825 = vmatpush.msra.mxu0 %v4361_v1  ;;  %680 = vmatpush.msrb.mxu2 %v4405_v13 }
  0x6f   :  { %698 = vmatpush.msrb.mxu3 %v4382_v7  ;;  %848 = vmatpush.msra.mxu1 %v4410_v14 }
  0x70   :  { %826 = vmatpush.msra.mxu0 %v4377_v6  ;;  %681 = vmatpush.msrb.mxu2 %v4422_v18 }
  0x71   :  { %699 = vmatpush.msrb.mxu3 %v4396_v10  ;;  %849 = vmatpush.msra.mxu1 %v4427_v19 }
  0x72   :  { %827 = vmatpush.msra.mxu0 %v4391_v9  ;;  %682 = vmatpush.msrb.mxu2 %v4438_v24 }
  0x73   :  { %700 = vmatpush.msrb.mxu3 %v4410_v14  ;;  %850 = vmatpush.msra.mxu1 %v4443_v25 }
  0x74   :  { %828 = vmatpush.msra.mxu0 %v4405_v13  ;;  %683 = vmatpush.msrb.mxu2 %v4454_v30 }
  0x75   :  { %701 = vmatpush.msrb.mxu3 %v4427_v19  ;;  %851 = vmatpush.msra.mxu1 %v4459_v31 }
  0x76   :  { %829 = vmatpush.msra.mxu0 %v4422_v18  ;;  %684 = vmatpush.msrb.mxu2 %v4469_v35 }
  0x77   :  { %702 = vmatpush.msrb.mxu3 %v4443_v25  ;;  %852 = vmatpush.msra.mxu1 %v4474_v36 }
  0x78   :  { %830 = vmatpush.msra.mxu0 %v4438_v24  ;;  %685 = vmatpush.msrb.mxu2 %v4490_v43 }
  0x79   :  { %703 = vmatpush.msrb.mxu3 %v4459_v31  ;;  %853 = vmatpush.msra.mxu1 %v4495_v44 }
  0x7a   :  { %831 = vmatpush.msra.mxu0 %v4454_v30  ;;  %686 = vmatpush.msrb.mxu2 %v4506_v50 }
  0x7b   :  { %704 = vmatpush.msrb.mxu3 %v4474_v36 }
  0x7c   :  { %832 = vmatpush.msra.mxu0 %v4469_v35 }
  0x7d   :  { %705 = vmatpush.msrb.mxu3 %v4495_v44 }
  0x7e   :  { %833 = vmatpush.msra.mxu0 %v4490_v43 }
  0x80   :  { %834 = vmatpush.msra.mxu0 %v4506_v50 }
  0xab   :  { %v156_v48 = vpop.f32.mrf.mxu0 }
  0xac   :  { %v197_v49 = vpop.f32.mrf.mxu1  ;;  %v157_v51 = vadd.f32 %v4299_v39, %v156_v48 }
  0xae   :  { %v198_v52 = vadd.f32 %v197_v49, %v157_v51  ;;  %v4511_v51 = vld [vmem:[%s6855_s4 + $0x88] sm:$0xff] }
  0xaf   :  { %706 = vmatpush.msrb.mxu3 %v4511_v51  ;;  %854 = vmatpush.msra.mxu1 %v4511_v51 }
  0xb0   :  { %v3416_v53 = vmul.f32 -1.442695, %v198_v52 }
  0xb2   :  { %3483 = vpow2.f32 %v3416_v53 }
  0xb3   :  { %v159_v54 = vpop.f32.mrf.mxu0 }
  0xb4   :  { %v200_v55 = vpop.f32.mrf.mxu1  ;;  %v160_v58 = vadd.f32 %v4299_v39, %v159_v54 }
  0xb6   :  { %v201_v59 = vadd.f32 %v200_v55, %v160_v58  ;;  %v4522_v58 = vld [vmem:[%s6855_s4 + $0x60] sm:$0xff] }
  0xb7   :  { %687 = vmatpush.msrb.mxu2 %v4522_v58  ;;  %835 = vmatpush.msra.mxu0 %v4522_v58 }
  0xb8   :  { %v3484_v60 = vpop.eup %3483  ;;  %v3417_v61 = vmul.f32 -1.442695, %v201_v59  ;;  %v4527_v59 = vld [vmem:[%s6855_s4 + $0x68] sm:$0xff] }
  0xb9   :  { %v4354_v0 = vadd.f32 1.0, %v3484_v60  ;;  %707 = vmatpush.msrb.mxu3 %v4527_v59  ;;  %855 = vmatpush.msra.mxu1 %v4527_v59 }
  0xba   :  { %3485 = vpow2.f32 %v3417_v61 }
  0xbb   :  { %3487 = vrcp.f32 %v4354_v0  ;;  %v162_v3 = vpop.f32.mrf.mxu0  ;;  %v264_v26 = vand.u32 2147483648, %v4354_v0  ;;  %v262_v29 = vand.u32 2147483647, %v4354_v0  ;;  %vm258_vm1 = vweird.f32 %v4354_v0 }
  0xbc   :  { %v203_v4 = vpop.f32.mrf.mxu1  ;;  %v163_v5 = vadd.f32 %v4299_v39, %v162_v3  ;;  %v4538_v3 = vld [vmem:[%s6855_s4 + $0x40] sm:$0xff] }
  0xbd   :  { %v265_v40 = vor.u32 1.1754944e-38, %v264_v26  ;;  %vm263_vm3 = vcmp.eq.f32.partialorder %v262_v29, 8.507059e+37  ;;  %688 = vmatpush.msrb.mxu2 %v4538_v3  ;;  %v4581_v29 = vld [vmem:[%s6855_s4 + $0x8] sm:$0xff]  ;;  %836 = vmatpush.msra.mxu0 %v4538_v3 }
  0xbe   :  { %v204_v8 = vadd.f32 %v203_v4, %v163_v5  ;;  %v4543_v4 = vld [vmem:[%s6855_s4 + $0x48] sm:$0xff]  ;;  %7070 = vst [vmem:[#allocation10_spill] sm:$0xff] %v4581_v29 }
  0xbf   :  { %708 = vmatpush.msrb.mxu3 %v4543_v4  ;;  %856 = vmatpush.msra.mxu1 %v4543_v4 }
  0xc0   :  { %v3486_v11 = vpop.eup %3485  ;;  %v3418_v12 = vmul.f32 -1.442695, %v204_v8 }
  0xc1   :  { %v3488_v15 = vpop.eup %3487  ;;  %v4414_v16 = vadd.f32 1.0, %v3486_v11 }
  0xc2   :  { %3489 = vpow2.f32 %v3418_v12  ;;  %v254_v17 = vmul.f32 %v3488_v15, %v4354_v0  ;;  %vm259_vm0 = vweird.f32 %v3488_v15 }
  0xc3   :  { %3491 = vrcp.f32 %v4414_v16  ;;  %v165_v20 = vpop.f32.mrf.mxu0  ;;  %vm260_vm2 = vmor %vm258_vm1, %vm259_vm0  ;;  %v279_v52 = vand.u32 2147483648, %v4414_v16  ;;  %v277_v55 = vand.u32 2147483647, %v4414_v16  ;;  %vm273_vm5 = vweird.f32 %v4414_v16 }
  0xc4   :  { %v206_v21 = vpop.f32.mrf.mxu1  ;;  %v166_v22 = vadd.f32 %v4299_v39, %v165_v20  ;;  %v255_v23 = vsub.f32 1.0, %v254_v17 }
  0xc5   :  { %v280_v11 = vor.u32 1.1754944e-38, %v279_v52  ;;  %vm278_vm7 = vcmp.eq.f32.partialorder %v277_v55, 8.507059e+37 }
  0xc6   :  { %v207_v27 = vadd.f32 %v206_v21, %v166_v22  ;;  %v256_v28 = vmul.f32 %v3488_v15, %v255_v23  ;;  %v4562_v21 = vld [vmem:[%s6855_s4 + $0x20] sm:$0xff]  ;;  %v4567_v22 = vld [vmem:[%s6855_s4 + $0x28] sm:$0xff] }
  0xc7   :  { %689 = vmatpush.msrb.mxu2 %v4562_v21  ;;  %709 = vmatpush.msrb.mxu3 %v4567_v22 }
  0xc8   :  { %v3490_v32 = vpop.eup %3489  ;;  %v3419_v33 = vmul.f32 -1.442695, %v207_v27  ;;  %v257_v34 = vadd.f32 %v3488_v15, %v256_v28  ;;  %v4576_v28 = vld [vmem:[%s6855_s4] sm:$0xff]  ;;  %837 = vmatpush.msra.mxu0 %v4562_v21  ;;  %857 = vmatpush.msra.mxu1 %v4567_v22 }
  0xc9   :  { %v4478_v37 = vpop.eup %3491  ;;  %v4480_v38 = vadd.f32 1.0, %v3490_v32  ;;  %690 = vmatpush.msrb.mxu2 %v4576_v28  ;;  %710 = vmatpush.msrb.mxu3 %v4581_v29 }
  0xca   :  { %3493 = vpow2.f32 %v3419_v33  ;;  %v261_v41 = vsel %vm260_vm2, %v3488_v15, %v257_v34  ;;  %v269_v42 = vmul.f32 %v4478_v37, %v4414_v16  ;;  %vm274_vm4 = vweird.f32 %v4478_v37  ;;  %838 = vmatpush.msra.mxu0 %v4576_v28  ;;  %858 = vmatpush.msra.mxu1 %v4581_v29 }
  0xcb   :  { %3495 = vrcp.f32 %v4480_v38  ;;  %v168_v45 = vpop.f32.mrf.mxu0  ;;  %v266_v46 = vsel %vm263_vm3, %v265_v40, %v261_v41  ;;  %vm275_vm6 = vmor %vm273_vm5, %vm274_vm4  ;;  %v294_v27 = vand.u32 2147483648, %v4480_v38  ;;  %v292_v34 = vand.u32 2147483647, %v4480_v38  ;;  %v4596_v40 = vld [vmem:[%s6855_s4 + $0x1f8] sm:$0xff] }
  0xcc   :  { %v209_v47 = vpop.f32.mrf.mxu1  ;;  %v169_v48 = vadd.f32 %v4299_v39, %v168_v45  ;;  %527 = vmatmul.f32.vlgmr.msra.gmra.mxu2 %v266_v46  ;;  %568 = vmatmul.f32.vlgmr.msra.gmra.mxu3 %v266_v46  ;;  %v270_v49 = vsub.f32 1.0, %v269_v42  ;;  %vm288_vm9 = vweird.f32 %v4480_v38 }
  0xcd   :  { %609 = vmatmul.f32.vlgmr.msrb.gmra.mxu0 %v266_v46  ;;  %650 = vmatmul.f32.vlgmr.msrb.gmra.mxu1 %v266_v46  ;;  %v4607_v46 = vld [vmem:[%s6855_s4 + $0x1d0] sm:$0xff]  ;;  %vm293_vm11 = vcmp.eq.f32.partialorder %v292_v34, 8.507059e+37 }
  0xce   :  { %v210_v53 = vadd.f32 %v209_v47, %v169_v48  ;;  %v271_v54 = vmul.f32 %v4478_v37, %v270_v49  ;;  %v4612_v47 = vld [vmem:[%s6855_s4 + $0x1d8] sm:$0xff]  ;;  %735 = vmatpush.msra.mxu3 %v4596_v40  ;;  %971 = vmatpush.msrb.mxu0 %v4332_v56  ;;  %v4679_v56 = vld [vmem:[%s6855_s4 + $0x150] sm:$0xff] }
  0xcf   :  { %991 = vmatpush.msrb.mxu1 %v4337_v57  ;;  %v4684_v57 = vld [vmem:[%s6855_s4 + $0x158] sm:$0xff] }
  0xd0   :  { %v3494_v60 = vpop.eup %3493  ;;  %v3420_v61 = vmul.f32 -1.442695, %v210_v53  ;;  %v272_v0 = vadd.f32 %v4478_v37, %v271_v54  ;;  %736 = vmatpush.msra.mxu3 %v4612_v47  ;;  %972 = vmatpush.msrb.mxu0 %v4347_v62  ;;  %v4698_v62 = vld [vmem:[%s6855_s4 + $0x138] sm:$0xff] }
  0xd1   :  { %v4545_v5 = vpop.eup %3495  ;;  %v4547_v8 = vadd.f32 1.0, %v3494_v60  ;;  %992 = vmatpush.msrb.mxu1 %v4352_v63 }
  0xd2   :  { %3497 = vpow2.f32 %v3420_v61  ;;  %v276_v12 = vsel %vm275_vm6, %v4478_v37, %v272_v0  ;;  %v284_v15 = vmul.f32 %v4545_v5, %v4480_v38  ;;  %vm289_vm8 = vweird.f32 %v4545_v5  ;;  %v4591_v37 = vld [vmem:[%s6855_s4 + $0x1f0] sm:$0xff]  ;;  %v4635_v0 = vld [vmem:[%s6855_s4 + $0x1b8] sm:$0xff]  ;;  %973 = vmatpush.msrb.mxu0 %v4361_v1 }
  0xd3   :  { %3499 = vrcp.f32 %v4547_v8  ;;  %v171_v16 = vpop.f32.mrf.mxu0  ;;  %v281_v17 = vsel %vm278_vm7, %v280_v11, %v276_v12  ;;  %vm290_vm10 = vmor %vm288_vm9, %vm289_vm8  ;;  %v295_v38 = vor.u32 1.1754944e-38, %v294_v27  ;;  %715 = vmatpush.msra.mxu2 %v4591_v37  ;;  %v4630_v61 = vld [vmem:[%s6855_s4 + $0x1b0] sm:$0xff]  ;;  %v309_v12 = vand.u32 2147483648, %v4547_v8  ;;  %737 = vmatpush.msra.mxu3 %v4635_v0  ;;  %v4660_v27 = vld [vmem:[%s6855_s4 + $0x178] sm:$0xff] }
  0xd4   :  { %v212_v20 = vpop.f32.mrf.mxu1  ;;  %v172_v23 = vadd.f32 %v4299_v39, %v171_v16  ;;  %530 = vmatmul.f32.gmra.mxu2 %v281_v17  ;;  %571 = vmatmul.f32.gmra.mxu3 %v281_v17  ;;  %v285_v26 = vsub.f32 1.0, %v284_v15  ;;  %v4642_v15 = vld [vmem:[%s6855_s4 + $0x190] sm:$0xff]  ;;  %v4647_v16 = vld [vmem:[%s6855_s4 + $0x198] sm:$0xff]  ;;  %vm303_vm13 = vweird.f32 %v4547_v8 }
  0xd5   :  { %612 = vmatmul.f32.gmra.mxu0 %v281_v17  ;;  %653 = vmatmul.f32.gmra.mxu1 %v281_v17 }
  0xd6   :  { %v213_v32 = vadd.f32 %v212_v20, %v172_v23  ;;  %v286_v33 = vmul.f32 %v4545_v5, %v285_v26  ;;  %716 = vmatpush.msra.mxu2 %v4607_v46  ;;  %v307_v23 = vand.u32 2147483647, %v4547_v8  ;;  %v4655_v26 = vld [vmem:[%s6855_s4 + $0x170] sm:$0xff]  ;;  %738 = vmatpush.msra.mxu3 %v4647_v16 }
  0xd7   :  { %993 = vmatpush.msrb.mxu1 %v4366_v2  ;;  %974 = vmatpush.msrb.mxu0 %v4377_v6  ;;  %v4735_v6 = vld [vmem:[%s6855_s4 + $0xf8] sm:$0xff] }
  0xd8   :  { %v3498_v41 = vpop.eup %3497  ;;  %v3421_v42 = vmul.f32 -1.442695, %v213_v32  ;;  %v287_v45 = vadd.f32 %v4545_v5, %v286_v33  ;;  %717 = vmatpush.msra.mxu2 %v4630_v61  ;;  %vm308_vm15 = vcmp.eq.f32.partialorder %v307_v23, 8.507059e+37  ;;  %739 = vmatpush.msra.mxu3 %v4660_v27 }
  0xd9   :  { %v3500_v48 = vpop.eup %3499  ;;  %v4614_v49 = vadd.f32 1.0, %v3498_v41  ;;  %994 = vmatpush.msrb.mxu1 %v4382_v7  ;;  %975 = vmatpush.msrb.mxu0 %v4391_v9 }
  0xda   :  { %3501 = vpow2.f32 %v3421_v42  ;;  %v291_v52 = vsel %vm290_vm10, %v4545_v5, %v287_v45  ;;  %v299_v53 = vmul.f32 %v3500_v48, %v4547_v8  ;;  %vm304_vm12 = vweird.f32 %v3500_v48  ;;  %718 = vmatpush.msra.mxu2 %v4642_v15  ;;  %740 = vmatpush.msra.mxu3 %v4684_v57 }
  0xdb   :  { %3503 = vrcp.f32 %v4614_v49  ;;  %v174_v54 = vpop.f32.mrf.mxu0  ;;  %v296_v55 = vsel %vm293_vm11, %v295_v38, %v291_v52  ;;  %vm305_vm14 = vmor %vm303_vm13, %vm304_vm12  ;;  %v310_v45 = vor.u32 1.1754944e-38, %v309_v12  ;;  %v4706_v12 = vld [vmem:[%s6855_s4 + $0x110] sm:$0xff]  ;;  %vm318_vm1 = vweird.f32 %v4614_v49  ;;  %995 = vmatpush.msrb.mxu1 %v4396_v10  ;;  %976 = vmatpush.msrb.mxu0 %v4405_v13 }
  0xdc   :  { %v215_v60 = vpop.f32.mrf.mxu1  ;;  %v175_v5 = vadd.f32 %v4299_v39, %v174_v54  ;;  %533 = vmatmul.f32.gmra.mxu2 %v296_v55  ;;  %574 = vmatmul.f32.gmra.mxu3 %v296_v55  ;;  %v300_v11 = vsub.f32 1.0, %v299_v53 }
  0xdd   :  { %615 = vmatmul.f32.gmra.mxu0 %v296_v55  ;;  %656 = vmatmul.f32.gmra.mxu1 %v296_v55 }
  0xde   :  { %v216_v17 = vadd.f32 %v215_v60, %v175_v5  ;;  %v301_v20 = vmul.f32 %v3500_v48, %v300_v11  ;;  %719 = vmatpush.msra.mxu2 %v4655_v26  ;;  %v324_v60 = vand.u32 2147483648, %v4614_v49  ;;  %v4693_v5 = vld [vmem:[%s6855_s4 + $0x130] sm:$0xff]  ;;  %741 = vmatpush.msra.mxu3 %v4698_v62 }
  0xdf   :  { %996 = vmatpush.msrb.mxu1 %v4410_v14  ;;  %977 = vmatpush.msrb.mxu0 %v4422_v18  ;;  %v4785_v18 = vld [vmem:[%s6855_s4 + $0x98] sm:$0xff] }
  0xe0   :  { %v3502_v32 = vpop.eup %3501  ;;  %v3422_v33 = vmul.f32 -1.442695, %v216_v17  ;;  %v302_v34 = vadd.f32 %v3500_v48, %v301_v20  ;;  %720 = vmatpush.msra.mxu2 %v4679_v56  ;;  %v4711_v17 = vld [vmem:[%s6855_s4 + $0x118] sm:$0xff] }
  0xe1   :  { %v3504_v41 = vpop.eup %3503  ;;  %v4667_v42 = vadd.f32 1.0, %v3502_v32  ;;  %742 = vmatpush.msra.mxu3 %v4711_v17  ;;  %997 = vmatpush.msrb.mxu1 %v4427_v19 }
  0xe2   :  { %3505 = vpow2.f32 %v3422_v33  ;;  %v306_v38 = vsel %vm305_vm14, %v3500_v48, %v302_v34  ;;  %v314_v52 = vmul.f32 %v3504_v41, %v4614_v49  ;;  %vm319_vm0 = vweird.f32 %v3504_v41  ;;  %721 = vmatpush.msra.mxu2 %v4693_v5  ;;  %978 = vmatpush.msrb.mxu0 %v4438_v24 }
  0xe3   :  { %3507 = vrcp.f32 %v4667_v42  ;;  %v177_v8 = vpop.f32.mrf.mxu0  ;;  %v311_v53 = vsel %vm308_vm15, %v310_v45, %v306_v38  ;;  %vm320_vm2 = vmor %vm318_vm1, %vm319_vm0  ;;  %v325_v45 = vor.u32 1.1754944e-38, %v324_v60  ;;  %v4730_v38 = vld [vmem:[%s6855_s4 + $0xf0] sm:$0xff]  ;;  %v337_v10 = vand.u32 2147483647, %v4667_v42  ;;  %743 = vmatpush.msra.mxu3 %v4735_v6  ;;  %998 = vmatpush.msrb.mxu1 %v4443_v25 }
  0xe4   :  { %v218_v54 = vpop.f32.mrf.mxu1  ;;  %v178_v48 = vadd.f32 %v4299_v39, %v177_v8  ;;  %536 = vmatmul.f32.gmra.mxu2 %v311_v53  ;;  %577 = vmatmul.f32.gmra.mxu3 %v311_v53  ;;  %v315_v55 = vsub.f32 1.0, %v314_v52  ;;  %v322_v39 = vand.u32 2147483647, %v4614_v49  ;;  %v4743_v52 = vld [vmem:[%s6855_s4 + $0xd0] sm:$0xff]  ;;  %v4748_v8 = vld [vmem:[%s6855_s4 + $0xd8] sm:$0xff]  ;;  %vm333_vm5 = vweird.f32 %v4667_v42 }
  0xe5   :  { %618 = vmatmul.f32.gmra.mxu0 %v311_v53  ;;  %659 = vmatmul.f32.gmra.mxu1 %v311_v53  ;;  %v4756_v53 = vld [vmem:[%s6855_s4 + $0xb0] sm:$0xff]  ;;  %vm338_vm7 = vcmp.eq.f32.partialorder %v337_v10, 8.507059e+37  ;;  %v4844_v10 = vld [vmem:[%s6855_s4 + $0x18] sm:$0xff] }
  0xe6   :  { %v219_v63 = vadd.f32 %v218_v54, %v178_v48  ;;  %v316_v11 = vmul.f32 %v3504_v41, %v315_v55  ;;  %vm323_vm3 = vcmp.eq.f32.partialorder %v322_v39, 8.507059e+37  ;;  %722 = vmatpush.msra.mxu2 %v4706_v12  ;;  %v4761_v54 = vld [vmem:[%s6855_s4 + $0xb8] sm:$0xff]  ;;  %744 = vmatpush.msra.mxu3 %v4748_v8  ;;  %v4780_v39 = vld [vmem:[%s6855_s4 + $0x90] sm:$0xff]  ;;  %7074 = vst [vmem:[#allocation14_spill] sm:$0xff] %v4844_v10 }
  0xe7   :  { %979 = vmatpush.msrb.mxu0 %v4454_v30  ;;  %999 = vmatpush.msrb.mxu1 %v4459_v31 }
  0xe8   :  { %v3506_v20 = vpop.eup %3505  ;;  %v3423_v23 = vmul.f32 -1.442695, %v219_v63  ;;  %v317_v32 = vadd.f32 %v3504_v41, %v316_v11  ;;  %723 = vmatpush.msra.mxu2 %v4730_v38  ;;  %745 = vmatpush.msra.mxu3 %v4761_v54 }
  0xe9   :  { %v3508_v33 = vpop.eup %3507  ;;  %v4718_v34 = vadd.f32 1.0, %v3506_v20  ;;  %980 = vmatpush.msrb.mxu0 %v4469_v35  ;;  %1000 = vmatpush.msrb.mxu1 %v4474_v36  ;;  %v4831_v35 = vld [vmem:[%s6855_s4 + $0x38] sm:$0xff] }
  0xea   :  { %3509 = vpow2.f32 %v3423_v23  ;;  %v321_v1 = vsel %vm320_vm2, %v3504_v41, %v317_v32  ;;  %v329_v2 = vmul.f32 %v3508_v33, %v4667_v42  ;;  %v339_v41 = vand.u32 2147483648, %v4667_v42  ;;  %724 = vmatpush.msra.mxu2 %v4743_v52  ;;  %v4793_v23 = vld [vmem:[%s6855_s4 + $0x70] sm:$0xff]  ;;  %v4798_v32 = vld [vmem:[%s6855_s4 + $0x78] sm:$0xff]  ;;  %746 = vmatpush.msra.mxu3 %v4785_v18  ;;  %7072 = vst [vmem:[#allocation12_spill] sm:$0xff] %v4831_v35 }
  0xeb   :  { %3511 = vrcp.f32 %v4718_v34  ;;  %v326_v49 = vsel %vm323_vm3, %v325_v45, %v321_v1  ;;  %vm334_vm4 = vweird.f32 %v3508_v33  ;;  %v354_v20 = vand.u32 2147483648, %v4718_v34  ;;  %v4811_v45 = vld [vmem:[%s6855_s4 + $0x58] sm:$0xff]  ;;  %981 = vmatpush.msrb.mxu0 %v4490_v43  ;;  %1001 = vmatpush.msrb.mxu1 %v4495_v44 }
  0xec   :  { %539 = vmatmul.f32.gmra.mxu2 %v326_v49  ;;  %580 = vmatmul.f32.gmra.mxu3 %v326_v49  ;;  %v330_v7 = vsub.f32 1.0, %v329_v2  ;;  %vm335_vm6 = vmor %vm333_vm5, %vm334_vm4  ;;  %v340_v11 = vor.u32 1.1754944e-38, %v339_v41  ;;  %v352_v25 = vand.u32 2147483647, %v4718_v34  ;;  %vm348_vm9 = vweird.f32 %v4718_v34 }
  0xed   :  { %621 = vmatmul.f32.gmra.mxu0 %v326_v49  ;;  %662 = vmatmul.f32.gmra.mxu1 %v326_v49  ;;  %v355_v49 = vor.u32 1.1754944e-38, %v354_v20 }
  0xee   :  { %v331_v9 = vmul.f32 %v3508_v33, %v330_v7  ;;  %725 = vmatpush.msra.mxu2 %v4756_v53  ;;  %747 = vmatpush.msra.mxu3 %v4798_v32  ;;  %vm353_vm11 = vcmp.eq.f32.partialorder %v352_v25, 8.507059e+37 }
  0xef   :  { %982 = vmatpush.msrb.mxu0 %v4506_v50  ;;  %1002 = vmatpush.msrb.mxu1 %v4511_v51 }
  0xf0   :  { %v3510_v48 = vpop.eup %3509  ;;  %v332_v55 = vadd.f32 %v3508_v33, %v331_v9  ;;  %726 = vmatpush.msra.mxu2 %v4780_v39  ;;  %748 = vmatpush.msra.mxu3 %v4811_v45  ;;  %v4839_v9 = vld [vmem:[%s6855_s4 + $0x10] sm:$0xff] }
  0xf1   :  { %v3512_v60 = vpop.eup %3511  ;;  %v4768_v63 = vadd.f32 1.0, %v3510_v48  ;;  %7073 = vst [vmem:[#allocation13_spill] sm:$0xff] %v4839_v9  ;;  %983 = vmatpush.msrb.mxu0 %v4522_v58  ;;  %1003 = vmatpush.msrb.mxu1 %v4527_v59 }
  0xf2   :  { %v336_v13 = vsel %vm335_vm6, %v3508_v33, %v332_v55  ;;  %v344_v14 = vmul.f32 %v3512_v60, %v4718_v34  ;;  %vm349_vm8 = vweird.f32 %v3512_v60  ;;  %v4806_v33 = vld [vmem:[%s6855_s4 + $0x50] sm:$0xff]  ;;  %727 = vmatpush.msra.mxu2 %v4793_v23  ;;  %749 = vmatpush.msra.mxu3 %v4831_v35 }
  0xf3   :  { %3513 = vrcp.f32 %v4768_v63  ;;  %v341_v42 = vsel %vm338_vm7, %v340_v11, %v336_v13  ;;  %vm350_vm10 = vmor %vm348_vm9, %vm349_vm8  ;;  %v4826_v34 = vld [vmem:[%s6855_s4 + $0x30] sm:$0xff]  ;;  %v369_v41 = vand.u32 2147483648, %v4768_v63  ;;  %v367_v44 = vand.u32 2147483647, %v4768_v63  ;;  %984 = vmatpush.msrb.mxu0 %v4538_v3  ;;  %1004 = vmatpush.msrb.mxu1 %v4543_v4 }
  0xf4   :  { %542 = vmatmul.f32.gmra.mxu2 %v341_v42  ;;  %583 = vmatmul.f32.gmra.mxu3 %v341_v42  ;;  %v345_v19 = vsub.f32 1.0, %v344_v14  ;;  %7071 = vst [vmem:[#allocation11_spill] sm:$0xff] %v4826_v34  ;;  %vm363_vm13 = vweird.f32 %v4768_v63 }
  0xf5   :  { %624 = vmatmul.f32.gmra.mxu0 %v341_v42  ;;  %665 = vmatmul.f32.gmra.mxu1 %v341_v42  ;;  %v370_v55 = vor.u32 1.1754944e-38, %v369_v41  ;;  %vm368_vm15 = vcmp.eq.f32.partialorder %v367_v44, 8.507059e+37  ;;  %v501_v44 = vld [vmem:[%s6856_s5] sm:$0xf] }
  0xf6   :  { %v346_v24 = vmul.f32 %v3512_v60, %v345_v19  ;;  %728 = vmatpush.msra.mxu2 %v4806_v33  ;;  %750 = vmatpush.msra.mxu3 %v4844_v10 }
  0xf7   :  { %985 = vmatpush.msrb.mxu0 %v4562_v21  ;;  %1005 = vmatpush.msrb.mxu1 %v4567_v22 }
  0xf8   :  { %v347_v1 = vadd.f32 %v3512_v60, %v346_v24  ;;  %729 = vmatpush.msra.mxu2 %v4826_v34 }
  0xf9   :  { %v3514_v2 = vpop.eup %3513  ;;  %986 = vmatpush.msrb.mxu0 %v4576_v28  ;;  %1006 = vmatpush.msrb.mxu1 %v4581_v29 }
  0xfa   :  { %v351_v7 = vsel %vm350_vm10, %v3512_v60, %v347_v1  ;;  %v359_v30 = vmul.f32 %v3514_v2, %v4768_v63  ;;  %vm364_vm12 = vweird.f32 %v3514_v2  ;;  %730 = vmatpush.msra.mxu2 %v4839_v9  ;;  %v6864_v63 = vmov 0.0  }
  0xfb   :  { %v356_v31 = vsel %vm353_vm11, %v355_v49, %v351_v7  ;;  %vm365_vm14 = vmor %vm363_vm13, %vm364_vm12 }
  0xfc   :  { %545 = vmatmul.f32.gmra.mxu2 %v356_v31  ;;  %586 = vmatmul.f32.gmra.mxu3 %v356_v31  ;;  %v360_v36 = vsub.f32 1.0, %v359_v30 }
  0xfd   :  { %627 = vmatmul.f32.gmra.mxu0 %v356_v31  ;;  %668 = vmatmul.f32.gmra.mxu1 %v356_v31 }
  0xfe   :  { %v361_v43 = vmul.f32 %v3514_v2, %v360_v36 }
 0x100   :  { %v362_v48 = vadd.f32 %v3514_v2, %v361_v43 }
 0x102   :  { %v366_v60 = vsel %vm365_vm14, %v3514_v2, %v362_v48  ;;  %v4961_v48 = vperm.slane %v501_v44, 0 }
 0x103   :  { %v371_v11 = vsel %vm368_vm15, %v370_v55, %v366_v60  ;;  %v4963_v55 = vperm.slane %v501_v44, 1 }
 0x104   :  { %548 = vmatmul.f32.gmra.mxu2 %v371_v11  ;;  %589 = vmatmul.f32.gmra.mxu3 %v371_v11  ;;  %7089 = vst [vmem:[#allocation29_spill] sm:$0xff] %v4961_v48 }
 0x105   :  { %630 = vmatmul.f32.gmra.mxu0 %v371_v11  ;;  %671 = vmatmul.f32.gmra.mxu1 %v371_v11  ;;  %7090 = vst [vmem:[#allocation30_spill] sm:$0xff] %v4963_v55 }
 0x10c   :  { %691 = vmatmul.f32.vlgmr.msrb.gmra.mxu2 %v6864_v63  ;;  %711 = vmatmul.f32.vlgmr.msrb.gmra.mxu3 %v6864_v63 }
 0x10d   :  { %863 = vmatpush.msrb.mxu2 %v4591_v37  ;;  %883 = vmatpush.msrb.mxu3 %v4596_v40 }
 0x10f   :  { %864 = vmatpush.msrb.mxu2 %v4607_v46  ;;  %884 = vmatpush.msrb.mxu3 %v4612_v47 }
 0x111   :  { %865 = vmatpush.msrb.mxu2 %v4630_v61  ;;  %885 = vmatpush.msrb.mxu3 %v4635_v0 }
 0x113   :  { %866 = vmatpush.msrb.mxu2 %v4642_v15  ;;  %886 = vmatpush.msrb.mxu3 %v4647_v16 }
 0x114   :  { %731 = vmatmul.f32.vlgmr.msra.gmra.mxu2 %v6864_v63  ;;  %751 = vmatmul.f32.vlgmr.msra.gmra.mxu3 %v6864_v63 }
 0x115   :  { %867 = vmatpush.msrb.mxu2 %v4655_v26  ;;  %887 = vmatpush.msrb.mxu3 %v4660_v27 }
 0x117   :  { %868 = vmatpush.msrb.mxu2 %v4679_v56  ;;  %888 = vmatpush.msrb.mxu3 %v4684_v57 }
 0x119   :  { %869 = vmatpush.msrb.mxu2 %v4693_v5  ;;  %889 = vmatpush.msrb.mxu3 %v4698_v62 }
 0x11b   :  { %870 = vmatpush.msrb.mxu2 %v4706_v12  ;;  %890 = vmatpush.msrb.mxu3 %v4711_v17 }
 0x11d   :  { %871 = vmatpush.msrb.mxu2 %v4730_v38  ;;  %891 = vmatpush.msrb.mxu3 %v4735_v6 }
 0x11f   :  { %872 = vmatpush.msrb.mxu2 %v4743_v52  ;;  %892 = vmatpush.msrb.mxu3 %v4748_v8 }
 0x121   :  { %873 = vmatpush.msrb.mxu2 %v4756_v53  ;;  %893 = vmatpush.msrb.mxu3 %v4761_v54 }
 0x123   :  { %874 = vmatpush.msrb.mxu2 %v4780_v39  ;;  %894 = vmatpush.msrb.mxu3 %v4785_v18 }
 0x125   :  { %875 = vmatpush.msrb.mxu2 %v4793_v23  ;;  %895 = vmatpush.msrb.mxu3 %v4798_v32 }
 0x127   :  { %876 = vmatpush.msrb.mxu2 %v4806_v33  ;;  %896 = vmatpush.msrb.mxu3 %v4811_v45 }
 0x129   :  { %877 = vmatpush.msrb.mxu2 %v4826_v34  ;;  %897 = vmatpush.msrb.mxu3 %v4831_v35 }
 0x12b   :  { %878 = vmatpush.msrb.mxu2 %v4839_v9  ;;  %898 = vmatpush.msrb.mxu3 %v4844_v10 }
 0x12d   :  { %1011 = vmatpush.msra.mxu2 %v4591_v37  ;;  %1031 = vmatpush.msra.mxu3 %v4596_v40 }
 0x12f   :  { %1012 = vmatpush.msra.mxu2 %v4607_v46  ;;  %1032 = vmatpush.msra.mxu3 %v4612_v47 }
 0x131   :  { %1013 = vmatpush.msra.mxu2 %v4630_v61  ;;  %1033 = vmatpush.msra.mxu3 %v4635_v0 }
 0x133   :  { %1014 = vmatpush.msra.mxu2 %v4642_v15  ;;  %1034 = vmatpush.msra.mxu3 %v4647_v16 }
 0x135   :  { %1015 = vmatpush.msra.mxu2 %v4655_v26  ;;  %1035 = vmatpush.msra.mxu3 %v4660_v27 }
 0x137   :  { %1016 = vmatpush.msra.mxu2 %v4679_v56  ;;  %1036 = vmatpush.msra.mxu3 %v4684_v57 }
 0x139   :  { %1017 = vmatpush.msra.mxu2 %v4693_v5  ;;  %1037 = vmatpush.msra.mxu3 %v4698_v62 }
 0x13b   :  { %1018 = vmatpush.msra.mxu2 %v4706_v12  ;;  %1038 = vmatpush.msra.mxu3 %v4711_v17 }
 0x13d   :  { %1019 = vmatpush.msra.mxu2 %v4730_v38  ;;  %1039 = vmatpush.msra.mxu3 %v4735_v6 }
 0x13f   :  { %1020 = vmatpush.msra.mxu2 %v4743_v52  ;;  %1040 = vmatpush.msra.mxu3 %v4748_v8 }
 0x141   :  { %1021 = vmatpush.msra.mxu2 %v4756_v53  ;;  %1041 = vmatpush.msra.mxu3 %v4761_v54 }
 0x143   :  { %1022 = vmatpush.msra.mxu2 %v4780_v39  ;;  %1042 = vmatpush.msra.mxu3 %v4785_v18 }
 0x145   :  { %1023 = vmatpush.msra.mxu2 %v4793_v23  ;;  %1043 = vmatpush.msra.mxu3 %v4798_v32 }
 0x147   :  { %1024 = vmatpush.msra.mxu2 %v4806_v33  ;;  %1044 = vmatpush.msra.mxu3 %v4811_v45 }
 0x149   :  { %1025 = vmatpush.msra.mxu2 %v4826_v34  ;;  %1045 = vmatpush.msra.mxu3 %v4831_v35 }
 0x14b   :  { %1026 = vmatpush.msra.mxu2 %v4839_v9  ;;  %1046 = vmatpush.msra.mxu3 %v4844_v10 }
 0x14f   :  { %v528_v13 = vpop.f32.mrf.mxu2  ;;  %v569_v14 = vpop.f32.mrf.mxu3 }
 0x150   :  { %v529_v60 = vadd.f32 %v528_v13, %v4961_v48  ;;  %v570_v11 = vadd.f32 %v569_v14, %v4963_v55  ;;  %v4970_v55 = vperm.slane %v501_v44, 2 }
 0x152   :  { %7092 = vst [vmem:[#allocation32_spill] sm:$0xff] %v4970_v55 }
 0x157   :  { %v4930_v42 = vpop.f32.mrf.mxu2  ;;  %v4932_v19 = vpop.f32.mrf.mxu3 }
 0x158   :  { %7075 = vst [vmem:[#allocation15_spill] sm:$0xff] %v4930_v42 }
 0x159   :  { %7076 = vst [vmem:[#allocation16_spill] sm:$0xff] %v4932_v19 }
 0x15f   :  { %v4934_v20 = vpop.f32.mrf.mxu2  ;;  %v4936_v24 = vpop.f32.mrf.mxu3 }
 0x160   :  { %7077 = vst [vmem:[#allocation17_spill] sm:$0xff] %v4934_v20 }
 0x161   :  { %7078 = vst [vmem:[#allocation18_spill] sm:$0xff] %v4936_v24 }
 0x167   :  { %v4938_v25 = vpop.f32.mrf.mxu2  ;;  %v4940_v1 = vpop.f32.mrf.mxu3 }
 0x168   :  { %7079 = vst [vmem:[#allocation19_spill] sm:$0xff] %v4938_v25 }
 0x169   :  { %7080 = vst [vmem:[#allocation20_spill] sm:$0xff] %v4940_v1 }
 0x16f   :  { %v4942_v2 = vpop.f32.mrf.mxu2  ;;  %v4944_v49 = vpop.f32.mrf.mxu3 }
 0x170   :  { %7081 = vst [vmem:[#allocation21_spill] sm:$0xff] %v4942_v2 }
 0x171   :  { %7082 = vst [vmem:[#allocation22_spill] sm:$0xff] %v4944_v49  ;;  %v651_v49 = vpop.f32.mrf.mxu1 }
 0x177   :  { %v4946_v7 = vpop.f32.mrf.mxu2  ;;  %v4948_v30 = vpop.f32.mrf.mxu3 }
 0x178   :  { %7083 = vst [vmem:[#allocation23_spill] sm:$0xff] %v4946_v7  ;;  %v4967_v7 = vperm.slane %v501_v44, 3 }
 0x179   :  { %7084 = vst [vmem:[#allocation24_spill] sm:$0xff] %v4948_v30 }
 0x17a   :  { %7091 = vst [vmem:[#allocation31_spill] sm:$0xff] %v4967_v7  ;;  %v652_v2 = vadd.f32 %v651_v49, %v4967_v7 }
 0x17f   :  { %v4950_v31 = vpop.f32.mrf.mxu2  ;;  %v4952_v36 = vpop.f32.mrf.mxu3 }
 0x180   :  { %7085 = vst [vmem:[#allocation25_spill] sm:$0xff] %v4950_v31 }
 0x181   :  { %7086 = vst [vmem:[#allocation26_spill] sm:$0xff] %v4952_v36 }
 0x187   :  { %v4954_v41 = vpop.f32.mrf.mxu2  ;;  %v4956_v43 = vpop.f32.mrf.mxu3 }
 0x188   :  { %7087 = vst [vmem:[#allocation27_spill] sm:$0xff] %v4954_v41 }
 0x189   :  { %7088 = vst [vmem:[#allocation28_spill] sm:$0xff] %v4956_v43 }
 0x18f   :  { %v692_v63 = vpop.f32.mrf.mxu2  ;;  %v712_v31 = vpop.f32.mrf.mxu3 }
 0x190   :  { %v755_v30 = vadd.f32 %v692_v63, %v529_v60  ;;  %v756_v36 = vadd.f32 %v712_v31, %v570_v11  ;;  %v610_v63 = vpop.f32.mrf.mxu0 }
 0x191   :  { %v611_v31 = vadd.f32 %v610_v63, %v4970_v55 }
 0x192   :  { %v3424_v41 = vmul.f32 -1.442695, %v755_v30  ;;  %v3425_v43 = vmul.f32 -1.442695, %v756_v36 }
 0x194   :  { %3515 = vpow2.f32 %v3424_v41 }
 0x195   :  { %3517 = vpow2.f32 %v3425_v43 }
 0x197   :  { %v752_v1 = vpop.f32.mrf.mxu3  ;;  %v732_v30 = vpop.f32.mrf.mxu2 }
 0x198   :  { %v758_v25 = vadd.f32 %v752_v1, %v652_v2  ;;  %v757_v43 = vadd.f32 %v732_v30, %v611_v31 }
 0x19a   :  { %v3516_v24 = vpop.eup %3515  ;;  %v3426_v20 = vmul.f32 -1.442695, %v758_v25 }
 0x19b   :  { %v3518_v13 = vpop.eup %3517  ;;  %v762_v19 = vadd.f32 1.0, %v3516_v24 }
 0x19c   :  { %v781_v14 = vadd.f32 1.0, %v3518_v13  ;;  %3519 = vpow2.f32 %v3426_v20 }
 0x19d   :  { %3521 = vrcp.f32 %v762_v19  ;;  %v774_v11 = vand.u32 2147483648, %v762_v19  ;;  %v772_v13 = vand.u32 2147483647, %v762_v19  ;;  %vm768_vm2 = vweird.f32 %v762_v19 }
 0x19e   :  { %3523 = vrcp.f32 %v781_v14  ;;  %v793_v20 = vand.u32 2147483648, %v781_v14  ;;  %v791_v42 = vand.u32 2147483647, %v781_v14  ;;  %vm787_vm3 = vweird.f32 %v781_v14 }
 0x19f   :  { %v775_v30 = vor.u32 1.1754944e-38, %v774_v11  ;;  %vm773_vm5 = vcmp.eq.f32.partialorder %v772_v13, 8.507059e+37 }
 0x1a0   :  { %vm792_vm7 = vcmp.eq.f32.partialorder %v791_v42, 8.507059e+37 }
 0x1a2   :  { %v3520_v36 = vpop.eup %3519 }
 0x1a3   :  { %v3522_v41 = vpop.eup %3521  ;;  %v801_v49 = vadd.f32 1.0, %v3520_v36 }
 0x1a4   :  { %v3524_v60 = vpop.eup %3523  ;;  %v764_v1 = vmul.f32 %v3522_v41, %v762_v19  ;;  %vm769_vm0 = vweird.f32 %v3522_v41 }
 0x1a5   :  { %v783_v2 = vmul.f32 %v3524_v60, %v781_v14  ;;  %3525 = vrcp.f32 %v801_v49  ;;  %vm788_vm1 = vweird.f32 %v3524_v60  ;;  %vm770_vm4 = vmor %vm768_vm2, %vm769_vm0  ;;  %vm807_vm9 = vweird.f32 %v801_v49 }
 0x1a6   :  { %v765_v25 = vsub.f32 1.0, %v764_v1  ;;  %3527 = vtanh.f32 %v757_v43  ;;  %vm789_vm6 = vmor %vm787_vm3, %vm788_vm1  ;;  %v794_v1 = vor.u32 1.1754944e-38, %v793_v20 }
 0x1a7   :  { %v784_v24 = vsub.f32 1.0, %v783_v2 }
 0x1a8   :  { %v766_v44 = vmul.f32 %v3522_v41, %v765_v25 }
 0x1a9   :  { %v785_v7 = vmul.f32 %v3524_v60, %v784_v24 }
 0x1aa   :  { %v767_v63 = vadd.f32 %v3522_v41, %v766_v44 }
 0x1ab   :  { %v3526_v55 = vpop.eup %3525  ;;  %v786_v31 = vadd.f32 %v3524_v60, %v785_v7  ;;  %v813_v7 = vand.u32 2147483648, %v801_v49 }
 0x1ac   :  { %v771_v36 = vsel %vm770_vm4, %v3522_v41, %v767_v63  ;;  %v803_v2 = vmul.f32 %v3526_v55, %v801_v49  ;;  %v3528_v43 = vpop.eup %3527  ;;  %vm808_vm8 = vweird.f32 %v3526_v55  ;;  %v811_v41 = vand.u32 2147483647, %v801_v49  ;;  %v5103_v49 = vld [vmem:[%s6855_s4 + $0xe8] sm:$0xff]  ;;  %v5111_v63 = vld [vmem:[%s6855_s4 + $0xc0] sm:$0xff] }
 0x1ad   :  { %v776_v48 = vsel %vm773_vm5, %v775_v30, %v771_v36  ;;  %v790_v25 = vsel %vm789_vm6, %v3524_v60, %v786_v31  ;;  %vm809_vm10 = vmor %vm807_vm9, %vm808_vm8  ;;  %v814_v20 = vor.u32 1.1754944e-38, %v813_v7  ;;  %v5117_v30 = vld [vmem:[%s6855_s4 + $0xc8] sm:$0xff]  ;;  %v5125_v31 = vld [vmem:[%s6855_s4 + $0xa0] sm:$0xff] }
 0x1ae   :  { %v795_v10 = vsel %vm792_vm7, %v794_v1, %v790_v25  ;;  %v818_v24 = vmul.f32 %v3528_v43, %v776_v48  ;;  %v804_v9 = vsub.f32 1.0, %v803_v2  ;;  %vm812_vm11 = vcmp.eq.f32.partialorder %v811_v41, 8.507059e+37  ;;  %v5005_v48 = vld [vmem:[%s6855_s4 + $0x1c8] sm:$0xff]  ;;  %7094 = vst [vmem:[#allocation34_spill] sm:$0xff] %v5125_v31  ;;  %v7111_v41 = vld [vmem:[#allocation29_spill] sm:$0xff] }
 0x1af   :  { %v817_v29 = vmul.f32 0.0, %v795_v10  ;;  %v4999_v10 = vld [vmem:[%s6855_s4 + $0x1c0] sm:$0xff]  ;;  %v5131_v36 = vld [vmem:[%s6855_s4 + $0xa8] sm:$0xff] }
 0x1b0   :  { %v805_v44 = vmul.f32 %v3526_v55, %v804_v9  ;;  %v4991_v9 = vld [vmem:[%s6855_s4 + $0x1e8] sm:$0xff]  ;;  %7095 = vst [vmem:[#allocation35_spill] sm:$0xff] %v5131_v36 }
 0x1b1   :  { %v4973_v19 = vadd.f32 %v818_v24, %v817_v29  ;;  %v4985_v29 = vld [vmem:[%s6855_s4 + $0x1e0] sm:$0xff] }
 0x1b2   :  { %v806_v14 = vadd.f32 %v3526_v55, %v805_v44 }
 0x1b3   :  { %3529 = vtanh.f32 %v4973_v19 }
 0x1b4   :  { %v810_v11 = vsel %vm809_vm10, %v3526_v55, %v806_v14  ;;  %v5097_v55 = vld [vmem:[%s6855_s4 + $0xe0] sm:$0xff] }
 0x1b5   :  { %v815_v42 = vsel %vm812_vm11, %v814_v20, %v810_v11  ;;  %v7112_v11 = vld [vmem:[#allocation15_spill] sm:$0xff] }
 0x1b6   :  { %v532_v20 = vadd.f32 %v7112_v11, %v7111_v41 }
 0x1b9   :  { %v3530_v60 = vpop.eup %3529 }
 0x1ba   :  { %v4976_v13 = vmul.f32 %v3530_v60, %v815_v42  ;;  %v7113_v60 = vld [vmem:[#allocation30_spill] sm:$0xff]  ;;  %v7114_v42 = vld [vmem:[#allocation16_spill] sm:$0xff] }
 0x1bc   :  { %7093 = vst [vmem:[#allocation33_spill] sm:$0xff] %v4976_v13  ;;  %839 = vmatmul.f32.vlgmr.msra.gmra.mxu0 %v4976_v13  ;;  %859 = vmatmul.f32.vlgmr.msra.gmra.mxu1 %v4976_v13 }
 0x1bd   :  { %879 = vmatmul.f32.vlgmr.msrb.gmra.mxu2 %v4976_v13  ;;  %899 = vmatmul.f32.vlgmr.msrb.gmra.mxu3 %v4976_v13 }
 0x1be   :  { %1119 = vmatpush.msra.mxu0 %v4985_v29  ;;  %1139 = vmatpush.msra.mxu1 %v4991_v9 }
 0x1bf   :  { %1159 = vmatpush.msrb.mxu2 %v4591_v37  ;;  %1179 = vmatpush.msrb.mxu3 %v4596_v40  ;;  %v5013_v37 = vld [vmem:[%s6855_s4 + $0x1a0] sm:$0xff]  ;;  %v5019_v40 = vld [vmem:[%s6855_s4 + $0x1a8] sm:$0xff] }
 0x1c0   :  { %1120 = vmatpush.msra.mxu0 %v4999_v10  ;;  %1140 = vmatpush.msra.mxu1 %v5005_v48 }
 0x1c1   :  { %1160 = vmatpush.msrb.mxu2 %v4607_v46  ;;  %1180 = vmatpush.msrb.mxu3 %v4612_v47  ;;  %v5027_v46 = vld [vmem:[%s6855_s4 + $0x180] sm:$0xff]  ;;  %v5033_v47 = vld [vmem:[%s6855_s4 + $0x188] sm:$0xff] }
 0x1c2   :  { %1121 = vmatpush.msra.mxu0 %v5013_v37  ;;  %1141 = vmatpush.msra.mxu1 %v5019_v40 }
 0x1c3   :  { %1161 = vmatpush.msrb.mxu2 %v4630_v61  ;;  %1181 = vmatpush.msrb.mxu3 %v4635_v0  ;;  %v5041_v61 = vld [vmem:[%s6855_s4 + $0x160] sm:$0xff]  ;;  %v5047_v0 = vld [vmem:[%s6855_s4 + $0x168] sm:$0xff] }
 0x1c4   :  { %1122 = vmatpush.msra.mxu0 %v5027_v46  ;;  %1142 = vmatpush.msra.mxu1 %v5033_v47 }
 0x1c5   :  { %1162 = vmatpush.msrb.mxu2 %v4642_v15  ;;  %1182 = vmatpush.msrb.mxu3 %v4647_v16  ;;  %v5055_v15 = vld [vmem:[%s6855_s4 + $0x140] sm:$0xff]  ;;  %v5061_v16 = vld [vmem:[%s6855_s4 + $0x148] sm:$0xff] }
 0x1c6   :  { %1123 = vmatpush.msra.mxu0 %v5041_v61  ;;  %1143 = vmatpush.msra.mxu1 %v5047_v0 }
 0x1c7   :  { %1163 = vmatpush.msrb.mxu2 %v4655_v26  ;;  %1183 = vmatpush.msrb.mxu3 %v4660_v27  ;;  %v5069_v26 = vld [vmem:[%s6855_s4 + $0x120] sm:$0xff]  ;;  %v5075_v27 = vld [vmem:[%s6855_s4 + $0x128] sm:$0xff] }
 0x1c8   :  { %1124 = vmatpush.msra.mxu0 %v5055_v15  ;;  %1144 = vmatpush.msra.mxu1 %v5061_v16 }
 0x1c9   :  { %1164 = vmatpush.msrb.mxu2 %v4679_v56  ;;  %1184 = vmatpush.msrb.mxu3 %v4684_v57  ;;  %v5083_v56 = vld [vmem:[%s6855_s4 + $0x100] sm:$0xff]  ;;  %v5089_v57 = vld [vmem:[%s6855_s4 + $0x108] sm:$0xff] }
 0x1ca   :  { %1125 = vmatpush.msra.mxu0 %v5069_v26  ;;  %1145 = vmatpush.msra.mxu1 %v5075_v27 }
 0x1cb   :  { %1165 = vmatpush.msrb.mxu2 %v4693_v5  ;;  %1185 = vmatpush.msrb.mxu3 %v4698_v62 }
 0x1cc   :  { %1126 = vmatpush.msra.mxu0 %v5083_v56  ;;  %1146 = vmatpush.msra.mxu1 %v5089_v57 }
 0x1cd   :  { %1166 = vmatpush.msrb.mxu2 %v4706_v12  ;;  %1186 = vmatpush.msrb.mxu3 %v4711_v17 }
 0x1ce   :  { %1127 = vmatpush.msra.mxu0 %v5097_v55  ;;  %1147 = vmatpush.msra.mxu1 %v5103_v49 }
 0x1cf   :  { %1167 = vmatpush.msrb.mxu2 %v4730_v38  ;;  %1187 = vmatpush.msrb.mxu3 %v4735_v6 }
 0x1d0   :  { %1128 = vmatpush.msra.mxu0 %v5111_v63  ;;  %1148 = vmatpush.msra.mxu1 %v5117_v30 }
 0x1d1   :  { %1168 = vmatpush.msrb.mxu2 %v4743_v52  ;;  %1188 = vmatpush.msrb.mxu3 %v4748_v8 }
 0x1d2   :  { %1129 = vmatpush.msra.mxu0 %v5125_v31  ;;  %1149 = vmatpush.msra.mxu1 %v5131_v36 }
 0x1d3   :  { %1169 = vmatpush.msrb.mxu2 %v4756_v53  ;;  %1189 = vmatpush.msrb.mxu3 %v4761_v54 }
 0x1d4   :  { %1130 = vmatpush.msra.mxu0 %v4506_v50  ;;  %1150 = vmatpush.msra.mxu1 %v4511_v51  ;;  %v7096_v50 = vld [vmem:[#allocation10_spill] sm:$0xff]  ;;  %v7097_v51 = vld [vmem:[#allocation13_spill] sm:$0xff] }
 0x1d5   :  { %1170 = vmatpush.msrb.mxu2 %v4780_v39  ;;  %1190 = vmatpush.msrb.mxu3 %v4785_v18 }
 0x1d6   :  { %1131 = vmatpush.msra.mxu0 %v4522_v58  ;;  %1151 = vmatpush.msra.mxu1 %v4527_v59  ;;  %v7098_v58 = vld [vmem:[#allocation14_spill] sm:$0xff]  ;;  %v613_v59 = vpop.f32.mrf.mxu0 }
 0x1d7   :  { %1171 = vmatpush.msrb.mxu2 %v4793_v23  ;;  %1191 = vmatpush.msrb.mxu3 %v4798_v32 }
 0x1d8   :  { %1132 = vmatpush.msra.mxu0 %v4538_v3  ;;  %1152 = vmatpush.msra.mxu1 %v4543_v4  ;;  %v654_v3 = vpop.f32.mrf.mxu1 }
 0x1d9   :  { %1172 = vmatpush.msrb.mxu2 %v4806_v33  ;;  %1192 = vmatpush.msrb.mxu3 %v4811_v45 }
 0x1da   :  { %1133 = vmatpush.msra.mxu0 %v4562_v21  ;;  %1153 = vmatpush.msra.mxu1 %v4567_v22 }
 0x1db   :  { %1173 = vmatpush.msrb.mxu2 %v4826_v34  ;;  %1193 = vmatpush.msrb.mxu3 %v4831_v35 }
 0x1dc   :  { %1134 = vmatpush.msra.mxu0 %v4576_v28  ;;  %1154 = vmatpush.msra.mxu1 %v7096_v50  ;;  %v573_v50 = vadd.f32 %v7114_v42, %v7113_v60 }
 0x1dd   :  { %1174 = vmatpush.msrb.mxu2 %v7097_v51  ;;  %1194 = vmatpush.msrb.mxu3 %v7098_v58 }
 0x1de   :  { %v5156_v4 = vpop.f32.mrf.mxu0 }
 0x1df   :  { %7099 = vst [vmem:[#allocation10_spill] sm:$0xff] %v5156_v4 }
 0x1e0   :  { %v5158_v1 = vpop.f32.mrf.mxu1 }
 0x1e1   :  { %7100 = vst [vmem:[#allocation36_spill] sm:$0xff] %v5158_v1 }
 0x1e6   :  { %v5160_v21 = vpop.f32.mrf.mxu0 }
 0x1e7   :  { %7101 = vst [vmem:[#allocation37_spill] sm:$0xff] %v5160_v21 }
 0x1e8   :  { %v5162_v22 = vpop.f32.mrf.mxu1 }
 0x1e9   :  { %7102 = vst [vmem:[#allocation38_spill] sm:$0xff] %v5162_v22 }
 0x1ee   :  { %v5164_v2 = vpop.f32.mrf.mxu0 }
 0x1ef   :  { %7103 = vst [vmem:[#allocation39_spill] sm:$0xff] %v5164_v2 }
 0x1f0   :  { %v5166_v43 = vpop.f32.mrf.mxu1 }
 0x1f1   :  { %7104 = vst [vmem:[#allocation40_spill] sm:$0xff] %v5166_v43 }
 0x1f6   :  { %v5168_v28 = vpop.f32.mrf.mxu0 }
 0x1f7   :  { %7105 = vst [vmem:[#allocation41_spill] sm:$0xff] %v5168_v28 }
 0x1f8   :  { %v5170_v25 = vpop.f32.mrf.mxu1 }
 0x1f9   :  { %7106 = vst [vmem:[#allocation42_spill] sm:$0xff] %v5170_v25 }
 0x1fe   :  { %v5172_v24 = vpop.f32.mrf.mxu0 }
 0x1ff   :  { %7107 = vst [vmem:[#allocation43_spill] sm:$0xff] %v5172_v24  ;;  %v7115_v24 = vld [vmem:[#allocation31_spill] sm:$0xff] }
 0x200   :  { %v5174_v44 = vpop.f32.mrf.mxu1  ;;  %v655_v22 = vadd.f32 %v654_v3, %v7115_v24 }
 0x201   :  { %7108 = vst [vmem:[#allocation44_spill] sm:$0xff] %v5174_v44 }
 0x206   :  { %v5176_v14 = vpop.f32.mrf.mxu0 }
 0x207   :  { %7109 = vst [vmem:[#allocation45_spill] sm:$0xff] %v5176_v14 }
 0x208   :  { %v5178_v7 = vpop.f32.mrf.mxu1 }
 0x209   :  { %7110 = vst [vmem:[#allocation46_spill] sm:$0xff] %v5178_v7 }
 0x239   :  { %v840_v13 = vpop.f32.mrf.mxu0  ;;  %v860_v2 = vpop.f32.mrf.mxu1 }
 0x23a   :  { %v903_v43 = vadd.f32 %v840_v13, %v532_v20  ;;  %v904_v28 = vadd.f32 %v860_v2, %v573_v50  ;;  %v7116_v13 = vld [vmem:[#allocation32_spill] sm:$0xff] }
 0x23b   :  { %v614_v2 = vadd.f32 %v613_v59, %v7116_v13 }
 0x23c   :  { %v3427_v21 = vmul.f32 -1.442695, %v903_v43  ;;  %v3428_v25 = vmul.f32 -1.442695, %v904_v28 }
 0x23e   :  { %3531 = vpow2.f32 %v3427_v21 }
 0x23f   :  { %3533 = vpow2.f32 %v3428_v25 }
 0x240   :  { %v900_v44 = vpop.f32.mrf.mxu3  ;;  %v880_v42 = vpop.f32.mrf.mxu2 }
 0x241   :  { %v906_v14 = vadd.f32 %v900_v44, %v655_v22  ;;  %v905_v21 = vadd.f32 %v880_v42, %v614_v2 }
 0x243   :  { %v3429_v4 = vmul.f32 -1.442695, %v906_v14 }
 0x244   :  { %v3532_v7 = vpop.eup %3531 }
 0x245   :  { %v3534_v1 = vpop.eup %3533  ;;  %v910_v58 = vadd.f32 1.0, %v3532_v7  ;;  %3535 = vpow2.f32 %v3429_v4 }
 0x246   :  { %v929_v11 = vadd.f32 1.0, %v3534_v1 }
 0x247   :  { %3537 = vrcp.f32 %v910_v58  ;;  %v922_v14 = vand.u32 2147483648, %v910_v58  ;;  %v920_v1 = vand.u32 2147483647, %v910_v58  ;;  %vm916_vm14 = vweird.f32 %v910_v58 }
 0x248   :  { %3539 = vrcp.f32 %v929_v11  ;;  %v941_v7 = vand.u32 2147483648, %v929_v11  ;;  %v939_v24 = vand.u32 2147483647, %v929_v11  ;;  %vm935_vm15 = vweird.f32 %v929_v11 }
 0x249   :  { %vm921_vm2 = vcmp.eq.f32.partialorder %v920_v1, 8.507059e+37 }
 0x24a   :  { %vm940_vm3 = vcmp.eq.f32.partialorder %v939_v24, 8.507059e+37 }
 0x24b   :  { %v3536_v60 = vpop.eup %3535 }
 0x24c   :  { %v949_v43 = vadd.f32 1.0, %v3536_v60  ;;  %v923_v60 = vor.u32 1.1754944e-38, %v922_v14 }
 0x24d   :  { %v3538_v28 = vpop.eup %3537 }
 0x24e   :  { %v3540_v20 = vpop.eup %3539  ;;  %v912_v3 = vmul.f32 %v3538_v28, %v910_v58  ;;  %3541 = vrcp.f32 %v949_v43  ;;  %vm917_vm12 = vweird.f32 %v3538_v28  ;;  %v961_v14 = vand.u32 2147483648, %v949_v43 }
 0x24f   :  { %v931_v25 = vmul.f32 %v3540_v20, %v929_v11  ;;  %3543 = vtanh.f32 %v905_v21  ;;  %vm936_vm13 = vweird.f32 %v3540_v20  ;;  %vm918_vm0 = vmor %vm916_vm14, %vm917_vm12  ;;  %vm955_vm5 = vweird.f32 %v949_v43 }
 0x250   :  { %v913_v22 = vsub.f32 1.0, %v912_v3  ;;  %vm937_vm1 = vmor %vm935_vm15, %vm936_vm13  ;;  %v942_v3 = vor.u32 1.1754944e-38, %v941_v7  ;;  %v962_v1 = vor.u32 1.1754944e-38, %v961_v14 }
 0x251   :  { %v932_v44 = vsub.f32 1.0, %v931_v25 }
 0x252   :  { %v914_v4 = vmul.f32 %v3538_v28, %v913_v22 }
 0x253   :  { %v933_v50 = vmul.f32 %v3540_v20, %v932_v44 }
 0x254   :  { %v3542_v41 = vpop.eup %3541  ;;  %v915_v59 = vadd.f32 %v3538_v28, %v914_v4 }
 0x255   :  { %v934_v42 = vadd.f32 %v3540_v20, %v933_v50  ;;  %v951_v2 = vmul.f32 %v3542_v41, %v949_v43  ;;  %v3544_v21 = vpop.eup %3543  ;;  %vm956_vm4 = vweird.f32 %v3542_v41 }
 0x256   :  { %v919_v25 = vsel %vm918_vm0, %v3538_v28, %v915_v59  ;;  %v959_v28 = vand.u32 2147483647, %v949_v43  ;;  %vm957_vm6 = vmor %vm955_vm5, %vm956_vm4  ;;  %v5243_v43 = vld [vmem:[%s6855_s4 + $0x190] sm:$0xff]  ;;  %v5249_v59 = vld [vmem:[%s6855_s4 + $0x198] sm:$0xff] }
 0x257   :  { %v924_v13 = vsel %vm921_vm2, %v923_v60, %v919_v25  ;;  %v938_v22 = vsel %vm937_vm1, %v3540_v20, %v934_v42  ;;  %v952_v51 = vsub.f32 1.0, %v951_v2  ;;  %v5257_v60 = vld [vmem:[%s6855_s4 + $0x170] sm:$0xff]  ;;  %v5263_v42 = vld [vmem:[%s6855_s4 + $0x178] sm:$0xff] }
 0x258   :  { %v943_v44 = vsel %vm940_vm3, %v942_v3, %v938_v22  ;;  %v966_v35 = vmul.f32 %v3544_v21, %v924_v13  ;;  %vm960_vm7 = vcmp.eq.f32.partialorder %v959_v28, 8.507059e+37  ;;  %v5235_v13 = vld [vmem:[%s6855_s4 + $0x1b8] sm:$0xff]  ;;  %v5271_v2 = vld [vmem:[%s6855_s4 + $0x150] sm:$0xff]  ;;  %v7134_v21 = vld [vmem:[#allocation30_spill] sm:$0xff] }
 0x259   :  { %v965_v34 = vmul.f32 %v943_v44, %v4973_v19  ;;  %v953_v4 = vmul.f32 %v3542_v41, %v952_v51  ;;  %v5215_v19 = vld [vmem:[%s6855_s4 + $0x1d0] sm:$0xff]  ;;  %v5221_v51 = vld [vmem:[%s6855_s4 + $0x1d8] sm:$0xff]  ;;  %v7135_v22 = vld [vmem:[#allocation18_spill] sm:$0xff] }
 0x25a   :  { %v5277_v3 = vld [vmem:[%s6855_s4 + $0x158] sm:$0xff]  ;;  %v576_v44 = vadd.f32 %v7135_v22, %v7134_v21 }
 0x25b   :  { %v5187_v58 = vadd.f32 %v966_v35, %v965_v34  ;;  %v954_v11 = vadd.f32 %v3542_v41, %v953_v4  ;;  %v5201_v34 = vld [vmem:[%s6855_s4 + $0x1f0] sm:$0xff]  ;;  %v5207_v35 = vld [vmem:[%s6855_s4 + $0x1f8] sm:$0xff] }
 0x25d   :  { %3545 = vtanh.f32 %v5187_v58  ;;  %v958_v7 = vsel %vm957_vm6, %v3542_v41, %v954_v11  ;;  %v5229_v41 = vld [vmem:[%s6855_s4 + $0x1b0] sm:$0xff] }
 0x25e   :  { %v963_v20 = vsel %vm960_vm7, %v962_v1, %v958_v7 }
 0x263   :  { %v3546_v24 = vpop.eup %3545 }
 0x264   :  { %v5190_v50 = vmul.f32 %v3546_v24, %v963_v20  ;;  %v7136_v24 = vld [vmem:[#allocation31_spill] sm:$0xff]  ;;  %v7137_v20 = vld [vmem:[#allocation36_spill] sm:$0xff] }
 0x266   :  { %7117 = vst [vmem:[#allocation15_spill] sm:$0xff] %v5190_v50  ;;  %987 = vmatmul.f32.vlgmr.msrb.gmra.mxu0 %v5190_v50  ;;  %1007 = vmatmul.f32.vlgmr.msrb.gmra.mxu1 %v5190_v50 }
 0x267   :  { %1027 = vmatmul.f32.vlgmr.msra.gmra.mxu2 %v5190_v50  ;;  %1047 = vmatmul.f32.vlgmr.msra.gmra.mxu3 %v5190_v50 }
 0x268   :  { %1267 = vmatpush.msrb.mxu0 %v4985_v29  ;;  %1287 = vmatpush.msrb.mxu1 %v4991_v9 }
 0x269   :  { %1307 = vmatpush.msra.mxu2 %v5201_v34  ;;  %1327 = vmatpush.msra.mxu3 %v5207_v35 }
 0x26a   :  { %1268 = vmatpush.msrb.mxu0 %v4999_v10  ;;  %1288 = vmatpush.msrb.mxu1 %v5005_v48 }
 0x26b   :  { %1308 = vmatpush.msra.mxu2 %v5215_v19  ;;  %1328 = vmatpush.msra.mxu3 %v5221_v51 }
 0x26c   :  { %1269 = vmatpush.msrb.mxu0 %v5013_v37  ;;  %1289 = vmatpush.msrb.mxu1 %v5019_v40 }
 0x26d   :  { %1309 = vmatpush.msra.mxu2 %v5229_v41  ;;  %1329 = vmatpush.msra.mxu3 %v5235_v13 }
 0x26e   :  { %1270 = vmatpush.msrb.mxu0 %v5027_v46  ;;  %1290 = vmatpush.msrb.mxu1 %v5033_v47 }
 0x26f   :  { %1310 = vmatpush.msra.mxu2 %v5243_v43  ;;  %1330 = vmatpush.msra.mxu3 %v5249_v59 }
 0x270   :  { %1271 = vmatpush.msrb.mxu0 %v5041_v61  ;;  %1291 = vmatpush.msrb.mxu1 %v5047_v0 }
 0x271   :  { %1311 = vmatpush.msra.mxu2 %v5257_v60  ;;  %1331 = vmatpush.msra.mxu3 %v5263_v42 }
 0x272   :  { %1272 = vmatpush.msrb.mxu0 %v5055_v15  ;;  %1292 = vmatpush.msrb.mxu1 %v5061_v16 }
 0x273   :  { %1312 = vmatpush.msra.mxu2 %v5271_v2  ;;  %1332 = vmatpush.msra.mxu3 %v5277_v3 }
 0x274   :  { %1273 = vmatpush.msrb.mxu0 %v5069_v26  ;;  %1293 = vmatpush.msrb.mxu1 %v5075_v27 }
 0x275   :  { %1313 = vmatpush.msra.mxu2 %v4693_v5  ;;  %1333 = vmatpush.msra.mxu3 %v4698_v62  ;;  %v5303_v5 = vld [vmem:[%s6855_s4 + $0x80] sm:$0xff]  ;;  %v5309_v62 = vld [vmem:[%s6855_s4 + $0x88] sm:$0xff] }
 0x276   :  { %1274 = vmatpush.msrb.mxu0 %v5083_v56  ;;  %1294 = vmatpush.msrb.mxu1 %v5089_v57  ;;  %7118 = vst [vmem:[#allocation16_spill] sm:$0xff] %v5303_v5 }
 0x277   :  { %1314 = vmatpush.msra.mxu2 %v4706_v12  ;;  %1334 = vmatpush.msra.mxu3 %v4711_v17  ;;  %7119 = vst [vmem:[#allocation47_spill] sm:$0xff] %v5309_v62  ;;  %v5317_v12 = vld [vmem:[%s6855_s4 + $0x60] sm:$0xff]  ;;  %v5323_v17 = vld [vmem:[%s6855_s4 + $0x68] sm:$0xff] }
 0x278   :  { %1275 = vmatpush.msrb.mxu0 %v5097_v55  ;;  %1295 = vmatpush.msrb.mxu1 %v5103_v49  ;;  %7120 = vst [vmem:[#allocation48_spill] sm:$0xff] %v5317_v12 }
 0x279   :  { %1315 = vmatpush.msra.mxu2 %v4730_v38  ;;  %1335 = vmatpush.msra.mxu3 %v4735_v6  ;;  %7121 = vst [vmem:[#allocation49_spill] sm:$0xff] %v5323_v17  ;;  %v5331_v38 = vld [vmem:[%s6855_s4 + $0x40] sm:$0xff]  ;;  %v5337_v6 = vld [vmem:[%s6855_s4 + $0x48] sm:$0xff] }
 0x27a   :  { %1276 = vmatpush.msrb.mxu0 %v5111_v63  ;;  %1296 = vmatpush.msrb.mxu1 %v5117_v30  ;;  %7122 = vst [vmem:[#allocation50_spill] sm:$0xff] %v5331_v38 }
 0x27b   :  { %1316 = vmatpush.msra.mxu2 %v4743_v52  ;;  %1336 = vmatpush.msra.mxu3 %v4748_v8  ;;  %7123 = vst [vmem:[#allocation51_spill] sm:$0xff] %v5337_v6  ;;  %v5345_v52 = vld [vmem:[%s6855_s4 + $0x20] sm:$0xff]  ;;  %v5351_v8 = vld [vmem:[%s6855_s4 + $0x28] sm:$0xff] }
 0x27c   :  { %1277 = vmatpush.msrb.mxu0 %v5125_v31  ;;  %1297 = vmatpush.msrb.mxu1 %v5131_v36  ;;  %7124 = vst [vmem:[#allocation52_spill] sm:$0xff] %v5345_v52 }
 0x27d   :  { %1317 = vmatpush.msra.mxu2 %v4756_v53  ;;  %1337 = vmatpush.msra.mxu3 %v4761_v54  ;;  %7125 = vst [vmem:[#allocation53_spill] sm:$0xff] %v5351_v8  ;;  %v7126_v53 = vld [vmem:[#allocation11_spill] sm:$0xff]  ;;  %v7127_v54 = vld [vmem:[#allocation12_spill] sm:$0xff] }
 0x27e   :  { %1278 = vmatpush.msrb.mxu0 %v5303_v5  ;;  %1298 = vmatpush.msrb.mxu1 %v5309_v62 }
 0x27f   :  { %1318 = vmatpush.msra.mxu2 %v4780_v39  ;;  %1338 = vmatpush.msra.mxu3 %v4785_v18  ;;  %v5359_v39 = vld [vmem:[%s6855_s4] sm:$0xff]  ;;  %v5365_v18 = vld [vmem:[%s6855_s4 + $0x8] sm:$0xff] }
 0x280   :  { %1279 = vmatpush.msrb.mxu0 %v5317_v12  ;;  %1299 = vmatpush.msrb.mxu1 %v5323_v17  ;;  %7128 = vst [vmem:[#allocation11_spill] sm:$0xff] %v5359_v39 }
 0x281   :  { %1319 = vmatpush.msra.mxu2 %v4793_v23  ;;  %1339 = vmatpush.msra.mxu3 %v4798_v32  ;;  %7129 = vst [vmem:[#allocation12_spill] sm:$0xff] %v5365_v18  ;;  %v7130_v23 = vld [vmem:[#allocation13_spill] sm:$0xff]  ;;  %v7131_v32 = vld [vmem:[#allocation14_spill] sm:$0xff] }
 0x282   :  { %1280 = vmatpush.msrb.mxu0 %v5331_v38  ;;  %1300 = vmatpush.msrb.mxu1 %v5337_v6 }
 0x283   :  { %1320 = vmatpush.msra.mxu2 %v4806_v33  ;;  %1340 = vmatpush.msra.mxu3 %v4811_v45  ;;  %v7132_v33 = vld [vmem:[#allocation29_spill] sm:$0xff] }
 0x284   :  { %1281 = vmatpush.msrb.mxu0 %v5345_v52  ;;  %1301 = vmatpush.msrb.mxu1 %v5351_v8  ;;  %v7133_v45 = vld [vmem:[#allocation17_spill] sm:$0xff] }
 0x285   :  { %1321 = vmatpush.msra.mxu2 %v7126_v53  ;;  %1341 = vmatpush.msra.mxu3 %v7127_v54  ;;  %v535_v25 = vadd.f32 %v7133_v45, %v7132_v33  ;;  %v658_v53 = vadd.f32 %v7137_v20, %v7136_v24 }
 0x286   :  { %1282 = vmatpush.msrb.mxu0 %v5359_v39  ;;  %1302 = vmatpush.msrb.mxu1 %v5365_v18 }
 0x287   :  { %1322 = vmatpush.msra.mxu2 %v7130_v23  ;;  %1342 = vmatpush.msra.mxu3 %v7131_v32 }
 0x2e3   :  { %v988_v4 = vpop.f32.mrf.mxu0  ;;  %v1008_v11 = vpop.f32.mrf.mxu1 }
 0x2e4   :  { %v1051_v14 = vadd.f32 %v988_v4, %v535_v25  ;;  %v1052_v28 = vadd.f32 %v1008_v11, %v576_v44  ;;  %v7138_v44 = vld [vmem:[#allocation32_spill] sm:$0xff]  ;;  %v7139_v4 = vld [vmem:[#allocation10_spill] sm:$0xff] }
 0x2e5   :  { %v617_v11 = vadd.f32 %v7139_v4, %v7138_v44 }
 0x2e6   :  { %v3430_v7 = vmul.f32 -1.442695, %v1051_v14  ;;  %v3431_v1 = vmul.f32 -1.442695, %v1052_v28 }
 0x2e8   :  { %3547 = vpow2.f32 %v3430_v7 }
 0x2e9   :  { %3549 = vpow2.f32 %v3431_v1 }
 0x2ea   :  { %v1048_v54 = vpop.f32.mrf.mxu3  ;;  %v1028_v22 = vpop.f32.mrf.mxu2 }
 0x2eb   :  { %v1054_v23 = vadd.f32 %v1048_v54, %v658_v53  ;;  %v1053_v7 = vadd.f32 %v1028_v22, %v617_v11 }
 0x2ed   :  { %v3432_v32 = vmul.f32 -1.442695, %v1054_v23 }
 0x2ee   :  { %v3548_v50 = vpop.eup %3547 }
 0x2ef   :  { %v3550_v18 = vpop.eup %3549  ;;  %v1058_v45 = vadd.f32 1.0, %v3548_v50  ;;  %3551 = vpow2.f32 %v3432_v32 }
 0x2f0   :  { %v1077_v33 = vadd.f32 1.0, %v3550_v18 }
 0x2f1   :  { %3553 = vrcp.f32 %v1058_v45  ;;  %v1070_v24 = vand.u32 2147483648, %v1058_v45  ;;  %v1068_v32 = vand.u32 2147483647, %v1058_v45  ;;  %vm1064_vm10 = vweird.f32 %v1058_v45 }
 0x2f2   :  { %3555 = vrcp.f32 %v1077_v33  ;;  %v1089_v50 = vand.u32 2147483648, %v1077_v33  ;;  %v1087_v39 = vand.u32 2147483647, %v1077_v33  ;;  %vm1083_vm11 = vweird.f32 %v1077_v33 }
 0x2f3   :  { %v1071_v22 = vor.u32 1.1754944e-38, %v1070_v24  ;;  %vm1069_vm14 = vcmp.eq.f32.partialorder %v1068_v32, 8.507059e+37 }
 0x2f4   :  { %vm1088_vm15 = vcmp.eq.f32.partialorder %v1087_v39, 8.507059e+37 }
 0x2f5   :  { %v3552_v25 = vpop.eup %3551 }
 0x2f6   :  { %v1097_v14 = vadd.f32 1.0, %v3552_v25 }
 0x2f7   :  { %v3554_v28 = vpop.eup %3553 }
 0x2f8   :  { %v3556_v20 = vpop.eup %3555  ;;  %v1060_v1 = vmul.f32 %v3554_v28, %v1058_v45  ;;  %3557 = vrcp.f32 %v1097_v14  ;;  %vm1065_vm8 = vweird.f32 %v3554_v28  ;;  %vm1103_vm1 = vweird.f32 %v1097_v14 }
 0x2f9   :  { %v1079_v53 = vmul.f32 %v3556_v20, %v1077_v33  ;;  %3559 = vtanh.f32 %v1053_v7  ;;  %vm1084_vm9 = vweird.f32 %v3556_v20  ;;  %vm1066_vm12 = vmor %vm1064_vm10, %vm1065_vm8  ;;  %v1107_v24 = vand.u32 2147483647, %v1097_v14 }
 0x2fa   :  { %v1061_v54 = vsub.f32 1.0, %v1060_v1  ;;  %vm1085_vm13 = vmor %vm1083_vm11, %vm1084_vm9  ;;  %v1090_v1 = vor.u32 1.1754944e-38, %v1089_v50 }
 0x2fb   :  { %v1080_v23 = vsub.f32 1.0, %v1079_v53  ;;  %vm1108_vm3 = vcmp.eq.f32.partialorder %v1107_v24, 8.507059e+37  ;;  %v7154_v24 = vld [vmem:[#allocation53_spill] sm:$0xff] }
 0x2fc   :  { %v1062_v18 = vmul.f32 %v3554_v28, %v1061_v54 }
 0x2fd   :  { %v1081_v21 = vmul.f32 %v3556_v20, %v1080_v23 }
 0x2fe   :  { %v3558_v8 = vpop.eup %3557  ;;  %v1063_v4 = vadd.f32 %v3554_v28, %v1062_v18 }
 0x2ff   :  { %v1082_v25 = vadd.f32 %v3556_v20, %v1081_v21  ;;  %v1099_v11 = vmul.f32 %v3558_v8, %v1097_v14  ;;  %v3560_v7 = vpop.eup %3559  ;;  %vm1104_vm0 = vweird.f32 %v3558_v8  ;;  %v1109_v21 = vand.u32 2147483648, %v1097_v14  ;;  %v5459_v14 = vld [vmem:[%s6855_s4 + $0xd0] sm:$0xff] }
 0x300   :  { %v1067_v53 = vsel %vm1066_vm12, %v3554_v28, %v1063_v4  ;;  %vm1105_vm2 = vmor %vm1103_vm1, %vm1104_vm0  ;;  %7141 = vst [vmem:[#allocation14_spill] sm:$0xff] %v5459_v14  ;;  %v5465_v4 = vld [vmem:[%s6855_s4 + $0xd8] sm:$0xff] }
 0x301   :  { %v1072_v44 = vsel %vm1069_vm14, %v1071_v22, %v1067_v53  ;;  %v1086_v54 = vsel %vm1085_vm13, %v3556_v20, %v1082_v25  ;;  %v1100_v52 = vsub.f32 1.0, %v1099_v11  ;;  %v1110_v50 = vor.u32 1.1754944e-38, %v1109_v21  ;;  %7142 = vst [vmem:[#allocation17_spill] sm:$0xff] %v5465_v4  ;;  %v5473_v22 = vld [vmem:[%s6855_s4 + $0xb0] sm:$0xff]  ;;  %v5479_v25 = vld [vmem:[%s6855_s4 + $0xb8] sm:$0xff] }
 0x302   :  { %v1091_v23 = vsel %vm1088_vm15, %v1090_v1, %v1086_v54  ;;  %v1114_v6 = vmul.f32 %v3560_v7, %v1072_v44  ;;  %v5451_v44 = vld [vmem:[%s6855_s4 + $0xf8] sm:$0xff]  ;;  %7143 = vst [vmem:[#allocation18_spill] sm:$0xff] %v5473_v22  ;;  %v5487_v11 = vld [vmem:[%s6855_s4 + $0x90] sm:$0xff]  ;;  %v7149_v54 = vld [vmem:[#allocation50_spill] sm:$0xff] }
 0x303   :  { %v1113_v38 = vmul.f32 %v1091_v23, %v5187_v58  ;;  %v1101_v18 = vmul.f32 %v3558_v8, %v1100_v52  ;;  %v5417_v58 = vld [vmem:[%s6855_s4 + $0x130] sm:$0xff]  ;;  %v5437_v52 = vld [vmem:[%s6855_s4 + $0x118] sm:$0xff]  ;;  %7144 = vst [vmem:[#allocation36_spill] sm:$0xff] %v5479_v25  ;;  %v7150_v23 = vld [vmem:[#allocation51_spill] sm:$0xff] }
 0x304   :  { %7145 = vst [vmem:[#allocation10_spill] sm:$0xff] %v5487_v11  ;;  %v5493_v1 = vld [vmem:[%s6855_s4 + $0x98] sm:$0xff]  ;;  %v5501_v53 = vld [vmem:[%s6855_s4 + $0x70] sm:$0xff] }
 0x305   :  { %v5379_v45 = vadd.f32 %v1114_v6, %v1113_v38  ;;  %v1102_v33 = vadd.f32 %v3558_v8, %v1101_v18  ;;  %v5423_v38 = vld [vmem:[%s6855_s4 + $0x138] sm:$0xff]  ;;  %v5431_v6 = vld [vmem:[%s6855_s4 + $0x110] sm:$0xff]  ;;  %7146 = vst [vmem:[#allocation54_spill] sm:$0xff] %v5493_v1 }
 0x306   :  { %7147 = vst [vmem:[#allocation55_spill] sm:$0xff] %v5501_v53  ;;  %v5507_v7 = vld [vmem:[%s6855_s4 + $0x78] sm:$0xff]  ;;  %v5515_v18 = vld [vmem:[%s6855_s4 + $0x50] sm:$0xff] }
 0x307   :  { %3561 = vtanh.f32 %v5379_v45  ;;  %v1106_v28 = vsel %vm1105_vm2, %v3558_v8, %v1102_v33  ;;  %v5445_v8 = vld [vmem:[%s6855_s4 + $0xf0] sm:$0xff]  ;;  %7148 = vst [vmem:[#allocation56_spill] sm:$0xff] %v5507_v7  ;;  %v5521_v33 = vld [vmem:[%s6855_s4 + $0x58] sm:$0xff] }
 0x308   :  { %v1111_v20 = vsel %vm1108_vm3, %v1110_v50, %v1106_v28  ;;  %7151 = vst [vmem:[#allocation57_spill] sm:$0xff] %v5515_v18  ;;  %v7153_v21 = vld [vmem:[#allocation52_spill] sm:$0xff]  ;;  %v5535_v50 = vld [vmem:[%s6855_s4 + $0x38] sm:$0xff] }
 0x309   :  { %7152 = vst [vmem:[#allocation58_spill] sm:$0xff] %v5521_v33  ;;  %v5529_v28 = vld [vmem:[%s6855_s4 + $0x30] sm:$0xff] }
 0x30a   :  { %7155 = vst [vmem:[#allocation59_spill] sm:$0xff] %v5529_v28 }
 0x30b   :  { %7156 = vst [vmem:[#allocation60_spill] sm:$0xff] %v5535_v50 }
 0x30d   :  { %v3562_v39 = vpop.eup %3561 }
 0x30e   :  { %v5382_v32 = vmul.f32 %v3562_v39, %v1111_v20  ;;  %v7157_v39 = vld [vmem:[#allocation11_spill] sm:$0xff]  ;;  %v7158_v20 = vld [vmem:[#allocation12_spill] sm:$0xff] }
 0x310   :  { %7140 = vst [vmem:[#allocation13_spill] sm:$0xff] %v5382_v32  ;;  %1135 = vmatmul.f32.vlgmr.msra.gmra.mxu0 %v5382_v32  ;;  %1155 = vmatmul.f32.vlgmr.msra.gmra.mxu1 %v5382_v32 }
 0x311   :  { %1175 = vmatmul.f32.vlgmr.msrb.gmra.mxu2 %v5382_v32  ;;  %1195 = vmatmul.f32.vlgmr.msrb.gmra.mxu3 %v5382_v32  ;;  %v5543_v32 = vld [vmem:[%s6855_s4 + $0x10] sm:$0xff] }
 0x312   :  { %1415 = vmatpush.msra.mxu0 %v4985_v29  ;;  %1435 = vmatpush.msra.mxu1 %v4991_v9  ;;  %7159 = vst [vmem:[#allocation61_spill] sm:$0xff] %v5543_v32 }
 0x313   :  { %1455 = vmatpush.msrb.mxu2 %v5201_v34  ;;  %1475 = vmatpush.msrb.mxu3 %v5207_v35 }
 0x314   :  { %1416 = vmatpush.msra.mxu0 %v4999_v10  ;;  %1436 = vmatpush.msra.mxu1 %v5005_v48 }
 0x315   :  { %1456 = vmatpush.msrb.mxu2 %v5215_v19  ;;  %1476 = vmatpush.msrb.mxu3 %v5221_v51 }
 0x316   :  { %1417 = vmatpush.msra.mxu0 %v5013_v37  ;;  %1437 = vmatpush.msra.mxu1 %v5019_v40 }
 0x317   :  { %1457 = vmatpush.msrb.mxu2 %v5229_v41  ;;  %1477 = vmatpush.msrb.mxu3 %v5235_v13 }
 0x318   :  { %1418 = vmatpush.msra.mxu0 %v5027_v46  ;;  %1438 = vmatpush.msra.mxu1 %v5033_v47 }
 0x319   :  { %1458 = vmatpush.msrb.mxu2 %v5243_v43  ;;  %1478 = vmatpush.msrb.mxu3 %v5249_v59 }
 0x31a   :  { %1419 = vmatpush.msra.mxu0 %v5041_v61  ;;  %1439 = vmatpush.msra.mxu1 %v5047_v0 }
 0x31b   :  { %1459 = vmatpush.msrb.mxu2 %v5257_v60  ;;  %1479 = vmatpush.msrb.mxu3 %v5263_v42 }
 0x31c   :  { %1420 = vmatpush.msra.mxu0 %v5055_v15  ;;  %1440 = vmatpush.msra.mxu1 %v5061_v16 }
 0x31d   :  { %1460 = vmatpush.msrb.mxu2 %v5271_v2  ;;  %1480 = vmatpush.msrb.mxu3 %v5277_v3 }
 0x31e   :  { %1421 = vmatpush.msra.mxu0 %v5069_v26  ;;  %1441 = vmatpush.msra.mxu1 %v5075_v27 }
 0x31f   :  { %1461 = vmatpush.msrb.mxu2 %v5417_v58  ;;  %1481 = vmatpush.msrb.mxu3 %v5423_v38 }
 0x320   :  { %1422 = vmatpush.msra.mxu0 %v5083_v56  ;;  %1442 = vmatpush.msra.mxu1 %v5089_v57 }
 0x321   :  { %1462 = vmatpush.msrb.mxu2 %v5431_v6  ;;  %1482 = vmatpush.msrb.mxu3 %v5437_v52 }
 0x322   :  { %1423 = vmatpush.msra.mxu0 %v5097_v55  ;;  %1443 = vmatpush.msra.mxu1 %v5103_v49 }
 0x323   :  { %1463 = vmatpush.msrb.mxu2 %v5445_v8  ;;  %1483 = vmatpush.msrb.mxu3 %v5451_v44 }
 0x324   :  { %1424 = vmatpush.msra.mxu0 %v5111_v63  ;;  %1444 = vmatpush.msra.mxu1 %v5117_v30 }
 0x325   :  { %1464 = vmatpush.msrb.mxu2 %v5459_v14  ;;  %1484 = vmatpush.msrb.mxu3 %v5465_v4 }
 0x326   :  { %1425 = vmatpush.msra.mxu0 %v5125_v31  ;;  %1445 = vmatpush.msra.mxu1 %v5131_v36 }
 0x327   :  { %1465 = vmatpush.msrb.mxu2 %v5473_v22  ;;  %1485 = vmatpush.msrb.mxu3 %v5479_v25 }
 0x328   :  { %1426 = vmatpush.msra.mxu0 %v5303_v5  ;;  %1446 = vmatpush.msra.mxu1 %v5309_v62 }
 0x329   :  { %1466 = vmatpush.msrb.mxu2 %v5487_v11  ;;  %1486 = vmatpush.msrb.mxu3 %v5493_v1 }
 0x32a   :  { %1427 = vmatpush.msra.mxu0 %v5317_v12  ;;  %1447 = vmatpush.msra.mxu1 %v5323_v17  ;;  %v7166_v12 = vld [vmem:[#allocation38_spill] sm:$0xff] }
 0x32b   :  { %1467 = vmatpush.msrb.mxu2 %v5501_v53  ;;  %1487 = vmatpush.msrb.mxu3 %v5507_v7 }
 0x32c   :  { %1428 = vmatpush.msra.mxu0 %v7149_v54  ;;  %1448 = vmatpush.msra.mxu1 %v7150_v23 }
 0x32d   :  { %1468 = vmatpush.msrb.mxu2 %v5515_v18  ;;  %1488 = vmatpush.msrb.mxu3 %v5521_v33  ;;  %v7164_v33 = vld [vmem:[#allocation20_spill] sm:$0xff] }
 0x32e   :  { %1429 = vmatpush.msra.mxu0 %v7153_v21  ;;  %1449 = vmatpush.msra.mxu1 %v7154_v24  ;;  %v7161_v24 = vld [vmem:[#allocation29_spill] sm:$0xff] }
 0x32f   :  { %1469 = vmatpush.msrb.mxu2 %v5529_v28  ;;  %1489 = vmatpush.msrb.mxu3 %v5535_v50  ;;  %v5549_v28 = vld [vmem:[%s6855_s4 + $0x18] sm:$0xff]  ;;  %v7162_v50 = vld [vmem:[#allocation19_spill] sm:$0xff] }
 0x330   :  { %1430 = vmatpush.msra.mxu0 %v7157_v39  ;;  %1450 = vmatpush.msra.mxu1 %v7158_v20  ;;  %7160 = vst [vmem:[#allocation62_spill] sm:$0xff] %v5549_v28  ;;  %v538_v21 = vadd.f32 %v7162_v50, %v7161_v24  ;;  %v7163_v39 = vld [vmem:[#allocation30_spill] sm:$0xff] }
 0x331   :  { %1470 = vmatpush.msrb.mxu2 %v5543_v32  ;;  %1490 = vmatpush.msrb.mxu3 %v5549_v28  ;;  %v579_v20 = vadd.f32 %v7164_v33, %v7163_v39  ;;  %v7165_v32 = vld [vmem:[#allocation31_spill] sm:$0xff] }
 0x332   :  { %v661_v1 = vadd.f32 %v7166_v12, %v7165_v32 }
 0x38d   :  { %v1136_v18 = vpop.f32.mrf.mxu0  ;;  %v1156_v23 = vpop.f32.mrf.mxu1 }
 0x38e   :  { %v1199_v54 = vadd.f32 %v1136_v18, %v538_v21  ;;  %v1200_v7 = vadd.f32 %v1156_v23, %v579_v20  ;;  %v7167_v23 = vld [vmem:[#allocation32_spill] sm:$0xff] }
 0x390   :  { %v3433_v53 = vmul.f32 -1.442695, %v1199_v54  ;;  %v3434_v17 = vmul.f32 -1.442695, %v1200_v7  ;;  %v7168_v54 = vld [vmem:[#allocation37_spill] sm:$0xff] }
 0x391   :  { %v620_v7 = vadd.f32 %v7168_v54, %v7167_v23 }
 0x392   :  { %3563 = vpow2.f32 %v3433_v53 }
 0x393   :  { %3565 = vpow2.f32 %v3434_v17 }
 0x394   :  { %v1196_v11 = vpop.f32.mrf.mxu3  ;;  %v1176_v33 = vpop.f32.mrf.mxu2 }
 0x395   :  { %v1202_v62 = vadd.f32 %v1196_v11, %v661_v1  ;;  %v1201_v20 = vadd.f32 %v1176_v33, %v620_v7 }
 0x397   :  { %v3435_v28 = vmul.f32 -1.442695, %v1202_v62 }
 0x398   :  { %v3564_v5 = vpop.eup %3563 }
 0x399   :  { %v3566_v25 = vpop.eup %3565  ;;  %v1206_v50 = vadd.f32 1.0, %v3564_v5  ;;  %3567 = vpow2.f32 %v3435_v28 }
 0x39a   :  { %v1225_v24 = vadd.f32 1.0, %v3566_v25 }
 0x39b   :  { %3569 = vrcp.f32 %v1206_v50  ;;  %v1218_v32 = vand.u32 2147483648, %v1206_v50  ;;  %v1216_v28 = vand.u32 2147483647, %v1206_v50  ;;  %vm1212_vm6 = vweird.f32 %v1206_v50 }
 0x39c   :  { %3571 = vrcp.f32 %v1225_v24  ;;  %v1237_v5 = vand.u32 2147483648, %v1225_v24  ;;  %v1235_v22 = vand.u32 2147483647, %v1225_v24  ;;  %vm1231_vm7 = vweird.f32 %v1225_v24 }
 0x39d   :  { %v1219_v33 = vor.u32 1.1754944e-38, %v1218_v32  ;;  %vm1217_vm10 = vcmp.eq.f32.partialorder %v1216_v28, 8.507059e+37 }
 0x39e   :  { %vm1236_vm11 = vcmp.eq.f32.partialorder %v1235_v22, 8.507059e+37 }
 0x39f   :  { %v3568_v18 = vpop.eup %3567 }
 0x3a0   :  { %v1245_v53 = vadd.f32 1.0, %v3568_v18 }
 0x3a1   :  { %v3570_v21 = vpop.eup %3569 }
 0x3a2   :  { %v3572_v12 = vpop.eup %3571  ;;  %v1208_v17 = vmul.f32 %v3570_v21, %v1206_v50  ;;  %3573 = vrcp.f32 %v1245_v53  ;;  %vm1213_vm4 = vweird.f32 %v3570_v21  ;;  %v1257_v32 = vand.u32 2147483648, %v1245_v53 }
 0x3a3   :  { %v1227_v11 = vmul.f32 %v3572_v12, %v1225_v24  ;;  %3575 = vtanh.f32 %v1201_v20  ;;  %vm1232_vm5 = vweird.f32 %v3572_v12  ;;  %vm1214_vm8 = vmor %vm1212_vm6, %vm1213_vm4  ;;  %vm1251_vm13 = vweird.f32 %v1245_v53 }
 0x3a4   :  { %v1209_v62 = vsub.f32 1.0, %v1208_v17  ;;  %vm1233_vm9 = vmor %vm1231_vm7, %vm1232_vm5  ;;  %v1238_v17 = vor.u32 1.1754944e-38, %v1237_v5  ;;  %v1258_v5 = vor.u32 1.1754944e-38, %v1257_v32  ;;  %v7200_v32 = vld [vmem:[#allocation31_spill] sm:$0xff] }
 0x3a5   :  { %v1228_v1 = vsub.f32 1.0, %v1227_v11 }
 0x3a6   :  { %v1210_v25 = vmul.f32 %v3570_v21, %v1209_v62 }
 0x3a7   :  { %v1229_v39 = vmul.f32 %v3572_v12, %v1228_v1 }
 0x3a8   :  { %v3574_v36 = vpop.eup %3573  ;;  %v1211_v54 = vadd.f32 %v3570_v21, %v1210_v25 }
 0x3a9   :  { %v1230_v18 = vadd.f32 %v3572_v12, %v1229_v39  ;;  %v1247_v7 = vmul.f32 %v3574_v36, %v1245_v53  ;;  %v3576_v20 = vpop.eup %3575  ;;  %vm1252_vm12 = vweird.f32 %v3574_v36  ;;  %v1255_v39 = vand.u32 2147483647, %v1245_v53  ;;  %v7196_v53 = vld [vmem:[#allocation29_spill] sm:$0xff] }
 0x3aa   :  { %v1215_v11 = vsel %vm1214_vm8, %v3570_v21, %v1211_v54  ;;  %vm1253_vm14 = vmor %vm1251_vm13, %vm1252_vm12  ;;  %v7197_v54 = vld [vmem:[#allocation21_spill] sm:$0xff] }
 0x3ab   :  { %v1220_v23 = vsel %vm1217_vm10, %v1219_v33, %v1215_v11  ;;  %v1234_v62 = vsel %vm1233_vm9, %v3572_v12, %v1230_v18  ;;  %v1248_v31 = vsub.f32 1.0, %v1247_v7  ;;  %vm1256_vm15 = vcmp.eq.f32.partialorder %v1255_v39, 8.507059e+37  ;;  %v7198_v18 = vld [vmem:[#allocation30_spill] sm:$0xff]  ;;  %v7201_v39 = vld [vmem:[#allocation40_spill] sm:$0xff] }
 0x3ac   :  { %v1239_v1 = vsel %vm1236_vm11, %v1238_v17, %v1234_v62  ;;  %v1262_v4 = vmul.f32 %v3576_v20, %v1220_v23  ;;  %v7195_v23 = vld [vmem:[#allocation62_spill] sm:$0xff]  ;;  %v541_v33 = vadd.f32 %v7197_v54, %v7196_v53 }
 0x3ad   :  { %v1261_v14 = vmul.f32 %v1239_v1, %v5379_v45  ;;  %v1249_v25 = vmul.f32 %v3574_v36, %v1248_v31  ;;  %v7190_v31 = vld [vmem:[#allocation59_spill] sm:$0xff]  ;;  %v7199_v7 = vld [vmem:[#allocation22_spill] sm:$0xff] }
 0x3ae   :  { %v7192_v45 = vld [vmem:[#allocation11_spill] sm:$0xff]  ;;  %v582_v17 = vadd.f32 %v7199_v7, %v7198_v18 }
 0x3af   :  { %v5561_v50 = vadd.f32 %v1262_v4, %v1261_v14  ;;  %v1250_v24 = vadd.f32 %v3574_v36, %v1249_v25  ;;  %v7193_v14 = vld [vmem:[#allocation12_spill] sm:$0xff]  ;;  %v7194_v4 = vld [vmem:[#allocation61_spill] sm:$0xff] }
 0x3b1   :  { %3577 = vtanh.f32 %v5561_v50  ;;  %v1254_v21 = vsel %vm1253_vm14, %v3574_v36, %v1250_v24  ;;  %v7191_v36 = vld [vmem:[#allocation60_spill] sm:$0xff] }
 0x3b2   :  { %v1259_v12 = vsel %vm1256_vm15, %v1258_v5, %v1254_v21  ;;  %v664_v21 = vadd.f32 %v7201_v39, %v7200_v32 }
 0x3b7   :  { %v3578_v22 = vpop.eup %3577 }
 0x3b8   :  { %v5564_v28 = vmul.f32 %v3578_v22, %v1259_v12 }
 0x3ba   :  { %7169 = vst [vmem:[#allocation19_spill] sm:$0xff] %v5564_v28  ;;  %1283 = vmatmul.f32.vlgmr.msrb.gmra.mxu0 %v5564_v28  ;;  %1303 = vmatmul.f32.vlgmr.msrb.gmra.mxu1 %v5564_v28 }
 0x3bb   :  { %1323 = vmatmul.f32.vlgmr.msra.gmra.mxu2 %v5564_v28  ;;  %1343 = vmatmul.f32.vlgmr.msra.gmra.mxu3 %v5564_v28 }
 0x3bc   :  { %1563 = vmatpush.msrb.mxu0 %v4985_v29  ;;  %1583 = vmatpush.msrb.mxu1 %v4991_v9  ;;  %v7170_v29 = vld [vmem:[#allocation14_spill] sm:$0xff]  ;;  %v7171_v9 = vld [vmem:[#allocation17_spill] sm:$0xff] }
 0x3bd   :  { %1603 = vmatpush.msra.mxu2 %v5201_v34  ;;  %1623 = vmatpush.msra.mxu3 %v5207_v35 }
 0x3be   :  { %1564 = vmatpush.msrb.mxu0 %v4999_v10  ;;  %1584 = vmatpush.msrb.mxu1 %v5005_v48  ;;  %v7172_v10 = vld [vmem:[#allocation34_spill] sm:$0xff]  ;;  %v7173_v48 = vld [vmem:[#allocation35_spill] sm:$0xff] }
 0x3bf   :  { %1604 = vmatpush.msra.mxu2 %v5215_v19  ;;  %1624 = vmatpush.msra.mxu3 %v5221_v51 }
 0x3c0   :  { %1565 = vmatpush.msrb.mxu0 %v5013_v37  ;;  %1585 = vmatpush.msrb.mxu1 %v5019_v40  ;;  %v7174_v37 = vld [vmem:[#allocation18_spill] sm:$0xff]  ;;  %v7175_v40 = vld [vmem:[#allocation36_spill] sm:$0xff] }
 0x3c1   :  { %1605 = vmatpush.msra.mxu2 %v5229_v41  ;;  %1625 = vmatpush.msra.mxu3 %v5235_v13 }
 0x3c2   :  { %1566 = vmatpush.msrb.mxu0 %v5027_v46  ;;  %1586 = vmatpush.msrb.mxu1 %v5033_v47  ;;  %v7176_v46 = vld [vmem:[#allocation16_spill] sm:$0xff]  ;;  %v7177_v47 = vld [vmem:[#allocation47_spill] sm:$0xff] }
 0x3c3   :  { %1606 = vmatpush.msra.mxu2 %v5243_v43  ;;  %1626 = vmatpush.msra.mxu3 %v5249_v59 }
 0x3c4   :  { %1567 = vmatpush.msrb.mxu0 %v5041_v61  ;;  %1587 = vmatpush.msrb.mxu1 %v5047_v0  ;;  %v7178_v61 = vld [vmem:[#allocation10_spill] sm:$0xff] }
 0x3c5   :  { %1607 = vmatpush.msra.mxu2 %v5257_v60  ;;  %1627 = vmatpush.msra.mxu3 %v5263_v42  ;;  %v7179_v0 = vld [vmem:[#allocation54_spill] sm:$0xff] }
 0x3c6   :  { %1568 = vmatpush.msrb.mxu0 %v5055_v15  ;;  %1588 = vmatpush.msrb.mxu1 %v5061_v16  ;;  %v7180_v15 = vld [vmem:[#allocation48_spill] sm:$0xff]  ;;  %v7181_v16 = vld [vmem:[#allocation49_spill] sm:$0xff] }
 0x3c7   :  { %1608 = vmatpush.msra.mxu2 %v5271_v2  ;;  %1628 = vmatpush.msra.mxu3 %v5277_v3 }
 0x3c8   :  { %1569 = vmatpush.msrb.mxu0 %v5069_v26  ;;  %1589 = vmatpush.msrb.mxu1 %v5075_v27  ;;  %v7182_v26 = vld [vmem:[#allocation55_spill] sm:$0xff]  ;;  %v7183_v27 = vld [vmem:[#allocation56_spill] sm:$0xff] }
 0x3c9   :  { %1609 = vmatpush.msra.mxu2 %v5417_v58  ;;  %1629 = vmatpush.msra.mxu3 %v5423_v38 }
 0x3ca   :  { %1570 = vmatpush.msrb.mxu0 %v5083_v56  ;;  %1590 = vmatpush.msrb.mxu1 %v5089_v57  ;;  %v7184_v56 = vld [vmem:[#allocation50_spill] sm:$0xff]  ;;  %v7185_v57 = vld [vmem:[#allocation51_spill] sm:$0xff] }
 0x3cb   :  { %1610 = vmatpush.msra.mxu2 %v5431_v6  ;;  %1630 = vmatpush.msra.mxu3 %v5437_v52 }
 0x3cc   :  { %1571 = vmatpush.msrb.mxu0 %v5097_v55  ;;  %1591 = vmatpush.msrb.mxu1 %v5103_v49  ;;  %v7186_v55 = vld [vmem:[#allocation57_spill] sm:$0xff]  ;;  %v7187_v49 = vld [vmem:[#allocation58_spill] sm:$0xff] }
 0x3cd   :  { %1611 = vmatpush.msra.mxu2 %v5445_v8  ;;  %1631 = vmatpush.msra.mxu3 %v5451_v44 }
 0x3ce   :  { %1572 = vmatpush.msrb.mxu0 %v5111_v63  ;;  %1592 = vmatpush.msrb.mxu1 %v5117_v30  ;;  %v7188_v63 = vld [vmem:[#allocation52_spill] sm:$0xff]  ;;  %v7189_v30 = vld [vmem:[#allocation53_spill] sm:$0xff] }
 0x3cf   :  { %1612 = vmatpush.msra.mxu2 %v7170_v29  ;;  %1632 = vmatpush.msra.mxu3 %v7171_v9 }
 0x3d0   :  { %1573 = vmatpush.msrb.mxu0 %v7172_v10  ;;  %1593 = vmatpush.msrb.mxu1 %v7173_v48 }
 0x3d1   :  { %1613 = vmatpush.msra.mxu2 %v7174_v37  ;;  %1633 = vmatpush.msra.mxu3 %v7175_v40 }
 0x3d2   :  { %1574 = vmatpush.msrb.mxu0 %v7176_v46  ;;  %1594 = vmatpush.msrb.mxu1 %v7177_v47 }
 0x3d3   :  { %1614 = vmatpush.msra.mxu2 %v7178_v61  ;;  %1634 = vmatpush.msra.mxu3 %v7179_v0 }
 0x3d4   :  { %1575 = vmatpush.msrb.mxu0 %v7180_v15  ;;  %1595 = vmatpush.msrb.mxu1 %v7181_v16 }
 0x3d5   :  { %1615 = vmatpush.msra.mxu2 %v7182_v26  ;;  %1635 = vmatpush.msra.mxu3 %v7183_v27 }
 0x3d6   :  { %1576 = vmatpush.msrb.mxu0 %v7184_v56  ;;  %1596 = vmatpush.msrb.mxu1 %v7185_v57 }
 0x3d7   :  { %1616 = vmatpush.msra.mxu2 %v7186_v55  ;;  %1636 = vmatpush.msra.mxu3 %v7187_v49 }
 0x3d8   :  { %1577 = vmatpush.msrb.mxu0 %v7188_v63  ;;  %1597 = vmatpush.msrb.mxu1 %v7189_v30 }
 0x3d9   :  { %1617 = vmatpush.msra.mxu2 %v7190_v31  ;;  %1637 = vmatpush.msra.mxu3 %v7191_v36 }
 0x3da   :  { %1578 = vmatpush.msrb.mxu0 %v7192_v45  ;;  %1598 = vmatpush.msrb.mxu1 %v7193_v14 }
 0x3db   :  { %1618 = vmatpush.msra.mxu2 %v7194_v4  ;;  %1638 = vmatpush.msra.mxu3 %v7195_v23 }
 0x437   :  { %v1284_v11 = vpop.f32.mrf.mxu0  ;;  %v1304_v20 = vpop.f32.mrf.mxu1 }
 0x438   :  { %v1347_v62 = vadd.f32 %v1284_v11, %v541_v33  ;;  %v1348_v1 = vadd.f32 %v1304_v20, %v582_v17  ;;  %v7202_v17 = vld [vmem:[#allocation32_spill] sm:$0xff]  ;;  %v7203_v11 = vld [vmem:[#allocation39_spill] sm:$0xff] }
 0x439   :  { %v623_v20 = vadd.f32 %v7203_v11, %v7202_v17 }
 0x43a   :  { %v3436_v25 = vmul.f32 -1.442695, %v1347_v62  ;;  %v3437_v24 = vmul.f32 -1.442695, %v1348_v1 }
 0x43c   :  { %3579 = vpow2.f32 %v3436_v25 }
 0x43d   :  { %3581 = vpow2.f32 %v3437_v24 }
 0x43e   :  { %v1344_v5 = vpop.f32.mrf.mxu3  ;;  %v1324_v7 = vpop.f32.mrf.mxu2 }
 0x43f   :  { %v1350_v22 = vadd.f32 %v1344_v5, %v664_v21  ;;  %v1349_v25 = vadd.f32 %v1324_v7, %v623_v20 }
 0x441   :  { %v3438_v12 = vmul.f32 -1.442695, %v1350_v22 }
 0x442   :  { %v3580_v10 = vpop.eup %3579 }
 0x443   :  { %v3582_v48 = vpop.eup %3581  ;;  %v1354_v54 = vadd.f32 1.0, %v3580_v10  ;;  %3583 = vpow2.f32 %v3438_v12 }
 0x444   :  { %v1373_v28 = vadd.f32 1.0, %v3582_v48 }
 0x445   :  { %3585 = vrcp.f32 %v1354_v54  ;;  %v1366_v32 = vand.u32 2147483648, %v1354_v54  ;;  %v1364_v48 = vand.u32 2147483647, %v1354_v54  ;;  %vm1360_vm2 = vweird.f32 %v1354_v54 }
 0x446   :  { %3587 = vrcp.f32 %v1373_v28  ;;  %v1385_v12 = vand.u32 2147483648, %v1373_v28  ;;  %v1383_v53 = vand.u32 2147483647, %v1373_v28  ;;  %vm1379_vm3 = vweird.f32 %v1373_v28 }
 0x447   :  { %v1367_v7 = vor.u32 1.1754944e-38, %v1366_v32  ;;  %vm1365_vm6 = vcmp.eq.f32.partialorder %v1364_v48, 8.507059e+37 }
 0x448   :  { %vm1384_vm7 = vcmp.eq.f32.partialorder %v1383_v53, 8.507059e+37 }
 0x449   :  { %v3584_v33 = vpop.eup %3583 }
 0x44a   :  { %v1393_v62 = vadd.f32 1.0, %v3584_v33 }
 0x44b   :  { %v3586_v1 = vpop.eup %3585 }
 0x44c   :  { %v3588_v39 = vpop.eup %3587  ;;  %v1356_v24 = vmul.f32 %v3586_v1, %v1354_v54  ;;  %3589 = vrcp.f32 %v1393_v62  ;;  %vm1361_vm0 = vweird.f32 %v3586_v1  ;;  %vm1399_vm9 = vweird.f32 %v1393_v62 }
 0x44d   :  { %v1375_v21 = vmul.f32 %v3588_v39, %v1373_v28  ;;  %3591 = vtanh.f32 %v1349_v25  ;;  %vm1380_vm1 = vweird.f32 %v3588_v39  ;;  %vm1362_vm4 = vmor %vm1360_vm2, %vm1361_vm0  ;;  %v1403_v32 = vand.u32 2147483647, %v1393_v62 }
 0x44e   :  { %v1357_v5 = vsub.f32 1.0, %v1356_v24  ;;  %vm1381_vm5 = vmor %vm1379_vm3, %vm1380_vm1  ;;  %v1386_v24 = vor.u32 1.1754944e-38, %v1385_v12 }
 0x44f   :  { %v1376_v22 = vsub.f32 1.0, %v1375_v21  ;;  %vm1404_vm11 = vcmp.eq.f32.partialorder %v1403_v32, 8.507059e+37 }
 0x450   :  { %v1358_v10 = vmul.f32 %v3586_v1, %v1357_v5 }
 0x451   :  { %v1377_v18 = vmul.f32 %v3588_v39, %v1376_v22 }
 0x452   :  { %v3590_v23 = vpop.eup %3589  ;;  %v1359_v11 = vadd.f32 %v3586_v1, %v1358_v10 }
 0x453   :  { %v1378_v33 = vadd.f32 %v3588_v39, %v1377_v18  ;;  %v1395_v20 = vmul.f32 %v3590_v23, %v1393_v62  ;;  %v3592_v25 = vpop.eup %3591  ;;  %vm1400_vm8 = vweird.f32 %v3590_v23  ;;  %v1405_v18 = vand.u32 2147483648, %v1393_v62 }
 0x454   :  { %v1363_v21 = vsel %vm1362_vm4, %v3586_v1, %v1359_v11  ;;  %vm1401_vm10 = vmor %vm1399_vm9, %vm1400_vm8 }
 0x455   :  { %v1368_v17 = vsel %vm1365_vm6, %v1367_v7, %v1363_v21  ;;  %v1382_v5 = vsel %vm1381_vm5, %v3588_v39, %v1378_v33  ;;  %v1396_v4 = vsub.f32 1.0, %v1395_v20  ;;  %v1406_v12 = vor.u32 1.1754944e-38, %v1405_v18  ;;  %v7214_v21 = vld [vmem:[#allocation32_spill] sm:$0xff] }
 0x456   :  { %v1387_v22 = vsel %vm1384_vm7, %v1386_v24, %v1382_v5  ;;  %v1410_v14 = vmul.f32 %v3592_v25, %v1368_v17  ;;  %v7215_v25 = vld [vmem:[#allocation41_spill] sm:$0xff] }
 0x457   :  { %v1409_v45 = vmul.f32 %v1387_v22, %v5561_v50  ;;  %v1397_v10 = vmul.f32 %v3590_v23, %v1396_v4  ;;  %v3839_v50 = vld [vmem:[%s6855_s4 + $0x1e0] sm:$0xff]  ;;  %v3842_v4 = vld [vmem:[%s6855_s4 + $0x1c8] sm:$0xff]  ;;  %v626_v5 = vadd.f32 %v7215_v25, %v7214_v21  ;;  %v7216_v25 = vld [vmem:[#allocation25_spill] sm:$0xff] }
 0x459   :  { %v5643_v54 = vadd.f32 %v1410_v14, %v1409_v45  ;;  %v1398_v28 = vadd.f32 %v3590_v23, %v1397_v10  ;;  %v3840_v45 = vld [vmem:[%s6855_s4 + $0x1e8] sm:$0xff]  ;;  %v3841_v14 = vld [vmem:[%s6855_s4 + $0x1c0] sm:$0xff] }
 0x45b   :  { %3593 = vtanh.f32 %v5643_v54  ;;  %v1402_v1 = vsel %vm1401_vm10, %v3590_v23, %v1398_v28 }
 0x45c   :  { %v1407_v39 = vsel %vm1404_vm11, %v1406_v12, %v1402_v1 }
 0x461   :  { %v3594_v53 = vpop.eup %3593 }
 0x462   :  { %v5646_v48 = vmul.f32 %v3594_v53, %v1407_v39 }
 0x464   :  { %1431 = vmatmul.f32.vlgmr.msra.gmra.mxu0 %v5646_v48  ;;  %1451 = vmatmul.f32.vlgmr.msra.gmra.mxu1 %v5646_v48 }
 0x465   :  { %1471 = vmatmul.f32.vlgmr.msrb.gmra.mxu2 %v5646_v48  ;;  %1491 = vmatmul.f32.vlgmr.msrb.gmra.mxu3 %v5646_v48 }
 0x466   :  { %1711 = vmatpush.msra.mxu0 %v3839_v50  ;;  %1731 = vmatpush.msra.mxu1 %v3840_v45 }
 0x467   :  { %1751 = vmatpush.msrb.mxu2 %v5201_v34  ;;  %1771 = vmatpush.msrb.mxu3 %v5207_v35  ;;  %v3843_v34 = vld [vmem:[%s6855_s4 + $0x1a0] sm:$0xff]  ;;  %v3844_v35 = vld [vmem:[%s6855_s4 + $0x1a8] sm:$0xff] }
 0x468   :  { %1712 = vmatpush.msra.mxu0 %v3841_v14  ;;  %1732 = vmatpush.msra.mxu1 %v3842_v4 }
 0x469   :  { %1752 = vmatpush.msrb.mxu2 %v5215_v19  ;;  %1772 = vmatpush.msrb.mxu3 %v5221_v51  ;;  %v3845_v19 = vld [vmem:[%s6855_s4 + $0x180] sm:$0xff]  ;;  %v3846_v51 = vld [vmem:[%s6855_s4 + $0x188] sm:$0xff] }
 0x46a   :  { %1713 = vmatpush.msra.mxu0 %v3843_v34  ;;  %1733 = vmatpush.msra.mxu1 %v3844_v35 }
 0x46b   :  { %1753 = vmatpush.msrb.mxu2 %v5229_v41  ;;  %1773 = vmatpush.msrb.mxu3 %v5235_v13  ;;  %v3847_v41 = vld [vmem:[%s6855_s4 + $0x160] sm:$0xff]  ;;  %v3848_v13 = vld [vmem:[%s6855_s4 + $0x168] sm:$0xff] }
 0x46c   :  { %1714 = vmatpush.msra.mxu0 %v3845_v19  ;;  %1734 = vmatpush.msra.mxu1 %v3846_v51 }
 0x46d   :  { %1754 = vmatpush.msrb.mxu2 %v5243_v43  ;;  %1774 = vmatpush.msrb.mxu3 %v5249_v59  ;;  %v3849_v43 = vld [vmem:[%s6855_s4 + $0x140] sm:$0xff]  ;;  %v3850_v59 = vld [vmem:[%s6855_s4 + $0x148] sm:$0xff] }
 0x46e   :  { %1715 = vmatpush.msra.mxu0 %v3847_v41  ;;  %1735 = vmatpush.msra.mxu1 %v3848_v13 }
 0x46f   :  { %1755 = vmatpush.msrb.mxu2 %v5257_v60  ;;  %1775 = vmatpush.msrb.mxu3 %v5263_v42  ;;  %v3851_v60 = vld [vmem:[%s6855_s4 + $0x120] sm:$0xff]  ;;  %v3852_v42 = vld [vmem:[%s6855_s4 + $0x128] sm:$0xff] }
 0x470   :  { %1716 = vmatpush.msra.mxu0 %v3849_v43  ;;  %1736 = vmatpush.msra.mxu1 %v3850_v59 }
 0x471   :  { %1756 = vmatpush.msrb.mxu2 %v5271_v2  ;;  %1776 = vmatpush.msrb.mxu3 %v5277_v3  ;;  %v3853_v2 = vld [vmem:[%s6855_s4 + $0x100] sm:$0xff]  ;;  %v3854_v3 = vld [vmem:[%s6855_s4 + $0x108] sm:$0xff] }
 0x472   :  { %1717 = vmatpush.msra.mxu0 %v3851_v60  ;;  %1737 = vmatpush.msra.mxu1 %v3852_v42 }
 0x473   :  { %1757 = vmatpush.msrb.mxu2 %v5417_v58  ;;  %1777 = vmatpush.msrb.mxu3 %v5423_v38  ;;  %v3855_v58 = vld [vmem:[%s6855_s4 + $0xe0] sm:$0xff]  ;;  %v3856_v38 = vld [vmem:[%s6855_s4 + $0xe8] sm:$0xff] }
 0x474   :  { %1718 = vmatpush.msra.mxu0 %v3853_v2  ;;  %1738 = vmatpush.msra.mxu1 %v3854_v3 }
 0x475   :  { %1758 = vmatpush.msrb.mxu2 %v5431_v6  ;;  %1778 = vmatpush.msrb.mxu3 %v5437_v52  ;;  %v3857_v6 = vld [vmem:[%s6855_s4 + $0xc0] sm:$0xff]  ;;  %v3858_v52 = vld [vmem:[%s6855_s4 + $0xc8] sm:$0xff] }
 0x476   :  { %1719 = vmatpush.msra.mxu0 %v3855_v58  ;;  %1739 = vmatpush.msra.mxu1 %v3856_v38 }
 0x477   :  { %1759 = vmatpush.msrb.mxu2 %v5445_v8  ;;  %1779 = vmatpush.msrb.mxu3 %v5451_v44  ;;  %v3859_v8 = vld [vmem:[%s6855_s4 + $0xa0] sm:$0xff]  ;;  %v3860_v44 = vld [vmem:[%s6855_s4 + $0xa8] sm:$0xff] }
 0x478   :  { %1720 = vmatpush.msra.mxu0 %v3857_v6  ;;  %1740 = vmatpush.msra.mxu1 %v3858_v52 }
 0x479   :  { %1760 = vmatpush.msrb.mxu2 %v7170_v29  ;;  %1780 = vmatpush.msrb.mxu3 %v7171_v9  ;;  %v7204_v29 = vld [vmem:[#allocation11_spill] sm:$0xff]  ;;  %v7205_v9 = vld [vmem:[#allocation12_spill] sm:$0xff] }
 0x47a   :  { %1721 = vmatpush.msra.mxu0 %v3859_v8  ;;  %1741 = vmatpush.msra.mxu1 %v3860_v44 }
 0x47b   :  { %1761 = vmatpush.msrb.mxu2 %v7174_v37  ;;  %1781 = vmatpush.msrb.mxu3 %v7175_v40  ;;  %v7206_v37 = vld [vmem:[#allocation61_spill] sm:$0xff]  ;;  %v7207_v40 = vld [vmem:[#allocation62_spill] sm:$0xff] }
 0x47c   :  { %1722 = vmatpush.msra.mxu0 %v7176_v46  ;;  %1742 = vmatpush.msra.mxu1 %v7177_v47  ;;  %v7208_v46 = vld [vmem:[#allocation29_spill] sm:$0xff]  ;;  %v7209_v47 = vld [vmem:[#allocation23_spill] sm:$0xff] }
 0x47d   :  { %1762 = vmatpush.msrb.mxu2 %v7178_v61  ;;  %1782 = vmatpush.msrb.mxu3 %v7179_v0  ;;  %v544_v61 = vadd.f32 %v7209_v47, %v7208_v46  ;;  %v7210_v0 = vld [vmem:[#allocation30_spill] sm:$0xff] }
 0x47e   :  { %1723 = vmatpush.msra.mxu0 %v7180_v15  ;;  %1743 = vmatpush.msra.mxu1 %v7181_v16  ;;  %v7211_v15 = vld [vmem:[#allocation24_spill] sm:$0xff] }
 0x47f   :  { %1763 = vmatpush.msrb.mxu2 %v7182_v26  ;;  %1783 = vmatpush.msrb.mxu3 %v7183_v27  ;;  %v585_v16 = vadd.f32 %v7211_v15, %v7210_v0 }
 0x480   :  { %1724 = vmatpush.msra.mxu0 %v7184_v56  ;;  %1744 = vmatpush.msra.mxu1 %v7185_v57 }
 0x481   :  { %1764 = vmatpush.msrb.mxu2 %v7186_v55  ;;  %1784 = vmatpush.msrb.mxu3 %v7187_v49 }
 0x482   :  { %1725 = vmatpush.msra.mxu0 %v7188_v63  ;;  %1745 = vmatpush.msra.mxu1 %v7189_v30  ;;  %v7212_v63 = vld [vmem:[#allocation31_spill] sm:$0xff]  ;;  %v7213_v30 = vld [vmem:[#allocation42_spill] sm:$0xff] }
 0x483   :  { %1765 = vmatpush.msrb.mxu2 %v7190_v31  ;;  %1785 = vmatpush.msrb.mxu3 %v7191_v36  ;;  %v667_v31 = vadd.f32 %v7213_v30, %v7212_v63  ;;  %v1919_v30 = vld [vmem:[#allocation5 + $0x1a0] sm:$0xff] }
 0x484   :  { %1726 = vmatpush.msra.mxu0 %v7204_v29  ;;  %1746 = vmatpush.msra.mxu1 %v7205_v9 }
 0x485   :  { %1766 = vmatpush.msrb.mxu2 %v7206_v37  ;;  %1786 = vmatpush.msrb.mxu3 %v7207_v40 }
 0x4e1   :  { %v1432_v26 = vpop.f32.mrf.mxu0  ;;  %v1452_v27 = vpop.f32.mrf.mxu1 }
 0x4e2   :  { %v1495_v56 = vadd.f32 %v1432_v26, %v544_v61  ;;  %v1496_v57 = vadd.f32 %v1452_v27, %v585_v16  ;;  %v1928_v16 = vld [vmem:[#allocation5 + $0x1e8] sm:$0xff]  ;;  %v1929_v26 = vld [vmem:[#allocation5 + $0x1f0] sm:$0xff]  ;;  %v1930_v27 = vld [vmem:[#allocation5 + $0x1f8] sm:$0xff] }
 0x4e4   :  { %v3439_v55 = vmul.f32 -1.442695, %v1495_v56  ;;  %v3440_v49 = vmul.f32 -1.442695, %v1496_v57  ;;  %v1923_v56 = vld [vmem:[#allocation5 + $0x1c0] sm:$0xff]  ;;  %v1924_v57 = vld [vmem:[#allocation5 + $0x1c8] sm:$0xff] }
 0x4e6   :  { %3595 = vpow2.f32 %v3439_v55  ;;  %v1925_v55 = vld [vmem:[#allocation5 + $0x1d0] sm:$0xff] }
 0x4e7   :  { %3597 = vpow2.f32 %v3440_v49  ;;  %v1926_v49 = vld [vmem:[#allocation5 + $0x1d8] sm:$0xff] }
 0x4e8   :  { %v1492_v36 = vpop.f32.mrf.mxu3  ;;  %v1472_v20 = vpop.f32.mrf.mxu2 }
 0x4e9   :  { %v1498_v23 = vadd.f32 %v1492_v36, %v667_v31  ;;  %v1497_v28 = vadd.f32 %v1472_v20, %v626_v5  ;;  %v1920_v31 = vld [vmem:[#allocation5 + $0x1a8] sm:$0xff]  ;;  %v1921_v36 = vld [vmem:[#allocation5 + $0x1b0] sm:$0xff]  ;;  %v547_v5 = vadd.f32 %v7216_v25, %v7208_v46 }
 0x4ea   :  { %v1912_v20 = vld [vmem:[#allocation5 + $0x168] sm:$0xff] }
 0x4eb   :  { %v3441_v17 = vmul.f32 -1.442695, %v1498_v23  ;;  %v1922_v23 = vld [vmem:[#allocation5 + $0x1b8] sm:$0xff] }
 0x4ec   :  { %v3596_v62 = vpop.eup %3595 }
 0x4ed   :  { %v3598_v11 = vpop.eup %3597  ;;  %v1502_v7 = vadd.f32 1.0, %v3596_v62  ;;  %3599 = vpow2.f32 %v3441_v17  ;;  %v1915_v17 = vld [vmem:[#allocation5 + $0x180] sm:$0xff]  ;;  %v1916_v62 = vld [vmem:[#allocation5 + $0x188] sm:$0xff] }
 0x4ee   :  { %v1521_v33 = vadd.f32 1.0, %v3598_v11  ;;  %v1917_v11 = vld [vmem:[#allocation5 + $0x190] sm:$0xff] }
 0x4ef   :  { %3601 = vrcp.f32 %v1502_v7  ;;  %v1514_v39 = vand.u32 2147483648, %v1502_v7  ;;  %v1512_v14 = vand.u32 2147483647, %v1502_v7  ;;  %vm1508_vm14 = vweird.f32 %v1502_v7 }
 0x4f0   :  { %3603 = vrcp.f32 %v1521_v33  ;;  %v1533_v50 = vand.u32 2147483648, %v1521_v33  ;;  %v1531_v34 = vand.u32 2147483647, %v1521_v33  ;;  %vm1527_vm15 = vweird.f32 %v1521_v33 }
 0x4f1   :  { %v1515_v51 = vor.u32 1.1754944e-38, %v1514_v39  ;;  %vm1513_vm2 = vcmp.eq.f32.partialorder %v1512_v14, 8.507059e+37  ;;  %v1903_v14 = vld [vmem:[#allocation5 + $0x120] sm:$0xff] }
 0x4f2   :  { %v1534_v43 = vor.u32 1.1754944e-38, %v1533_v50  ;;  %vm1532_vm3 = vcmp.eq.f32.partialorder %v1531_v34, 8.507059e+37  ;;  %v1905_v34 = vld [vmem:[#allocation5 + $0x130] sm:$0xff] }
 0x4f3   :  { %v3600_v24 = vpop.eup %3599 }
 0x4f4   :  { %v1541_v22 = vadd.f32 1.0, %v3600_v24  ;;  %v1913_v24 = vld [vmem:[#allocation5 + $0x170] sm:$0xff] }
 0x4f5   :  { %v3602_v10 = vpop.eup %3601 }
 0x4f6   :  { %v3604_v18 = vpop.eup %3603  ;;  %v1504_v32 = vmul.f32 %v3602_v10, %v1502_v7  ;;  %3605 = vrcp.f32 %v1541_v22  ;;  %vm1509_vm12 = vweird.f32 %v3602_v10  ;;  %v1553_v29 = vand.u32 2147483648, %v1541_v22  ;;  %v1918_v7 = vld [vmem:[#allocation5 + $0x198] sm:$0xff] }
 0x4f7   :  { %v1523_v1 = vmul.f32 %v3604_v18, %v1521_v33  ;;  %3607 = vtanh.f32 %v1497_v28  ;;  %vm1528_vm13 = vweird.f32 %v3604_v18  ;;  %vm1510_vm0 = vmor %vm1508_vm14, %vm1509_vm12  ;;  %vm1547_vm5 = vweird.f32 %v1541_v22  ;;  %v1911_v33 = vld [vmem:[#allocation5 + $0x160] sm:$0xff]  ;;  %v1914_v28 = vld [vmem:[#allocation5 + $0x178] sm:$0xff] }
 0x4f8   :  { %v1505_v12 = vsub.f32 1.0, %v1504_v32  ;;  %vm1529_vm1 = vmor %vm1527_vm15, %vm1528_vm13  ;;  %v1551_v9 = vand.u32 2147483647, %v1541_v22  ;;  %v1554_v40 = vor.u32 1.1754944e-38, %v1553_v29  ;;  %v1892_v29 = vld [vmem:[#allocation5 + $0xc8] sm:$0xff] }
 0x4f9   :  { %v1524_v53 = vsub.f32 1.0, %v1523_v1  ;;  %v1907_v1 = vld [vmem:[#allocation5 + $0x140] sm:$0xff] }
 0x4fa   :  { %v1506_v45 = vmul.f32 %v3602_v10, %v1505_v12  ;;  %vm1552_vm7 = vcmp.eq.f32.partialorder %v1551_v9, 8.507059e+37  ;;  %v1908_v12 = vld [vmem:[#allocation5 + $0x148] sm:$0xff]  ;;  %v1893_v9 = vld [vmem:[#allocation5 + $0xd0] sm:$0xff] }
 0x4fb   :  { %v1525_v4 = vmul.f32 %v3604_v18, %v1524_v53  ;;  %v1909_v53 = vld [vmem:[#allocation5 + $0x150] sm:$0xff] }
 0x4fc   :  { %v3606_v35 = vpop.eup %3605  ;;  %v1507_v19 = vadd.f32 %v3602_v10, %v1506_v45  ;;  %v1910_v45 = vld [vmem:[#allocation5 + $0x158] sm:$0xff] }
 0x4fd   :  { %v1526_v41 = vadd.f32 %v3604_v18, %v1525_v4  ;;  %v1543_v13 = vmul.f32 %v3606_v35, %v1541_v22  ;;  %v3608_v60 = vpop.eup %3607  ;;  %vm1548_vm4 = vweird.f32 %v3606_v35  ;;  %v7217_v22 = vld [vmem:[#allocation26_spill] sm:$0xff]  ;;  %v1904_v4 = vld [vmem:[#allocation5 + $0x128] sm:$0xff] }
 0x4fe   :  { %v1511_v59 = vsel %vm1510_vm0, %v3602_v10, %v1507_v19  ;;  %vm1549_vm6 = vmor %vm1547_vm5, %vm1548_vm4  ;;  %v588_v10 = vadd.f32 %v7217_v22, %v7210_v0  ;;  %v1873_v22 = vld [vmem:[#allocation5 + $0x30] sm:$0xff] }
 0x4ff   :  { %v1516_v42 = vsel %vm1513_vm2, %v1515_v51, %v1511_v59  ;;  %v1530_v2 = vsel %vm1529_vm1, %v3604_v18, %v1526_v41  ;;  %v1544_v3 = vsub.f32 1.0, %v1543_v13  ;;  %v1906_v51 = vld [vmem:[#allocation5 + $0x138] sm:$0xff]  ;;  %v1899_v41 = vld [vmem:[#allocation5 + $0x100] sm:$0xff]  ;;  %v1900_v13 = vld [vmem:[#allocation5 + $0x108] sm:$0xff] }
 0x500   :  { %v1535_v58 = vsel %vm1532_vm3, %v1534_v43, %v1530_v2  ;;  %v1558_v38 = vmul.f32 %v3608_v60, %v1516_v42  ;;  %v1901_v43 = vld [vmem:[#allocation5 + $0x110] sm:$0xff]  ;;  %v1902_v59 = vld [vmem:[#allocation5 + $0x118] sm:$0xff]  ;;  %v1895_v2 = vld [vmem:[#allocation5 + $0xe0] sm:$0xff] }
 0x501   :  { %v1557_v6 = vmul.f32 %v1535_v58, %v5643_v54  ;;  %v1545_v52 = vmul.f32 %v3606_v35, %v1544_v3  ;;  %v1927_v54 = vld [vmem:[#allocation5 + $0x1e0] sm:$0xff]  ;;  %v7218_v60 = vld [vmem:[#allocation44_spill] sm:$0xff]  ;;  %v1896_v3 = vld [vmem:[#allocation5 + $0xe8] sm:$0xff] }
 0x502   :  { %v670_v42 = vadd.f32 %v7218_v60, %v7212_v63  ;;  %v1897_v58 = vld [vmem:[#allocation5 + $0xf0] sm:$0xff] }
 0x503   :  { %v5769_v8 = vadd.f32 %v1558_v38, %v1557_v6  ;;  %v1546_v44 = vadd.f32 %v3606_v35, %v1545_v52  ;;  %v1898_v6 = vld [vmem:[#allocation5 + $0xf8] sm:$0xff] }
 0x505   :  { %3609 = vtanh.f32 %v5769_v8  ;;  %v1550_v37 = vsel %vm1549_vm6, %v3606_v35, %v1546_v44  ;;  %v1891_v44 = vld [vmem:[#allocation5 + $0xc0] sm:$0xff] }
 0x506   :  { %v1555_v61 = vsel %vm1552_vm7, %v1554_v40, %v1550_v37  ;;  %v1894_v37 = vld [vmem:[#allocation5 + $0xd8] sm:$0xff] }
 0x50b   :  { %v3610_v47 = vpop.eup %3609 }
 0x50c   :  { %v5772_v15 = vmul.f32 %v3610_v47, %v1555_v61  ;;  %v1887_v47 = vld [vmem:[#allocation5 + $0xa0] sm:$0xff]  ;;  %v1888_v61 = vld [vmem:[#allocation5 + $0xa8] sm:$0xff] }
 0x50e   :  { %1579 = vmatmul.f32.vlgmr.msrb.gmra.mxu0 %v5772_v15  ;;  %1599 = vmatmul.f32.vlgmr.msrb.gmra.mxu1 %v5772_v15 }
 0x50f   :  { %1619 = vmatmul.f32.vlgmr.msra.gmra.mxu2 %v5772_v15  ;;  %1639 = vmatmul.f32.vlgmr.msra.gmra.mxu3 %v5772_v15 }
 0x510   :  { %2005 = vmatpush.msrb.mxu0 %v1927_v54  ;;  %2046 = vmatpush.msrb.mxu1 %v1928_v16  ;;  %v1889_v54 = vld [vmem:[#allocation5 + $0xb0] sm:$0xff] }
 0x511   :  { %2087 = vmatpush.msra.mxu2 %v1929_v26  ;;  %2128 = vmatpush.msra.mxu3 %v1930_v27  ;;  %v1890_v26 = vld [vmem:[#allocation5 + $0xb8] sm:$0xff]  ;;  %v1883_v27 = vld [vmem:[#allocation5 + $0x80] sm:$0xff] }
 0x512   :  { %2006 = vmatpush.msrb.mxu0 %v1923_v56  ;;  %2047 = vmatpush.msrb.mxu1 %v1924_v57  ;;  %v1884_v56 = vld [vmem:[#allocation5 + $0x88] sm:$0xff] }
 0x513   :  { %2088 = vmatpush.msra.mxu2 %v1925_v55  ;;  %2129 = vmatpush.msra.mxu3 %v1926_v49  ;;  %v1885_v49 = vld [vmem:[#allocation5 + $0x90] sm:$0xff] }
 0x514   :  { %2007 = vmatpush.msrb.mxu0 %v1919_v30  ;;  %2048 = vmatpush.msrb.mxu1 %v1920_v31  ;;  %v1886_v30 = vld [vmem:[#allocation5 + $0x98] sm:$0xff] }
 0x515   :  { %2089 = vmatpush.msra.mxu2 %v1921_v36  ;;  %2130 = vmatpush.msra.mxu3 %v1922_v23  ;;  %v1879_v36 = vld [vmem:[#allocation5 + $0x60] sm:$0xff]  ;;  %v1880_v23 = vld [vmem:[#allocation5 + $0x68] sm:$0xff] }
 0x516   :  { %2008 = vmatpush.msrb.mxu0 %v1915_v17  ;;  %2049 = vmatpush.msrb.mxu1 %v1916_v62  ;;  %v1881_v17 = vld [vmem:[#allocation5 + $0x70] sm:$0xff]  ;;  %v1882_v62 = vld [vmem:[#allocation5 + $0x78] sm:$0xff] }
 0x517   :  { %2090 = vmatpush.msra.mxu2 %v1917_v11  ;;  %2131 = vmatpush.msra.mxu3 %v1918_v7  ;;  %v1875_v11 = vld [vmem:[#allocation5 + $0x40] sm:$0xff]  ;;  %v1876_v7 = vld [vmem:[#allocation5 + $0x48] sm:$0xff] }
 0x518   :  { %2009 = vmatpush.msrb.mxu0 %v1911_v33  ;;  %2050 = vmatpush.msrb.mxu1 %v1912_v20  ;;  %v1877_v33 = vld [vmem:[#allocation5 + $0x50] sm:$0xff]  ;;  %v1878_v20 = vld [vmem:[#allocation5 + $0x58] sm:$0xff] }
 0x519   :  { %2091 = vmatpush.msra.mxu2 %v1913_v24  ;;  %2132 = vmatpush.msra.mxu3 %v1914_v28  ;;  %v1871_v24 = vld [vmem:[#allocation5 + $0x20] sm:$0xff] }
 0x51a   :  { %2010 = vmatpush.msrb.mxu0 %v1907_v1  ;;  %2051 = vmatpush.msrb.mxu1 %v1908_v12  ;;  %v1867_v1 = vld [vmem:[#allocation5] sm:$0xff]  ;;  %v1868_v12 = vld [vmem:[#allocation5 + $0x8] sm:$0xff] }
 0x51b   :  { %2092 = vmatpush.msra.mxu2 %v1909_v53  ;;  %2133 = vmatpush.msra.mxu3 %v1910_v45 }
 0x51c   :  { %2011 = vmatpush.msrb.mxu0 %v1903_v14  ;;  %2052 = vmatpush.msrb.mxu1 %v1904_v4 }
 0x51d   :  { %2093 = vmatpush.msra.mxu2 %v1905_v34  ;;  %2134 = vmatpush.msra.mxu3 %v1906_v51 }
 0x51e   :  { %2012 = vmatpush.msrb.mxu0 %v1899_v41  ;;  %2053 = vmatpush.msrb.mxu1 %v1900_v13 }
 0x51f   :  { %2094 = vmatpush.msra.mxu2 %v1901_v43  ;;  %2135 = vmatpush.msra.mxu3 %v1902_v59 }
 0x520   :  { %2013 = vmatpush.msrb.mxu0 %v1895_v2  ;;  %2054 = vmatpush.msrb.mxu1 %v1896_v3 }
 0x521   :  { %2095 = vmatpush.msra.mxu2 %v1897_v58  ;;  %2136 = vmatpush.msra.mxu3 %v1898_v6 }
 0x522   :  { %2014 = vmatpush.msrb.mxu0 %v1891_v44  ;;  %2055 = vmatpush.msrb.mxu1 %v1892_v29 }
 0x523   :  { %2096 = vmatpush.msra.mxu2 %v1893_v9  ;;  %2137 = vmatpush.msra.mxu3 %v1894_v37 }
 0x524   :  { %2015 = vmatpush.msrb.mxu0 %v1887_v47  ;;  %2056 = vmatpush.msrb.mxu1 %v1888_v61 }
 0x525   :  { %2097 = vmatpush.msra.mxu2 %v1889_v54  ;;  %2138 = vmatpush.msra.mxu3 %v1890_v26 }
 0x526   :  { %2016 = vmatpush.msrb.mxu0 %v1883_v27  ;;  %2057 = vmatpush.msrb.mxu1 %v1884_v56 }
 0x527   :  { %2098 = vmatpush.msra.mxu2 %v1885_v49  ;;  %2139 = vmatpush.msra.mxu3 %v1886_v30 }
 0x528   :  { %2017 = vmatpush.msrb.mxu0 %v1879_v36  ;;  %2058 = vmatpush.msrb.mxu1 %v1880_v23  ;;  %v7221_v23 = vld [vmem:[#allocation15_spill] sm:$0xff] }
 0x529   :  { %2099 = vmatpush.msra.mxu2 %v1881_v17  ;;  %2140 = vmatpush.msra.mxu3 %v1882_v62  ;;  %v7222_v17 = vld [vmem:[#allocation13_spill] sm:$0xff]  ;;  %v5816_v62 = vld [vmem:[#allocation7 + $0x1e0] sm:$0xff] }
 0x52a   :  { %2018 = vmatpush.msrb.mxu0 %v1875_v11  ;;  %2059 = vmatpush.msrb.mxu1 %v1876_v7  ;;  %7223 = vst [vmem:[#allocation20_spill] sm:$0xff] %v5816_v62  ;;  %v5818_v11 = vld [vmem:[#allocation7 + $0x1e8] sm:$0xff]  ;;  %v5820_v7 = vld [vmem:[#allocation7 + $0x1c0] sm:$0xff] }
 0x52b   :  { %2100 = vmatpush.msra.mxu2 %v1877_v33  ;;  %2141 = vmatpush.msra.mxu3 %v1878_v20  ;;  %v5824_v33 = vld [vmem:[#allocation7 + $0x1c8] sm:$0xff]  ;;  %v5826_v20 = vld [vmem:[#allocation7 + $0x1f8] sm:$0xff] }
 0x52c   :  { %2019 = vmatpush.msrb.mxu0 %v1871_v24  ;;  %7224 = vst [vmem:[#allocation38_spill] sm:$0xff] %v5824_v33  ;;  %v5829_v24 = vld [vmem:[#allocation7 + $0x1a0] sm:$0xff] }
 0x52d   :  { %2101 = vmatpush.msra.mxu2 %v1873_v22  ;;  %v7227_v22 = vld [vmem:[#allocation19_spill] sm:$0xff] }
 0x52e   :  { %2020 = vmatpush.msrb.mxu0 %v1867_v1  ;;  %v5864_v1 = vld [vmem:[#allocation7 + $0x188] sm:$0xff] }
 0x58b   :  { %v1580_v18 = vpop.f32.mrf.mxu0  ;;  %v1600_v32 = vpop.f32.mrf.mxu1 }
 0x58c   :  { %v1643_v39 = vadd.f32 %v1580_v18, %v547_v5  ;;  %v1644_v50 = vadd.f32 %v1600_v32, %v588_v10  ;;  %v1872_v5 = vld [vmem:[#allocation5 + $0x28] sm:$0xff]  ;;  %v1874_v10 = vld [vmem:[#allocation5 + $0x38] sm:$0xff] }
 0x58d   :  { %v7219_v18 = vld [vmem:[#allocation43_spill] sm:$0xff]  ;;  %2060 = vmatpush.msrb.mxu1 %v1872_v5  ;;  %2142 = vmatpush.msra.mxu3 %v1874_v10  ;;  %v5833_v5 = vld [vmem:[#allocation7 + $0x1d8] sm:$0xff]  ;;  %v5852_v10 = vld [vmem:[#allocation7 + $0x1f0] sm:$0xff] }
 0x58e   :  { %v3442_v35 = vmul.f32 -1.442695, %v1643_v39  ;;  %v3443_v19 = vmul.f32 -1.442695, %v1644_v50  ;;  %v629_v32 = vadd.f32 %v7219_v18, %v7214_v21  ;;  %v1869_v39 = vld [vmem:[#allocation5 + $0x10] sm:$0xff]  ;;  %v1870_v50 = vld [vmem:[#allocation5 + $0x18] sm:$0xff] }
 0x58f   :  { %2061 = vmatpush.msrb.mxu1 %v1868_v12  ;;  %2102 = vmatpush.msra.mxu2 %v1869_v39  ;;  %7226 = vst [vmem:[#allocation14_spill] sm:$0xff] %v5833_v5  ;;  %v5860_v18 = vld [vmem:[#allocation7 + $0x1b0] sm:$0xff]  ;;  %v5872_v12 = vld [vmem:[#allocation7 + $0x168] sm:$0xff] }
 0x590   :  { %3611 = vpow2.f32 %v3442_v35  ;;  %2143 = vmatpush.msra.mxu3 %v1870_v50  ;;  %v5876_v39 = vld [vmem:[#allocation7 + $0x190] sm:$0xff]  ;;  %v5882_v50 = vld [vmem:[#allocation7 + $0x178] sm:$0xff] }
 0x591   :  { %3613 = vpow2.f32 %v3443_v19 }
 0x592   :  { %v1640_v38 = vpop.f32.mrf.mxu3  ;;  %v1620_v25 = vpop.f32.mrf.mxu2 }
 0x593   :  { %v1646_v52 = vadd.f32 %v1640_v38, %v670_v42  ;;  %v1645_v14 = vadd.f32 %v1620_v25, %v629_v32  ;;  %v5831_v25 = vld [vmem:[#allocation7 + $0x1a8] sm:$0xff]  ;;  %v5862_v32 = vld [vmem:[#allocation7 + $0x180] sm:$0xff] }
 0x594   :  { %7225 = vst [vmem:[#allocation37_spill] sm:$0xff] %v5831_v25 }
 0x595   :  { %v3444_v40 = vmul.f32 -1.442695, %v1646_v52  ;;  %7229 = vst [vmem:[#allocation34_spill] sm:$0xff] %v5862_v32 }
 0x596   :  { %v3612_v16 = vpop.eup %3611 }
 0x597   :  { %v3614_v57 = vpop.eup %3613  ;;  %v5784_v55 = vadd.f32 1.0, %v3612_v16  ;;  %3615 = vpow2.f32 %v3444_v40 }
 0x598   :  { %v5786_v31 = vadd.f32 1.0, %v3614_v57 }
 0x599   :  { %3617 = vrcp.f32 %v5784_v55  ;;  %v1662_v41 = vand.u32 2147483648, %v5784_v55  ;;  %v1660_v59 = vand.u32 2147483647, %v5784_v55  ;;  %vm1656_vm10 = vweird.f32 %v5784_v55 }
 0x59a   :  { %3619 = vrcp.f32 %v5786_v31  ;;  %v1681_v13 = vand.u32 2147483648, %v5786_v31  ;;  %v1679_v42 = vand.u32 2147483647, %v5786_v31  ;;  %vm1675_vm11 = vweird.f32 %v5786_v31 }
 0x59b   :  { %v1663_v58 = vor.u32 1.1754944e-38, %v1662_v41  ;;  %vm1661_vm14 = vcmp.eq.f32.partialorder %v1660_v59, 8.507059e+37  ;;  %v5896_v41 = vld [vmem:[#allocation7 + $0x158] sm:$0xff]  ;;  %v5900_v59 = vld [vmem:[#allocation7 + $0x150] sm:$0xff] }
 0x59c   :  { %v1682_v52 = vor.u32 1.1754944e-38, %v1681_v13  ;;  %vm1680_vm15 = vcmp.eq.f32.partialorder %v1679_v42, 8.507059e+37 }
 0x59d   :  { %v3616_v28 = vpop.eup %3615 }
 0x59e   :  { %v1689_v53 = vadd.f32 1.0, %v3616_v28  ;;  %v5855_v28 = vld [vmem:[#allocation7 + $0x1d0] sm:$0xff] }
 0x59f   :  { %v3618_v45 = vpop.eup %3617 }
 0x5a0   :  { %v3620_v4 = vpop.eup %3619  ;;  %v1652_v34 = vmul.f32 %v3618_v45, %v5784_v55  ;;  %3621 = vrcp.f32 %v1689_v53  ;;  %vm1657_vm8 = vweird.f32 %v3618_v45  ;;  %v1701_v56 = vand.u32 2147483648, %v1689_v53 }
 0x5a1   :  { %v1671_v35 = vmul.f32 %v3620_v4, %v5786_v31  ;;  %3623 = vtanh.f32 %v1645_v14  ;;  %vm1676_vm9 = vweird.f32 %v3620_v4  ;;  %vm1658_vm12 = vmor %vm1656_vm10, %vm1657_vm8  ;;  %vm1695_vm1 = vweird.f32 %v1689_v53  ;;  %v7230_v14 = vld [vmem:[#allocation27_spill] sm:$0xff] }
 0x5a2   :  { %v1653_v19 = vsub.f32 1.0, %v1652_v34  ;;  %vm1677_vm13 = vmor %vm1675_vm11, %vm1676_vm9  ;;  %v1699_v57 = vand.u32 2147483647, %v1689_v53  ;;  %v1702_v49 = vor.u32 1.1754944e-38, %v1701_v56  ;;  %v7231_v34 = vld [vmem:[#allocation28_spill] sm:$0xff]  ;;  %v5942_v56 = vld [vmem:[#allocation7 + $0xa0] sm:$0xff] }
 0x5a3   :  { %v1672_v51 = vsub.f32 1.0, %v1671_v35  ;;  %v591_v35 = vadd.f32 %v7231_v34, %v7210_v0  ;;  %v5907_v0 = vld [vmem:[#allocation7 + $0x138] sm:$0xff]  ;;  %7234 = vst [vmem:[#allocation18_spill] sm:$0xff] %v5942_v56 }
 0x5a4   :  { %v1654_v43 = vmul.f32 %v3618_v45, %v1653_v19  ;;  %vm1700_vm3 = vcmp.eq.f32.partialorder %v1699_v57, 8.507059e+37  ;;  %v5892_v19 = vld [vmem:[#allocation7 + $0x140] sm:$0xff]  ;;  %v5944_v57 = vld [vmem:[#allocation7 + $0xa8] sm:$0xff] }
 0x5a5   :  { %v1673_v60 = vmul.f32 %v3620_v4, %v1672_v51  ;;  %v5894_v51 = vld [vmem:[#allocation7 + $0x148] sm:$0xff]  ;;  %7235 = vst [vmem:[#allocation36_spill] sm:$0xff] %v5944_v57 }
 0x5a6   :  { %v3622_v2 = vpop.eup %3621  ;;  %v1655_v3 = vadd.f32 %v3618_v45, %v1654_v43 }
 0x5a7   :  { %v1674_v38 = vadd.f32 %v3620_v4, %v1673_v60  ;;  %v1691_v6 = vmul.f32 %v3622_v2, %v1689_v53  ;;  %v3624_v29 = vpop.eup %3623  ;;  %vm1696_vm0 = vweird.f32 %v3622_v2  ;;  %v5874_v53 = vld [vmem:[#allocation7 + $0x198] sm:$0xff] }
 0x5a8   :  { %v1659_v44 = vsel %vm1658_vm12, %v3618_v45, %v1655_v3  ;;  %vm1697_vm2 = vmor %vm1695_vm1, %vm1696_vm0  ;;  %v5884_v45 = vld [vmem:[#allocation7 + $0x170] sm:$0xff] }
 0x5a9   :  { %v1664_v9 = vsel %vm1661_vm14, %v1663_v58, %v1659_v44  ;;  %v1678_v37 = vsel %vm1677_vm13, %v3620_v4, %v1674_v38  ;;  %v1692_v40 = vsub.f32 1.0, %v1691_v6  ;;  %v550_v4 = vadd.f32 %v7230_v14, %v7208_v46  ;;  %v5902_v46 = vld [vmem:[#allocation7 + $0x120] sm:$0xff]  ;;  %v5912_v3 = vld [vmem:[#allocation7 + $0x130] sm:$0xff] }
 0x5aa   :  { %v1683_v47 = vsel %vm1680_vm15, %v1682_v52, %v1678_v37  ;;  %v1706_v61 = vmul.f32 %v3624_v29, %v1664_v9  ;;  %v5914_v6 = vld [vmem:[#allocation7 + $0x100] sm:$0xff]  ;;  %v5916_v52 = vld [vmem:[#allocation7 + $0x108] sm:$0xff]  ;;  %v5926_v9 = vld [vmem:[#allocation7 + $0x118] sm:$0xff] }
 0x5ab   :  { %v1705_v54 = vmul.f32 %v1683_v47, %v5769_v8  ;;  %v1693_v16 = vmul.f32 %v3622_v2, %v1692_v40  ;;  %v7220_v8 = vld [vmem:[#allocation33_spill] sm:$0xff]  ;;  %v5922_v44 = vld [vmem:[#allocation7 + $0xe0] sm:$0xff]  ;;  %v5924_v29 = vld [vmem:[#allocation7 + $0xe8] sm:$0xff] }
 0x5ac   :  { %v5929_v37 = vld [vmem:[#allocation7 + $0xc0] sm:$0xff]  ;;  %v5931_v40 = vld [vmem:[#allocation7 + $0xc8] sm:$0xff]  ;;  %v5933_v47 = vld [vmem:[#allocation7 + $0xf8] sm:$0xff] }
 0x5ad   :  { %v5801_v26 = vadd.f32 %v1706_v61, %v1705_v54  ;;  %v1694_v27 = vadd.f32 %v3622_v2, %v1693_v16  ;;  %v7232_v61 = vld [vmem:[#allocation46_spill] sm:$0xff]  ;;  %v5939_v16 = vld [vmem:[#allocation7 + $0xd8] sm:$0xff] }
 0x5ae   :  { %v673_v54 = vadd.f32 %v7232_v61, %v7212_v63  ;;  %7233 = vst [vmem:[#allocation35_spill] sm:$0xff] %v5939_v16  ;;  %v5950_v63 = vld [vmem:[#allocation7 + $0xb8] sm:$0xff]  ;;  %v5968_v14 = vld [vmem:[#allocation7 + $0x60] sm:$0xff] }
 0x5af   :  { %3625 = vtanh.f32 %v5801_v26  ;;  %v1698_v55 = vsel %vm1697_vm2, %v3622_v2, %v1694_v27  ;;  %v5904_v2 = vld [vmem:[#allocation7 + $0x128] sm:$0xff]  ;;  %7236 = vst [vmem:[#allocation16_spill] sm:$0xff] %v5950_v63  ;;  %v5996_v61 = vld [vmem:[#allocation7 + $0x20] sm:$0xff] }
 0x5b0   :  { %v1703_v31 = vsel %vm1700_vm3, %v1702_v49, %v1698_v55  ;;  %v5946_v55 = vld [vmem:[#allocation7 + $0x110] sm:$0xff]  ;;  %7241 = vst [vmem:[#allocation49_spill] sm:$0xff] %v5968_v14 }
 0x5b1   :  { %7248 = vst [vmem:[#allocation52_spill] sm:$0xff] %v5996_v61 }
 0x5b5   :  { %v3626_v30 = vpop.eup %3625 }
 0x5b6   :  { %v1709_v36 = vmul.f32 %v3626_v30, %v1703_v31  ;;  %v5952_v30 = vld [vmem:[#allocation7 + $0xf0] sm:$0xff]  ;;  %v5956_v31 = vld [vmem:[#allocation7 + $0x80] sm:$0xff] }
 0x5b7   :  { %7237 = vst [vmem:[#allocation47_spill] sm:$0xff] %v5956_v31 }
 0x5b8   :  { %1727 = vmatmul.f32.vlgmr.msra.gmra.mxu0 %v1709_v36  ;;  %1747 = vmatmul.f32.vlgmr.msra.gmra.mxu1 %v1709_v36 }
 0x5b9   :  { %1767 = vmatmul.f32.vlgmr.msrb.gmra.mxu2 %v1709_v36  ;;  %1787 = vmatmul.f32.vlgmr.msrb.gmra.mxu3 %v1709_v36 }
 0x5ba   :  { %2169 = vmatpush.msra.mxu0 %v5816_v62  ;;  %2189 = vmatpush.msra.mxu1 %v5818_v11 }
 0x5bb   :  { %2229 = vmatpush.msrb.mxu3 %v5826_v20  ;;  %2209 = vmatpush.msrb.mxu2 %v5852_v10 }
 0x5bc   :  { %2170 = vmatpush.msra.mxu0 %v5820_v7  ;;  %2190 = vmatpush.msra.mxu1 %v5824_v33 }
 0x5bd   :  { %2230 = vmatpush.msrb.mxu3 %v5833_v5  ;;  %2210 = vmatpush.msrb.mxu2 %v5855_v28 }
 0x5be   :  { %2171 = vmatpush.msra.mxu0 %v5829_v24  ;;  %2191 = vmatpush.msra.mxu1 %v5831_v25 }
 0x5bf   :  { %2211 = vmatpush.msrb.mxu2 %v5860_v18 }
 0x5c0   :  { %2021 = vmatmul.f32.vlgmr.msrb.gmra.mxu0 %v7220_v8  ;;  %2062 = vmatmul.f32.vlgmr.msrb.gmra.mxu1 %v7220_v8 }
 0x5c1   :  { %2103 = vmatmul.f32.vlgmr.msra.gmra.mxu2 %v7220_v8  ;;  %2144 = vmatmul.f32.vlgmr.msra.gmra.mxu3 %v7220_v8 }
 0x5c2   :  { %2172 = vmatpush.msra.mxu0 %v5862_v32  ;;  %2192 = vmatpush.msra.mxu1 %v5864_v1 }
 0x5c3   :  { %2212 = vmatpush.msrb.mxu2 %v5876_v39 }
 0x5c4   :  { %2193 = vmatpush.msra.mxu1 %v5872_v12 }
 0x5c5   :  { %2213 = vmatpush.msrb.mxu2 %v5884_v45 }
 0x5c6   :  { %2194 = vmatpush.msra.mxu1 %v5894_v51 }
 0x5c7   :  { %2214 = vmatpush.msrb.mxu2 %v5900_v59 }
 0x5c8   :  { %2024 = vmatmul.f32.gmra.mxu0 %v7221_v23  ;;  %2065 = vmatmul.f32.gmra.mxu1 %v7221_v23 }
 0x5c9   :  { %2106 = vmatmul.f32.gmra.mxu2 %v7221_v23  ;;  %2147 = vmatmul.f32.gmra.mxu3 %v7221_v23  ;;  %v5962_v23 = vld [vmem:[#allocation7 + $0x98] sm:$0xff] }
 0x5ca   :  { %2195 = vmatpush.msra.mxu1 %v5904_v2  ;;  %2215 = vmatpush.msrb.mxu2 %v5912_v3  ;;  %7239 = vst [vmem:[#allocation54_spill] sm:$0xff] %v5962_v23 }
 0x5cc   :  { %2196 = vmatpush.msra.mxu1 %v5916_v52  ;;  %2216 = vmatpush.msrb.mxu2 %v5946_v55 }
 0x5ce   :  { %2197 = vmatpush.msra.mxu1 %v5924_v29  ;;  %2217 = vmatpush.msrb.mxu2 %v5952_v30 }
 0x5d0   :  { %2027 = vmatmul.f32.gmra.mxu0 %v7222_v17  ;;  %2068 = vmatmul.f32.gmra.mxu1 %v7222_v17 }
 0x5d1   :  { %2109 = vmatmul.f32.gmra.mxu2 %v7222_v17  ;;  %2150 = vmatmul.f32.gmra.mxu3 %v7222_v17  ;;  %v5964_v17 = vld [vmem:[#allocation7 + $0xd0] sm:$0xff] }
 0x5d2   :  { %2198 = vmatpush.msra.mxu1 %v5931_v40  ;;  %7240 = vst [vmem:[#allocation48_spill] sm:$0xff] %v5964_v17  ;;  %2218 = vmatpush.msrb.mxu2 %v5964_v17 }
 0x5d4   :  { %2199 = vmatpush.msra.mxu1 %v5944_v57 }
 0x5d8   :  { %2030 = vmatmul.f32.gmra.mxu0 %v7227_v22  ;;  %2071 = vmatmul.f32.gmra.mxu1 %v7227_v22 }
 0x5d9   :  { %2112 = vmatmul.f32.gmra.mxu2 %v7227_v22  ;;  %2153 = vmatmul.f32.gmra.mxu3 %v7227_v22 }
 0x5e0   :  { %2033 = vmatmul.f32.gmra.mxu0 %v5646_v48  ;;  %2074 = vmatmul.f32.gmra.mxu1 %v5646_v48 }
 0x5e1   :  { %2115 = vmatmul.f32.gmra.mxu2 %v5646_v48  ;;  %2156 = vmatmul.f32.gmra.mxu3 %v5646_v48  ;;  %v5858_v48 = vld [vmem:[#allocation7 + $0x1b8] sm:$0xff] }
 0x5e2   :  { %7228 = vst [vmem:[#allocation17_spill] sm:$0xff] %v5858_v48  ;;  %2231 = vmatpush.msrb.mxu3 %v5858_v48 }
 0x5e4   :  { %2232 = vmatpush.msrb.mxu3 %v5874_v53 }
 0x5e6   :  { %2233 = vmatpush.msrb.mxu3 %v5882_v50 }
 0x5e8   :  { %2036 = vmatmul.f32.gmra.mxu0 %v5772_v15  ;;  %2077 = vmatmul.f32.gmra.mxu1 %v5772_v15 }
 0x5e9   :  { %2118 = vmatmul.f32.gmra.mxu2 %v5772_v15  ;;  %2159 = vmatmul.f32.gmra.mxu3 %v5772_v15  ;;  %v5867_v15 = vld [vmem:[#allocation7 + $0x160] sm:$0xff] }
 0x5ea   :  { %2173 = vmatpush.msra.mxu0 %v5867_v15  ;;  %2234 = vmatpush.msrb.mxu3 %v5896_v41 }
 0x5ec   :  { %2174 = vmatpush.msra.mxu0 %v5892_v19  ;;  %2235 = vmatpush.msrb.mxu3 %v5907_v0 }
 0x5ee   :  { %2175 = vmatpush.msra.mxu0 %v5902_v46  ;;  %2236 = vmatpush.msrb.mxu3 %v5926_v9 }
 0x5f0   :  { %2039 = vmatmul.f32.gmra.mxu0 %v1709_v36  ;;  %2080 = vmatmul.f32.gmra.mxu1 %v1709_v36 }
 0x5f1   :  { %2121 = vmatmul.f32.gmra.mxu2 %v1709_v36  ;;  %2162 = vmatmul.f32.gmra.mxu3 %v1709_v36  ;;  %v5958_v36 = vld [vmem:[#allocation7 + $0x88] sm:$0xff] }
 0x5f2   :  { %2176 = vmatpush.msra.mxu0 %v5914_v6  ;;  %2237 = vmatpush.msrb.mxu3 %v5933_v47  ;;  %7238 = vst [vmem:[#allocation10_spill] sm:$0xff] %v5958_v36 }
 0x5f3   :  { %2200 = vmatpush.msra.mxu1 %v5958_v36 }
 0x5f4   :  { %2177 = vmatpush.msra.mxu0 %v5922_v44  ;;  %2238 = vmatpush.msrb.mxu3 %v5939_v16 }
 0x5f6   :  { %2178 = vmatpush.msra.mxu0 %v5929_v37  ;;  %2239 = vmatpush.msrb.mxu3 %v5950_v63 }
 0x5f8   :  { %2179 = vmatpush.msra.mxu0 %v5942_v56  ;;  %2240 = vmatpush.msrb.mxu3 %v5962_v23  ;;  %v6020_v23 = vld [vmem:[#allocation7 + $0x18] sm:$0xff] }
 0x5f9   :  { %7257 = vst [vmem:[#allocation11_spill] sm:$0xff] %v6020_v23 }
 0x5fa   :  { %2180 = vmatpush.msra.mxu0 %v5956_v31 }
 0x5fc   :  { %2181 = vmatpush.msra.mxu0 %v5968_v14 }
 0x635   :  { %v1728_v13 = vpop.f32.mrf.mxu0  ;;  %v1748_v43 = vpop.f32.mrf.mxu1 }
 0x636   :  { %v1791_v60 = vadd.f32 %v1728_v13, %v550_v4  ;;  %v1792_v42 = vadd.f32 %v1748_v43, %v591_v35  ;;  %v5970_v4 = vld [vmem:[#allocation7 + $0x68] sm:$0xff]  ;;  %v5976_v13 = vld [vmem:[#allocation7 + $0xb0] sm:$0xff]  ;;  %v5978_v43 = vld [vmem:[#allocation7 + $0x78] sm:$0xff] }
 0x637   :  { %7242 = vst [vmem:[#allocation55_spill] sm:$0xff] %v5970_v4  ;;  %2201 = vmatpush.msra.mxu1 %v5970_v4  ;;  %2219 = vmatpush.msrb.mxu2 %v5976_v13  ;;  %v7254_v4 = vld [vmem:[#allocation45_spill] sm:$0xff] }
 0x638   :  { %v3445_v58 = vmul.f32 -1.442695, %v1791_v60  ;;  %v3446_v38 = vmul.f32 -1.442695, %v1792_v42  ;;  %7243 = vst [vmem:[#allocation56_spill] sm:$0xff] %v5976_v13  ;;  %v5984_v42 = vld [vmem:[#allocation7 + $0x40] sm:$0xff]  ;;  %2241 = vmatpush.msrb.mxu3 %v5978_v43  ;;  %v632_v14 = vadd.f32 %v7254_v4, %v7214_v21 }
 0x639   :  { %7244 = vst [vmem:[#allocation50_spill] sm:$0xff] %v5978_v43  ;;  %2182 = vmatpush.msra.mxu0 %v5984_v42  ;;  %v6028_v21 = vld [vmem:[#allocation7 + $0x30] sm:$0xff] }
 0x63a   :  { %3627 = vpow2.f32 %v3445_v58  ;;  %7245 = vst [vmem:[#allocation51_spill] sm:$0xff] %v5984_v42  ;;  %v5986_v58 = vld [vmem:[#allocation7 + $0x48] sm:$0xff]  ;;  %v6018_v42 = vld [vmem:[#allocation7 + $0x38] sm:$0xff] }
 0x63b   :  { %3629 = vpow2.f32 %v3446_v38  ;;  %7246 = vst [vmem:[#allocation57_spill] sm:$0xff] %v5986_v58  ;;  %v5991_v38 = vld [vmem:[#allocation7 + $0x90] sm:$0xff]  ;;  %2202 = vmatpush.msra.mxu1 %v5986_v58  ;;  %2183 = vmatpush.msra.mxu0 %v5996_v61 }
 0x63c   :  { %v1788_v27 = vpop.f32.mrf.mxu3  ;;  %7247 = vst [vmem:[#allocation58_spill] sm:$0xff] %v5991_v38  ;;  %2220 = vmatpush.msrb.mxu2 %v5991_v38  ;;  %v6016_v58 = vld [vmem:[#allocation7 + $0x50] sm:$0xff] }
 0x63d   :  { %v1794_v49 = vadd.f32 %v1788_v27, %v673_v54  ;;  %v5998_v54 = vld [vmem:[#allocation7 + $0x28] sm:$0xff]  ;;  %v6000_v27 = vld [vmem:[#allocation7 + $0x58] sm:$0xff]  ;;  %7255 = vst [vmem:[#allocation40_spill] sm:$0xff] %v6016_v58 }
 0x63e   :  { %7249 = vst [vmem:[#allocation53_spill] sm:$0xff] %v5998_v54  ;;  %2242 = vmatpush.msrb.mxu3 %v6000_v27  ;;  %2203 = vmatpush.msra.mxu1 %v5998_v54 }
 0x63f   :  { %v3447_v8 = vmul.f32 -1.442695, %v1794_v49  ;;  %7250 = vst [vmem:[#allocation59_spill] sm:$0xff] %v6000_v27  ;;  %v6004_v49 = vld [vmem:[#allocation7 + $0x70] sm:$0xff] }
 0x640   :  { %v3628_v22 = vpop.eup %3627  ;;  %7251 = vst [vmem:[#allocation60_spill] sm:$0xff] %v6004_v49  ;;  %2221 = vmatpush.msrb.mxu2 %v6004_v49  ;;  %2243 = vmatpush.msrb.mxu3 %v6018_v42 }
 0x641   :  { %v3630_v34 = vpop.eup %3629  ;;  %v5972_v35 = vadd.f32 1.0, %v3628_v22  ;;  %3631 = vpow2.f32 %v3447_v8  ;;  %v1768_v8 = vpop.f32.mrf.mxu2  ;;  %v6008_v22 = vld [vmem:[#allocation7] sm:$0xff]  ;;  %7256 = vst [vmem:[#allocation39_spill] sm:$0xff] %v6018_v42  ;;  %v6035_v42 = vld [vmem:[#allocation7 + $0x10] sm:$0xff] }
 0x642   :  { %v5980_v60 = vadd.f32 1.0, %v3630_v34  ;;  %7252 = vst [vmem:[#allocation21_spill] sm:$0xff] %v6008_v22  ;;  %v6010_v34 = vld [vmem:[#allocation7 + $0x8] sm:$0xff]  ;;  %v1793_v36 = vadd.f32 %v1768_v8, %v632_v14  ;;  %2184 = vmatpush.msra.mxu0 %v6008_v22  ;;  %2222 = vmatpush.msrb.mxu2 %v6016_v58 }
 0x643   :  { %3633 = vrcp.f32 %v5972_v35  ;;  %7253 = vst [vmem:[#allocation22_spill] sm:$0xff] %v6010_v34  ;;  %2204 = vmatpush.msra.mxu1 %v6010_v34  ;;  %2244 = vmatpush.msrb.mxu3 %v6020_v23  ;;  %v1810_v34 = vand.u32 2147483648, %v5972_v35  ;;  %vm1804_vm6 = vweird.f32 %v5972_v35 }
 0x644   :  { %3635 = vrcp.f32 %v5980_v60  ;;  %7258 = vst [vmem:[#allocation12_spill] sm:$0xff] %v6028_v21  ;;  %2316 = vmatpush.msrb.mxu0 %v5816_v62  ;;  %2223 = vmatpush.msrb.mxu2 %v6028_v21  ;;  %v1829_v23 = vand.u32 2147483648, %v5980_v60  ;;  %v1808_v62 = vand.u32 2147483647, %v5972_v35  ;;  %vm1823_vm7 = vweird.f32 %v5980_v60 }
 0x645   :  { %7259 = vst [vmem:[#allocation61_spill] sm:$0xff] %v6035_v42  ;;  %2336 = vmatpush.msrb.mxu1 %v5818_v11  ;;  %2376 = vmatpush.msra.mxu3 %v5826_v20 }
 0x646   :  { %2317 = vmatpush.msrb.mxu0 %v5820_v7  ;;  %2224 = vmatpush.msrb.mxu2 %v6035_v42  ;;  %vm1809_vm10 = vcmp.eq.f32.partialorder %v1808_v62, 8.507059e+37 }
 0x647   :  { %v3632_v43 = vpop.eup %3631  ;;  %2337 = vmatpush.msrb.mxu1 %v5824_v33  ;;  %2377 = vmatpush.msra.mxu3 %v5833_v5 }
 0x648   :  { %v6022_v38 = vadd.f32 1.0, %v3632_v43  ;;  %2356 = vmatpush.msra.mxu2 %v5852_v10  ;;  %2318 = vmatpush.msrb.mxu0 %v5829_v24 }
 0x649   :  { %v3634_v27 = vpop.eup %3633  ;;  %2338 = vmatpush.msrb.mxu1 %v5831_v25  ;;  %2378 = vmatpush.msra.mxu3 %v5858_v48 }
 0x64a   :  { %v3636_v4 = vpop.eup %3635  ;;  %v1800_v54 = vmul.f32 %v3634_v27, %v5972_v35  ;;  %3637 = vrcp.f32 %v6022_v38  ;;  %vm1805_vm4 = vweird.f32 %v3634_v27  ;;  %2357 = vmatpush.msra.mxu2 %v5855_v28  ;;  %2319 = vmatpush.msrb.mxu0 %v5862_v32  ;;  %v1830_v35 = vor.u32 1.1754944e-38, %v1829_v23 }
 0x64b   :  { %v1819_v43 = vmul.f32 %v3636_v4, %v5980_v60  ;;  %3639 = vtanh.f32 %v1793_v36  ;;  %vm1824_vm5 = vweird.f32 %v3636_v4  ;;  %vm1806_vm8 = vmor %vm1804_vm6, %vm1805_vm4  ;;  %2339 = vmatpush.msrb.mxu1 %v5864_v1  ;;  %2379 = vmatpush.msra.mxu3 %v5874_v53  ;;  %vm1843_vm13 = vweird.f32 %v6022_v38 }
 0x64c   :  { %v1801_v14 = vsub.f32 1.0, %v1800_v54  ;;  %vm1825_vm9 = vmor %vm1823_vm7, %vm1824_vm5  ;;  %2358 = vmatpush.msra.mxu2 %v5860_v18  ;;  %2320 = vmatpush.msrb.mxu0 %v5867_v15 }
 0x64d   :  { %v1820_v8 = vsub.f32 1.0, %v1819_v43  ;;  %v1827_v43 = vand.u32 2147483647, %v5980_v60  ;;  %2340 = vmatpush.msrb.mxu1 %v5872_v12  ;;  %2380 = vmatpush.msra.mxu3 %v5882_v50 }
 0x64e   :  { %v1802_v22 = vmul.f32 %v3634_v27, %v1801_v14  ;;  %v1811_v14 = vor.u32 1.1754944e-38, %v1810_v34  ;;  %2359 = vmatpush.msra.mxu2 %v5876_v39  ;;  %2321 = vmatpush.msrb.mxu0 %v5892_v19 }
 0x64f   :  { %v1821_v54 = vmul.f32 %v3636_v4, %v1820_v8  ;;  %vm1828_vm11 = vcmp.eq.f32.partialorder %v1827_v43, 8.507059e+37  ;;  %2341 = vmatpush.msrb.mxu1 %v5894_v51  ;;  %2381 = vmatpush.msra.mxu3 %v5896_v41  ;;  %v7260_v43 = vld [vmem:[#allocation10_spill] sm:$0xff] }
 0x650   :  { %v6051_v36 = vpop.eup %3637  ;;  %v1803_v33 = vadd.f32 %v3634_v27, %v1802_v22  ;;  %2360 = vmatpush.msra.mxu2 %v5884_v45  ;;  %2322 = vmatpush.msrb.mxu0 %v5902_v46 }
 0x651   :  { %v1822_v8 = vadd.f32 %v3636_v4, %v1821_v54  ;;  %v1839_v5 = vmul.f32 %v6051_v36, %v6022_v38  ;;  %v3640_v60 = vpop.eup %3639  ;;  %vm1844_vm12 = vweird.f32 %v6051_v36  ;;  %2342 = vmatpush.msrb.mxu1 %v5904_v2  ;;  %2382 = vmatpush.msra.mxu3 %v5907_v0 }
 0x652   :  { %v1807_v22 = vsel %vm1806_vm8, %v3634_v27, %v1803_v33  ;;  %2361 = vmatpush.msra.mxu2 %v5900_v59  ;;  %2323 = vmatpush.msrb.mxu0 %v5914_v6  ;;  %vm1845_vm14 = vmor %vm1843_vm13, %vm1844_vm12 }
 0x653   :  { %v1812_v48 = vsel %vm1809_vm10, %v1811_v14, %v1807_v22  ;;  %v1826_v34 = vsel %vm1825_vm9, %v3636_v4, %v1822_v8  ;;  %v1840_v54 = vsub.f32 1.0, %v1839_v5  ;;  %2343 = vmatpush.msrb.mxu1 %v5916_v52  ;;  %2383 = vmatpush.msra.mxu3 %v5926_v9  ;;  %v7262_v14 = vld [vmem:[#allocation58_spill] sm:$0xff]  ;;  %v7263_v8 = vld [vmem:[#allocation49_spill] sm:$0xff] }
 0x654   :  { %v1831_v25 = vsel %vm1828_vm11, %v1830_v35, %v1826_v34  ;;  %v1854_v32 = vmul.f32 %v3640_v60, %v1812_v48  ;;  %2362 = vmatpush.msra.mxu2 %v5912_v3  ;;  %2324 = vmatpush.msrb.mxu0 %v5922_v44  ;;  %v7264_v35 = vld [vmem:[#allocation55_spill] sm:$0xff]  ;;  %v7265_v22 = vld [vmem:[#allocation50_spill] sm:$0xff]  ;;  %v7267_v34 = vld [vmem:[#allocation57_spill] sm:$0xff] }
 0x655   :  { %v1853_v62 = vmul.f32 %v1831_v25, %v5801_v26  ;;  %v1841_v33 = vmul.f32 %v6051_v36, %v1840_v54  ;;  %v1849_v26 = vand.u32 2147483648, %v6022_v38  ;;  %v1847_v25 = vand.u32 2147483647, %v6022_v38  ;;  %2344 = vmatpush.msrb.mxu1 %v5924_v29  ;;  %2384 = vmatpush.msra.mxu3 %v5933_v47  ;;  %v7266_v60 = vld [vmem:[#allocation51_spill] sm:$0xff] }
 0x656   :  { %2363 = vmatpush.msra.mxu2 %v5946_v55  ;;  %2325 = vmatpush.msrb.mxu0 %v5929_v37  ;;  %v7268_v54 = vld [vmem:[#allocation59_spill] sm:$0xff] }
 0x657   :  { %v1855_v5 = vadd.f32 %v1854_v32, %v1853_v62  ;;  %v1842_v48 = vadd.f32 %v6051_v36, %v1841_v33  ;;  %v1850_v23 = vor.u32 1.1754944e-38, %v1849_v26  ;;  %vm1848_vm15 = vcmp.eq.f32.partialorder %v1847_v25, 8.507059e+37  ;;  %2345 = vmatpush.msrb.mxu1 %v5931_v40  ;;  %2385 = vmatpush.msra.mxu3 %v5939_v16  ;;  %v7270_v33 = vld [vmem:[#allocation53_spill] sm:$0xff]  ;;  %v7273_v26 = vld [vmem:[#allocation22_spill] sm:$0xff]  ;;  %v7274_v25 = vld [vmem:[#allocation11_spill] sm:$0xff] }
 0x658   :  { %2364 = vmatpush.msra.mxu2 %v5952_v30  ;;  %2326 = vmatpush.msrb.mxu0 %v5942_v56  ;;  %v7269_v62 = vmov 0.0  }
 0x659   :  { %3641 = vtanh.f32 %v1855_v5  ;;  %v1846_v32 = vsel %vm1845_vm14, %v6051_v36, %v1842_v48  ;;  %2346 = vmatpush.msrb.mxu1 %v5944_v57  ;;  %2386 = vmatpush.msra.mxu3 %v5950_v63  ;;  %v7261_v36 = vld [vmem:[#allocation54_spill] sm:$0xff]  ;;  %v7271_v5 = vld [vmem:[#allocation39_spill] sm:$0xff]  ;;  %v7272_v48 = vld [vmem:[#allocation21_spill] sm:$0xff] }
 0x65a   :  { %v1851_v27 = vsel %vm1848_vm15, %v1850_v23, %v1846_v32  ;;  %2365 = vmatpush.msra.mxu2 %v5964_v17  ;;  %2327 = vmatpush.msrb.mxu0 %v5956_v31  ;;  %v7275_v32 = vld [vmem:[#allocation20_spill] sm:$0xff]  ;;  %v7276_v23 = vld [vmem:[#allocation38_spill] sm:$0xff] }
 0x65b   :  { %2347 = vmatpush.msrb.mxu1 %v7260_v43  ;;  %2387 = vmatpush.msra.mxu3 %v7261_v36 }
 0x65c   :  { %2366 = vmatpush.msra.mxu2 %v5976_v13  ;;  %2328 = vmatpush.msrb.mxu0 %v7263_v8 }
 0x65d   :  { %2348 = vmatpush.msrb.mxu1 %v7264_v35  ;;  %2388 = vmatpush.msra.mxu3 %v7265_v22 }
 0x65e   :  { %2367 = vmatpush.msra.mxu2 %v7262_v14  ;;  %2329 = vmatpush.msrb.mxu0 %v7266_v60 }
 0x65f   :  { %v3642_v38 = vpop.eup %3641  ;;  %2349 = vmatpush.msrb.mxu1 %v7267_v34  ;;  %2389 = vmatpush.msra.mxu3 %v7268_v54 }
 0x660   :  { %v1857_v4 = vmul.f32 %v3642_v38, %v1851_v27  ;;  %2368 = vmatpush.msra.mxu2 %v6004_v49  ;;  %2330 = vmatpush.msrb.mxu0 %v5996_v61  ;;  %v7277_v38 = vld [vmem:[#allocation14_spill] sm:$0xff]  ;;  %v7278_v27 = vld [vmem:[#allocation37_spill] sm:$0xff] }
 0x661   :  { %2350 = vmatpush.msrb.mxu1 %v7270_v33  ;;  %2390 = vmatpush.msra.mxu3 %v7271_v5 }
 0x662   :  { %2042 = vmatmul.f32.gmra.mxu0 %v1857_v4  ;;  %2083 = vmatmul.f32.gmra.mxu1 %v1857_v4 }
 0x663   :  { %2124 = vmatmul.f32.gmra.mxu2 %v1857_v4  ;;  %2165 = vmatmul.f32.gmra.mxu3 %v1857_v4  ;;  %v7279_v4 = vld [vmem:[#allocation17_spill] sm:$0xff] }
 0x664   :  { %2369 = vmatpush.msra.mxu2 %v6016_v58  ;;  %2331 = vmatpush.msrb.mxu0 %v7272_v48 }
 0x665   :  { %2351 = vmatpush.msrb.mxu1 %v7273_v26  ;;  %2391 = vmatpush.msra.mxu3 %v7274_v25 }
 0x666   :  { %2370 = vmatpush.msra.mxu2 %v6028_v21 }
 0x668   :  { %2371 = vmatpush.msra.mxu2 %v6035_v42 }
 0x66a   :  { %2185 = vmatmul.f32.vlgmr.msra.gmra.mxu0 %v7269_v62  ;;  %2205 = vmatmul.f32.vlgmr.msra.gmra.mxu1 %v7269_v62 }
 0x66b   :  { %2225 = vmatmul.f32.vlgmr.msrb.gmra.mxu2 %v7269_v62  ;;  %2245 = vmatmul.f32.vlgmr.msrb.gmra.mxu3 %v7269_v62  ;;  %v7280_v62 = vld [vmem:[#allocation34_spill] sm:$0xff] }
 0x66c   :  { %2463 = vmatpush.msra.mxu0 %v7275_v32  ;;  %2483 = vmatpush.msra.mxu1 %v5818_v11 }
 0x66d   :  { %2503 = vmatpush.msrb.mxu2 %v5852_v10  ;;  %2523 = vmatpush.msrb.mxu3 %v5826_v20 }
 0x66e   :  { %2464 = vmatpush.msra.mxu0 %v5820_v7  ;;  %2484 = vmatpush.msra.mxu1 %v7276_v23 }
 0x66f   :  { %2504 = vmatpush.msrb.mxu2 %v5855_v28  ;;  %2524 = vmatpush.msrb.mxu3 %v7277_v38 }
 0x670   :  { %2465 = vmatpush.msra.mxu0 %v5829_v24  ;;  %2485 = vmatpush.msra.mxu1 %v7278_v27 }
 0x671   :  { %2505 = vmatpush.msrb.mxu2 %v5860_v18  ;;  %2525 = vmatpush.msrb.mxu3 %v7279_v4 }
 0x672   :  { %2466 = vmatpush.msra.mxu0 %v7280_v62  ;;  %2486 = vmatpush.msra.mxu1 %v5864_v1 }
 0x673   :  { %2506 = vmatpush.msrb.mxu2 %v5876_v39  ;;  %2526 = vmatpush.msrb.mxu3 %v5874_v53 }
 0x674   :  { %2467 = vmatpush.msra.mxu0 %v5867_v15  ;;  %2487 = vmatpush.msra.mxu1 %v5872_v12 }
 0x675   :  { %2507 = vmatpush.msrb.mxu2 %v5884_v45  ;;  %2527 = vmatpush.msrb.mxu3 %v5882_v50 }
 0x676   :  { %2468 = vmatpush.msra.mxu0 %v5892_v19  ;;  %2488 = vmatpush.msra.mxu1 %v5894_v51 }
 0x677   :  { %2508 = vmatpush.msrb.mxu2 %v5900_v59  ;;  %2528 = vmatpush.msrb.mxu3 %v5896_v41 }
 0x678   :  { %2469 = vmatpush.msra.mxu0 %v5902_v46  ;;  %2489 = vmatpush.msra.mxu1 %v5904_v2 }
 0x679   :  { %2509 = vmatpush.msrb.mxu2 %v5912_v3  ;;  %2529 = vmatpush.msrb.mxu3 %v5907_v0 }
 0x67a   :  { %2470 = vmatpush.msra.mxu0 %v5914_v6  ;;  %2490 = vmatpush.msra.mxu1 %v5916_v52 }
 0x67b   :  { %2510 = vmatpush.msrb.mxu2 %v5946_v55  ;;  %2530 = vmatpush.msrb.mxu3 %v5926_v9 }
 0x67c   :  { %2471 = vmatpush.msra.mxu0 %v5922_v44  ;;  %2491 = vmatpush.msra.mxu1 %v5924_v29 }
 0x67d   :  { %2511 = vmatpush.msrb.mxu2 %v5952_v30  ;;  %2531 = vmatpush.msrb.mxu3 %v5933_v47 }
 0x67e   :  { %2472 = vmatpush.msra.mxu0 %v5929_v37  ;;  %2492 = vmatpush.msra.mxu1 %v5931_v40 }
 0x67f   :  { %2512 = vmatpush.msrb.mxu2 %v5964_v17  ;;  %2532 = vmatpush.msrb.mxu3 %v5939_v16 }
 0x680   :  { %2473 = vmatpush.msra.mxu0 %v5942_v56  ;;  %2493 = vmatpush.msra.mxu1 %v5944_v57 }
 0x681   :  { %2513 = vmatpush.msrb.mxu2 %v5976_v13  ;;  %2533 = vmatpush.msrb.mxu3 %v5950_v63 }
 0x682   :  { %2474 = vmatpush.msra.mxu0 %v5956_v31  ;;  %2494 = vmatpush.msra.mxu1 %v7260_v43 }
 0x683   :  { %2514 = vmatpush.msrb.mxu2 %v7262_v14  ;;  %2534 = vmatpush.msrb.mxu3 %v7261_v36 }
 0x684   :  { %2475 = vmatpush.msra.mxu0 %v7263_v8  ;;  %2495 = vmatpush.msra.mxu1 %v7264_v35 }
 0x685   :  { %2515 = vmatpush.msrb.mxu2 %v6004_v49  ;;  %2535 = vmatpush.msrb.mxu3 %v7265_v22 }
 0x686   :  { %2476 = vmatpush.msra.mxu0 %v7266_v60  ;;  %2496 = vmatpush.msra.mxu1 %v7267_v34  ;;  %v2022_v34 = vpop.f32.mrf.mxu0  ;;  %v2145_v60 = vpop.f32.mrf.mxu3 }
 0x687   :  { %2516 = vmatpush.msrb.mxu2 %v6016_v58  ;;  %2536 = vmatpush.msrb.mxu3 %v7268_v54  ;;  %v2063_v58 = vpop.f32.mrf.mxu1 }
 0x688   :  { %2477 = vmatpush.msra.mxu0 %v5996_v61  ;;  %2497 = vmatpush.msra.mxu1 %v7270_v33  ;;  %v2104_v33 = vpop.f32.mrf.mxu2 }
 0x689   :  { %2517 = vmatpush.msrb.mxu2 %v6028_v21  ;;  %2537 = vmatpush.msrb.mxu3 %v7271_v5 }
 0x68a   :  { %2478 = vmatpush.msra.mxu0 %v7272_v48  ;;  %2498 = vmatpush.msra.mxu1 %v7273_v26 }
 0x68b   :  { %2518 = vmatpush.msrb.mxu2 %v6035_v42  ;;  %2538 = vmatpush.msrb.mxu3 %v7274_v25 }
 0x68e   :  { %v6191_v54 = vpop.f32.mrf.mxu0  ;;  %v6195_v22 = vpop.f32.mrf.mxu3 }
 0x68f   :  { %7281 = vst [vmem:[#allocation62_spill] sm:$0xff] %v6191_v54  ;;  %v6193_v61 = vpop.f32.mrf.mxu1 }
 0x690   :  { %7282 = vst [vmem:[#allocation29_spill] sm:$0xff] %v6193_v61  ;;  %v6201_v48 = vpop.f32.mrf.mxu2 }
 0x691   :  { %7283 = vst [vmem:[#allocation23_spill] sm:$0xff] %v6195_v22 }
 0x692   :  { %7286 = vst [vmem:[#allocation31_spill] sm:$0xff] %v6201_v48 }
 0x696   :  { %v6197_v21 = vpop.f32.mrf.mxu0  ;;  %v6203_v26 = vpop.f32.mrf.mxu3 }
 0x697   :  { %7284 = vst [vmem:[#allocation30_spill] sm:$0xff] %v6197_v21  ;;  %v6199_v5 = vpop.f32.mrf.mxu1 }
 0x698   :  { %7285 = vst [vmem:[#allocation24_spill] sm:$0xff] %v6199_v5  ;;  %v6209_v49 = vpop.f32.mrf.mxu2 }
 0x699   :  { %7287 = vst [vmem:[#allocation42_spill] sm:$0xff] %v6203_v26 }
 0x69a   :  { %7290 = vst [vmem:[#allocation25_spill] sm:$0xff] %v6209_v49 }
 0x69e   :  { %v6205_v42 = vpop.f32.mrf.mxu0  ;;  %v6211_v54 = vpop.f32.mrf.mxu3 }
 0x69f   :  { %7288 = vst [vmem:[#allocation32_spill] sm:$0xff] %v6205_v42  ;;  %v6207_v25 = vpop.f32.mrf.mxu1 }
 0x6a0   :  { %7289 = vst [vmem:[#allocation41_spill] sm:$0xff] %v6207_v25  ;;  %v6217_v22 = vpop.f32.mrf.mxu2 }
 0x6a1   :  { %7291 = vst [vmem:[#allocation26_spill] sm:$0xff] %v6211_v54 }
 0x6a2   :  { %7294 = vst [vmem:[#allocation33_spill] sm:$0xff] %v6217_v22 }
 0x6a6   :  { %v6213_v61 = vpop.f32.mrf.mxu0  ;;  %v6219_v21 = vpop.f32.mrf.mxu3 }
 0x6a7   :  { %7292 = vst [vmem:[#allocation44_spill] sm:$0xff] %v6213_v61  ;;  %v6215_v35 = vpop.f32.mrf.mxu1 }
 0x6a8   :  { %7293 = vst [vmem:[#allocation43_spill] sm:$0xff] %v6215_v35  ;;  %v6225_v26 = vpop.f32.mrf.mxu2 }
 0x6a9   :  { %7295 = vst [vmem:[#allocation15_spill] sm:$0xff] %v6219_v21  ;;  %v1995_v21 = vld [vmem:[%s6859_s8] sm:$0xf] }
 0x6aa   :  { %7298 = vst [vmem:[#allocation27_spill] sm:$0xff] %v6225_v26  ;;  %v6246_v26 = vperm.slane %v1995_v21, 1  ;;  %v6254_v14 = vperm.slane %v1995_v21, 3 }
 0x6ac   :  { %7307 = vst [vmem:[#allocation34_spill] sm:$0xff] %v6246_v26  ;;  %v2146_v43 = vadd.f32 %v2145_v60, %v6254_v14 }
 0x6ad   :  { %7310 = vst [vmem:[#allocation65_spill] sm:$0xff] %v6254_v14 }
 0x6ae   :  { %v6221_v5 = vpop.f32.mrf.mxu0  ;;  %v6227_v42 = vpop.f32.mrf.mxu3 }
 0x6af   :  { %7296 = vst [vmem:[#allocation13_spill] sm:$0xff] %v6221_v5  ;;  %v6223_v48 = vpop.f32.mrf.mxu1 }
 0x6b0   :  { %7297 = vst [vmem:[#allocation19_spill] sm:$0xff] %v6223_v48  ;;  %v6233_v54 = vpop.f32.mrf.mxu2  ;;  %v6244_v48 = vperm.slane %v1995_v21, 0 }
 0x6b1   :  { %7299 = vst [vmem:[#allocation28_spill] sm:$0xff] %v6227_v42 }
 0x6b2   :  { %7302 = vst [vmem:[#allocation20_spill] sm:$0xff] %v6233_v54 }
 0x6b3   :  { %7306 = vst [vmem:[#allocation17_spill] sm:$0xff] %v6244_v48 }
 0x6b6   :  { %v6229_v25 = vpop.f32.mrf.mxu0  ;;  %v6235_v61 = vpop.f32.mrf.mxu3 }
 0x6b7   :  { %7300 = vst [vmem:[#allocation46_spill] sm:$0xff] %v6229_v25  ;;  %v6231_v49 = vpop.f32.mrf.mxu1  ;;  %v2023_v25 = vadd.f32 %v2022_v34, %v6244_v48 }
 0x6b8   :  { %7301 = vst [vmem:[#allocation45_spill] sm:$0xff] %v6231_v49  ;;  %v2064_v49 = vadd.f32 %v2063_v58, %v6246_v26  ;;  %v6250_v42 = vpop.f32.mrf.mxu2 }
 0x6b9   :  { %7303 = vst [vmem:[#allocation38_spill] sm:$0xff] %v6235_v61 }
 0x6ba   :  { %7308 = vst [vmem:[#allocation63_spill] sm:$0xff] %v6250_v42 }
 0x6df   :  { %v6240_v35 = vpop.f32.mrf.mxu0  ;;  %v6242_v5 = vpop.f32.mrf.mxu1 }
 0x6e0   :  { %7304 = vst [vmem:[#allocation14_spill] sm:$0xff] %v6240_v35 }
 0x6e1   :  { %7305 = vst [vmem:[#allocation37_spill] sm:$0xff] %v6242_v5 }
 0x6e6   :  { %v6252_v54 = vpop.f32.mrf.mxu3  ;;  %v6257_v31 = vpop.f32.mrf.mxu2 }
 0x6e7   :  { %7309 = vst [vmem:[#allocation64_spill] sm:$0xff] %v6252_v54  ;;  %v2186_v61 = vpop.f32.mrf.mxu0  ;;  %v2206_v22 = vpop.f32.mrf.mxu1 }
 0x6e8   :  { %v2249_v8 = vadd.f32 %v2186_v61, %v2023_v25  ;;  %v2250_v36 = vadd.f32 %v2206_v22, %v2064_v49  ;;  %7311 = vst [vmem:[#allocation66_spill] sm:$0xff] %v6257_v31  ;;  %v6259_v61 = vperm.slane %v1995_v21, 2 }
 0x6ea   :  { %v3448_v35 = vmul.f32 -1.442695, %v2249_v8  ;;  %v3449_v5 = vmul.f32 -1.442695, %v2250_v36  ;;  %7312 = vst [vmem:[#allocation67_spill] sm:$0xff] %v6259_v61  ;;  %v2105_v8 = vadd.f32 %v2104_v33, %v6259_v61 }
 0x6ec   :  { %3643 = vpow2.f32 %v3448_v35 }
 0x6ed   :  { %3645 = vpow2.f32 %v3449_v5 }
 0x6ee   :  { %v2246_v34 = vpop.f32.mrf.mxu3  ;;  %v2226_v49 = vpop.f32.mrf.mxu2 }
 0x6ef   :  { %v2252_v58 = vadd.f32 %v2246_v34, %v2146_v43  ;;  %v2251_v60 = vadd.f32 %v2226_v49, %v2105_v8 }
 0x6f1   :  { %v3450_v26 = vmul.f32 -1.442695, %v2252_v58 }
 0x6f2   :  { %v3644_v42 = vpop.eup %3643 }
 0x6f3   :  { %v3646_v48 = vpop.eup %3645  ;;  %v2256_v54 = vadd.f32 1.0, %v3644_v42  ;;  %3647 = vpow2.f32 %v3450_v26 }
 0x6f4   :  { %v2275_v63 = vadd.f32 1.0, %v3646_v48 }
 0x6f5   :  { %3649 = vrcp.f32 %v2256_v54  ;;  %v2268_v42 = vand.u32 2147483648, %v2256_v54  ;;  %v2266_v26 = vand.u32 2147483647, %v2256_v54  ;;  %vm2262_vm2 = vweird.f32 %v2256_v54 }
 0x6f6   :  { %3651 = vrcp.f32 %v2275_v63  ;;  %v2287_v48 = vand.u32 2147483648, %v2275_v63  ;;  %v2285_v14 = vand.u32 2147483647, %v2275_v63  ;;  %vm2281_vm3 = vweird.f32 %v2275_v63 }
 0x6f7   :  { %v2269_v49 = vor.u32 1.1754944e-38, %v2268_v42  ;;  %vm2267_vm5 = vcmp.eq.f32.partialorder %v2266_v26, 8.507059e+37 }
 0x6f8   :  { %v2288_v61 = vor.u32 1.1754944e-38, %v2287_v48  ;;  %vm2286_vm7 = vcmp.eq.f32.partialorder %v2285_v14, 8.507059e+37 }
 0x6f9   :  { %v3648_v36 = vpop.eup %3647 }
 0x6fa   :  { %v2295_v35 = vadd.f32 1.0, %v3648_v36 }
 0x6fb   :  { %v3650_v22 = vpop.eup %3649 }
 0x6fc   :  { %v3652_v5 = vpop.eup %3651  ;;  %v2258_v25 = vmul.f32 %v3650_v22, %v2256_v54  ;;  %3653 = vrcp.f32 %v2295_v35  ;;  %vm2263_vm0 = vweird.f32 %v3650_v22  ;;  %vm2301_vm9 = vweird.f32 %v2295_v35 }
 0x6fd   :  { %v2277_v43 = vmul.f32 %v3652_v5, %v2275_v63  ;;  %3655 = vtanh.f32 %v2251_v60  ;;  %vm2282_vm1 = vweird.f32 %v3652_v5  ;;  %vm2264_vm4 = vmor %vm2262_vm2, %vm2263_vm0  ;;  %v2305_v54 = vand.u32 2147483647, %v2295_v35 }
 0x6fe   :  { %v2259_v34 = vsub.f32 1.0, %v2258_v25  ;;  %vm2283_vm6 = vmor %vm2281_vm3, %vm2282_vm1 }
 0x6ff   :  { %v2278_v58 = vsub.f32 1.0, %v2277_v43  ;;  %vm2306_vm11 = vcmp.eq.f32.partialorder %v2305_v54, 8.507059e+37 }
 0x700   :  { %v2260_v21 = vmul.f32 %v3650_v22, %v2259_v34 }
 0x701   :  { %v2279_v31 = vmul.f32 %v3652_v5, %v2278_v58 }
 0x702   :  { %v3654_v13 = vpop.eup %3653  ;;  %v2261_v33 = vadd.f32 %v3650_v22, %v2260_v21 }
 0x703   :  { %v2280_v36 = vadd.f32 %v3652_v5, %v2279_v31  ;;  %v2297_v8 = vmul.f32 %v3654_v13, %v2295_v35  ;;  %v3656_v60 = vpop.eup %3655  ;;  %vm2302_vm8 = vweird.f32 %v3654_v13  ;;  %v2307_v31 = vand.u32 2147483648, %v2295_v35 }
 0x704   :  { %v2265_v25 = vsel %vm2264_vm4, %v3650_v22, %v2261_v33  ;;  %vm2303_vm10 = vmor %vm2301_vm9, %vm2302_vm8 }
 0x705   :  { %v2270_v43 = vsel %vm2267_vm5, %v2269_v49, %v2265_v25  ;;  %v2284_v34 = vsel %vm2283_vm6, %v3652_v5, %v2280_v36  ;;  %v2298_v57 = vsub.f32 1.0, %v2297_v8  ;;  %v2308_v42 = vor.u32 1.1754944e-38, %v2307_v31  ;;  %v7345_v25 = vld [vmem:[#allocation67_spill] sm:$0xff] }
 0x706   :  { %v2289_v58 = vsel %vm2286_vm7, %v2288_v61, %v2284_v34  ;;  %v2312_v56 = vmul.f32 %v3656_v60, %v2270_v43  ;;  %v7346_v60 = vld [vmem:[#allocation31_spill] sm:$0xff] }
 0x707   :  { %v2311_v16 = vmul.f32 0.0, %v2289_v58  ;;  %v2299_v17 = vmul.f32 %v3654_v13, %v2298_v57  ;;  %v2108_v43 = vadd.f32 %v7346_v60, %v7345_v25  ;;  %v6398_v60 = vld [vmem:[#allocation7 + $0x178] sm:$0xff] }
 0x709   :  { %v6262_v21 = vadd.f32 %v2312_v56, %v2311_v16  ;;  %v2300_v63 = vadd.f32 %v3654_v13, %v2299_v17  ;;  %v7342_v16 = vld [vmem:[#allocation29_spill] sm:$0xff] }
 0x70b   :  { %3657 = vtanh.f32 %v6262_v21  ;;  %v2304_v22 = vsel %vm2303_vm10, %v3654_v13, %v2300_v63 }
 0x70c   :  { %v2309_v14 = vsel %vm2306_vm11, %v2308_v42, %v2304_v22 }
 0x711   :  { %v3658_v5 = vpop.eup %3657 }
 0x712   :  { %v2315_v48 = vmul.f32 %v3658_v5, %v2309_v14 }
 0x714   :  { %2332 = vmatmul.f32.vlgmr.msrb.gmra.mxu0 %v2315_v48  ;;  %2352 = vmatmul.f32.vlgmr.msrb.gmra.mxu1 %v2315_v48 }
 0x715   :  { %2372 = vmatmul.f32.vlgmr.msra.gmra.mxu2 %v2315_v48  ;;  %2392 = vmatmul.f32.vlgmr.msra.gmra.mxu3 %v2315_v48 }
 0x716   :  { %2610 = vmatpush.msrb.mxu0 %v7275_v32  ;;  %2630 = vmatpush.msrb.mxu1 %v5818_v11  ;;  %v7313_v11 = vld [vmem:[#allocation48_spill] sm:$0xff] }
 0x717   :  { %2650 = vmatpush.msra.mxu2 %v5852_v10  ;;  %2670 = vmatpush.msra.mxu3 %v5826_v20  ;;  %v7315_v20 = vld [vmem:[#allocation18_spill] sm:$0xff]  ;;  %v7317_v10 = vld [vmem:[#allocation56_spill] sm:$0xff] }
 0x718   :  { %2611 = vmatpush.msrb.mxu0 %v5820_v7  ;;  %2631 = vmatpush.msrb.mxu1 %v7276_v23  ;;  %v7314_v7 = vld [vmem:[#allocation35_spill] sm:$0xff]  ;;  %v7343_v23 = vld [vmem:[#allocation65_spill] sm:$0xff] }
 0x719   :  { %2651 = vmatpush.msra.mxu2 %v5855_v28  ;;  %2671 = vmatpush.msra.mxu3 %v7277_v38  ;;  %v7318_v28 = vld [vmem:[#allocation16_spill] sm:$0xff]  ;;  %v7344_v38 = vld [vmem:[#allocation23_spill] sm:$0xff] }
 0x71a   :  { %2612 = vmatpush.msrb.mxu0 %v5829_v24  ;;  %2632 = vmatpush.msrb.mxu1 %v7278_v27  ;;  %v7316_v24 = vld [vmem:[#allocation36_spill] sm:$0xff]  ;;  %v2149_v27 = vadd.f32 %v7344_v38, %v7343_v23  ;;  %v6365_v38 = vld [vmem:[#allocation7 + $0x1a0] sm:$0xff] }
 0x71b   :  { %2652 = vmatpush.msra.mxu2 %v5860_v18  ;;  %2672 = vmatpush.msra.mxu3 %v7279_v4  ;;  %v7319_v18 = vld [vmem:[#allocation47_spill] sm:$0xff] }
 0x71c   :  { %2613 = vmatpush.msrb.mxu0 %v7280_v62  ;;  %2633 = vmatpush.msrb.mxu1 %v5864_v1  ;;  %v7320_v1 = vld [vmem:[#allocation10_spill] sm:$0xff] }
 0x71d   :  { %2653 = vmatpush.msra.mxu2 %v5876_v39  ;;  %2673 = vmatpush.msra.mxu3 %v5874_v53  ;;  %v7323_v53 = vld [vmem:[#allocation49_spill] sm:$0xff]  ;;  %v7324_v39 = vld [vmem:[#allocation55_spill] sm:$0xff] }
 0x71e   :  { %2614 = vmatpush.msrb.mxu0 %v5867_v15  ;;  %2634 = vmatpush.msrb.mxu1 %v5872_v12  ;;  %v7321_v15 = vld [vmem:[#allocation58_spill] sm:$0xff] }
 0x71f   :  { %2654 = vmatpush.msra.mxu2 %v5884_v45  ;;  %2674 = vmatpush.msra.mxu3 %v5882_v50  ;;  %v7322_v12 = vld [vmem:[#allocation54_spill] sm:$0xff]  ;;  %v7325_v50 = vld [vmem:[#allocation60_spill] sm:$0xff] }
 0x720   :  { %2615 = vmatpush.msrb.mxu0 %v5892_v19  ;;  %2635 = vmatpush.msrb.mxu1 %v5894_v51  ;;  %v7326_v45 = vld [vmem:[#allocation50_spill] sm:$0xff]  ;;  %v7327_v19 = vld [vmem:[#allocation51_spill] sm:$0xff]  ;;  %v7328_v51 = vld [vmem:[#allocation57_spill] sm:$0xff] }
 0x721   :  { %2655 = vmatpush.msra.mxu2 %v5900_v59  ;;  %2675 = vmatpush.msra.mxu3 %v5896_v41  ;;  %v7329_v41 = vld [vmem:[#allocation40_spill] sm:$0xff]  ;;  %v7330_v59 = vld [vmem:[#allocation59_spill] sm:$0xff] }
 0x722   :  { %2616 = vmatpush.msrb.mxu0 %v5902_v46  ;;  %2636 = vmatpush.msrb.mxu1 %v5904_v2  ;;  %v7331_v46 = vld [vmem:[#allocation52_spill] sm:$0xff]  ;;  %v7332_v2 = vld [vmem:[#allocation53_spill] sm:$0xff] }
 0x723   :  { %2656 = vmatpush.msra.mxu2 %v5912_v3  ;;  %2676 = vmatpush.msra.mxu3 %v5907_v0  ;;  %v7333_v0 = vld [vmem:[#allocation12_spill] sm:$0xff]  ;;  %v7334_v3 = vld [vmem:[#allocation39_spill] sm:$0xff] }
 0x724   :  { %2617 = vmatpush.msrb.mxu0 %v5914_v6  ;;  %2637 = vmatpush.msrb.mxu1 %v5916_v52  ;;  %v7335_v6 = vld [vmem:[#allocation21_spill] sm:$0xff]  ;;  %v7336_v52 = vld [vmem:[#allocation22_spill] sm:$0xff] }
 0x725   :  { %2657 = vmatpush.msra.mxu2 %v5946_v55  ;;  %2677 = vmatpush.msra.mxu3 %v5926_v9  ;;  %v7339_v9 = vld [vmem:[#allocation17_spill] sm:$0xff] }
 0x726   :  { %2618 = vmatpush.msrb.mxu0 %v5922_v44  ;;  %2638 = vmatpush.msrb.mxu1 %v5924_v29  ;;  %v7337_v44 = vld [vmem:[#allocation61_spill] sm:$0xff]  ;;  %v7338_v29 = vld [vmem:[#allocation11_spill] sm:$0xff] }
 0x727   :  { %2658 = vmatpush.msra.mxu2 %v5952_v30  ;;  %2678 = vmatpush.msra.mxu3 %v5933_v47  ;;  %v7341_v47 = vld [vmem:[#allocation34_spill] sm:$0xff] }
 0x728   :  { %2619 = vmatpush.msrb.mxu0 %v5929_v37  ;;  %2639 = vmatpush.msrb.mxu1 %v5931_v40  ;;  %v7340_v37 = vld [vmem:[#allocation62_spill] sm:$0xff]  ;;  %v2067_v56 = vadd.f32 %v7342_v16, %v7341_v47 }
 0x729   :  { %2659 = vmatpush.msra.mxu2 %v7313_v11  ;;  %2679 = vmatpush.msra.mxu3 %v7314_v7  ;;  %v2026_v40 = vadd.f32 %v7340_v37, %v7339_v9 }
 0x72a   :  { %2620 = vmatpush.msrb.mxu0 %v7315_v20  ;;  %2640 = vmatpush.msrb.mxu1 %v7316_v24 }
 0x72b   :  { %2660 = vmatpush.msra.mxu2 %v7317_v10  ;;  %2680 = vmatpush.msra.mxu3 %v7318_v28 }
 0x72c   :  { %2621 = vmatpush.msrb.mxu0 %v7319_v18  ;;  %2641 = vmatpush.msrb.mxu1 %v7320_v1 }
 0x72d   :  { %2661 = vmatpush.msra.mxu2 %v7321_v15  ;;  %2681 = vmatpush.msra.mxu3 %v7322_v12 }
 0x72e   :  { %2622 = vmatpush.msrb.mxu0 %v7323_v53  ;;  %2642 = vmatpush.msrb.mxu1 %v7324_v39 }
 0x72f   :  { %2662 = vmatpush.msra.mxu2 %v7325_v50  ;;  %2682 = vmatpush.msra.mxu3 %v7326_v45 }
 0x730   :  { %2623 = vmatpush.msrb.mxu0 %v7327_v19  ;;  %2643 = vmatpush.msrb.mxu1 %v7328_v51 }
 0x731   :  { %2663 = vmatpush.msra.mxu2 %v7329_v41  ;;  %2683 = vmatpush.msra.mxu3 %v7330_v59 }
 0x732   :  { %2624 = vmatpush.msrb.mxu0 %v7331_v46  ;;  %2644 = vmatpush.msrb.mxu1 %v7332_v2 }
 0x733   :  { %2664 = vmatpush.msra.mxu2 %v7333_v0  ;;  %2684 = vmatpush.msra.mxu3 %v7334_v3 }
 0x734   :  { %2625 = vmatpush.msrb.mxu0 %v7335_v6  ;;  %2645 = vmatpush.msrb.mxu1 %v7336_v52 }
 0x735   :  { %2665 = vmatpush.msra.mxu2 %v7337_v44  ;;  %2685 = vmatpush.msra.mxu3 %v7338_v29 }
 0x791   :  { %v2333_v57 = vpop.f32.mrf.mxu0  ;;  %v2353_v55 = vpop.f32.mrf.mxu1 }
 0x792   :  { %v2396_v30 = vadd.f32 %v2333_v57, %v2026_v40  ;;  %v2397_v17 = vadd.f32 %v2353_v55, %v2067_v56  ;;  %v6344_v56 = vld [vmem:[#allocation7 + $0x1e8] sm:$0xff]  ;;  %v6347_v57 = vld [vmem:[#allocation7 + $0x1f0] sm:$0xff]  ;;  %v6350_v55 = vld [vmem:[#allocation7 + $0x1f8] sm:$0xff] }
 0x794   :  { %v3451_v13 = vmul.f32 -1.442695, %v2396_v30  ;;  %v3452_v32 = vmul.f32 -1.442695, %v2397_v17  ;;  %v6353_v30 = vld [vmem:[#allocation7 + $0x1c0] sm:$0xff]  ;;  %v6356_v17 = vld [vmem:[#allocation7 + $0x1c8] sm:$0xff] }
 0x796   :  { %3659 = vpow2.f32 %v3451_v13  ;;  %v6359_v13 = vld [vmem:[#allocation7 + $0x1d0] sm:$0xff] }
 0x797   :  { %3661 = vpow2.f32 %v3452_v32  ;;  %v6362_v32 = vld [vmem:[#allocation7 + $0x1d8] sm:$0xff] }
 0x798   :  { %v2393_v4 = vpop.f32.mrf.mxu3  ;;  %v2373_v36 = vpop.f32.mrf.mxu2 }
 0x799   :  { %v2399_v62 = vadd.f32 %v2393_v4, %v2149_v27  ;;  %v2398_v63 = vadd.f32 %v2373_v36, %v2108_v43  ;;  %v6368_v27 = vld [vmem:[#allocation7 + $0x1a8] sm:$0xff]  ;;  %v6371_v4 = vld [vmem:[#allocation7 + $0x1b0] sm:$0xff]  ;;  %v6401_v43 = vld [vmem:[#allocation7 + $0x140] sm:$0xff] }
 0x79a   :  { %v6392_v36 = vld [vmem:[#allocation7 + $0x168] sm:$0xff] }
 0x79b   :  { %v3453_v61 = vmul.f32 -1.442695, %v2399_v62  ;;  %v6374_v62 = vld [vmem:[#allocation7 + $0x1b8] sm:$0xff] }
 0x79c   :  { %v3660_v35 = vpop.eup %3659 }
 0x79d   :  { %v3662_v26 = vpop.eup %3661  ;;  %v2403_v33 = vadd.f32 1.0, %v3660_v35  ;;  %3663 = vpow2.f32 %v3453_v61  ;;  %v6377_v61 = vld [vmem:[#allocation7 + $0x180] sm:$0xff]  ;;  %v6380_v35 = vld [vmem:[#allocation7 + $0x188] sm:$0xff] }
 0x79e   :  { %v2422_v49 = vadd.f32 1.0, %v3662_v26  ;;  %v6383_v26 = vld [vmem:[#allocation7 + $0x190] sm:$0xff] }
 0x79f   :  { %3665 = vrcp.f32 %v2403_v33  ;;  %v2415_v14 = vand.u32 2147483648, %v2403_v33  ;;  %v2413_v7 = vand.u32 2147483647, %v2403_v33  ;;  %vm2409_vm14 = vweird.f32 %v2403_v33 }
 0x7a0   :  { %3667 = vrcp.f32 %v2422_v49  ;;  %v2434_v48 = vand.u32 2147483648, %v2422_v49  ;;  %v2432_v24 = vand.u32 2147483647, %v2422_v49  ;;  %vm2428_vm15 = vweird.f32 %v2422_v49 }
 0x7a1   :  { %v2416_v18 = vor.u32 1.1754944e-38, %v2415_v14  ;;  %vm2414_vm2 = vcmp.eq.f32.partialorder %v2413_v7, 8.507059e+37  ;;  %v6428_v14 = vld [vmem:[#allocation7 + $0x108] sm:$0xff]  ;;  %v6437_v7 = vld [vmem:[#allocation7 + $0xe0] sm:$0xff] }
 0x7a2   :  { %v2435_v12 = vor.u32 1.1754944e-38, %v2434_v48  ;;  %vm2433_vm3 = vcmp.eq.f32.partialorder %v2432_v24, 8.507059e+37  ;;  %v6431_v48 = vld [vmem:[#allocation7 + $0x110] sm:$0xff] }
 0x7a3   :  { %v3664_v8 = vpop.eup %3663  ;;  %v6443_v24 = vld [vmem:[#allocation7 + $0xf0] sm:$0xff] }
 0x7a4   :  { %v2442_v34 = vadd.f32 1.0, %v3664_v8  ;;  %v6395_v8 = vld [vmem:[#allocation7 + $0x170] sm:$0xff] }
 0x7a5   :  { %v3666_v58 = vpop.eup %3665 }
 0x7a6   :  { %v3668_v31 = vpop.eup %3667  ;;  %v2405_v54 = vmul.f32 %v3666_v58, %v2403_v33  ;;  %3669 = vrcp.f32 %v2442_v34  ;;  %vm2410_vm12 = vweird.f32 %v3666_v58  ;;  %v2454_v3 = vand.u32 2147483648, %v2442_v34  ;;  %v6386_v33 = vld [vmem:[#allocation7 + $0x198] sm:$0xff] }
 0x7a7   :  { %v2424_v22 = vmul.f32 %v3668_v31, %v2422_v49  ;;  %3671 = vtanh.f32 %v2398_v63  ;;  %vm2429_vm13 = vweird.f32 %v3668_v31  ;;  %vm2411_vm0 = vmor %vm2409_vm14, %vm2410_vm12  ;;  %vm2448_vm5 = vweird.f32 %v2442_v34  ;;  %v6389_v49 = vld [vmem:[#allocation7 + $0x160] sm:$0xff]  ;;  %v6410_v63 = vld [vmem:[#allocation7 + $0x158] sm:$0xff] }
 0x7a8   :  { %v2406_v42 = vsub.f32 1.0, %v2405_v54  ;;  %vm2430_vm1 = vmor %vm2428_vm15, %vm2429_vm13  ;;  %v2452_v6 = vand.u32 2147483647, %v2442_v34  ;;  %v2455_v29 = vor.u32 1.1754944e-38, %v2454_v3  ;;  %v6416_v54 = vld [vmem:[#allocation7 + $0x128] sm:$0xff]  ;;  %v6494_v3 = vld [vmem:[#allocation7 + $0x78] sm:$0xff] }
 0x7a9   :  { %v2425_v5 = vsub.f32 1.0, %v2424_v22  ;;  %v6419_v22 = vld [vmem:[#allocation7 + $0x130] sm:$0xff]  ;;  %7360 = vst [vmem:[#allocation50_spill] sm:$0xff] %v6494_v3 }
 0x7aa   :  { %v2407_v11 = vmul.f32 %v3666_v58, %v2406_v42  ;;  %vm2453_vm7 = vcmp.eq.f32.partialorder %v2452_v6, 8.507059e+37  ;;  %v6422_v42 = vld [vmem:[#allocation7 + $0x138] sm:$0xff]  ;;  %v6497_v6 = vld [vmem:[#allocation7 + $0x40] sm:$0xff] }
 0x7ab   :  { %v2426_v20 = vmul.f32 %v3668_v31, %v2425_v5  ;;  %v6425_v5 = vld [vmem:[#allocation7 + $0x100] sm:$0xff]  ;;  %7361 = vst [vmem:[#allocation51_spill] sm:$0xff] %v6497_v6 }
 0x7ac   :  { %v3670_v10 = vpop.eup %3669  ;;  %v2408_v28 = vadd.f32 %v3666_v58, %v2407_v11  ;;  %v6434_v11 = vld [vmem:[#allocation7 + $0x118] sm:$0xff] }
 0x7ad   :  { %v2427_v1 = vadd.f32 %v3668_v31, %v2426_v20  ;;  %v2444_v15 = vmul.f32 %v3670_v10, %v2442_v34  ;;  %v3672_v39 = vpop.eup %3671  ;;  %vm2449_vm4 = vweird.f32 %v3670_v10  ;;  %v6404_v34 = vld [vmem:[#allocation7 + $0x148] sm:$0xff] }
 0x7ae   :  { %v2412_v53 = vsel %vm2411_vm0, %v3666_v58, %v2408_v28  ;;  %vm2450_vm6 = vmor %vm2448_vm5, %vm2449_vm4  ;;  %v6407_v58 = vld [vmem:[#allocation7 + $0x150] sm:$0xff]  ;;  %v6440_v20 = vld [vmem:[#allocation7 + $0xe8] sm:$0xff] }
 0x7af   :  { %v2417_v50 = vsel %vm2414_vm2, %v2416_v18, %v2412_v53  ;;  %v2431_v45 = vsel %vm2430_vm1, %v3668_v31, %v2427_v1  ;;  %v2445_v19 = vsub.f32 1.0, %v2444_v15  ;;  %v6413_v31 = vld [vmem:[#allocation7 + $0x120] sm:$0xff]  ;;  %v6452_v18 = vld [vmem:[#allocation7 + $0xc8] sm:$0xff]  ;;  %v6455_v1 = vld [vmem:[#allocation7 + $0xd0] sm:$0xff] }
 0x7b0   :  { %v2436_v51 = vsel %vm2433_vm3, %v2435_v12, %v2431_v45  ;;  %v2459_v41 = vmul.f32 %v3672_v39, %v2417_v50  ;;  %v6449_v28 = vld [vmem:[#allocation7 + $0xc0] sm:$0xff]  ;;  %7347 = vst [vmem:[#allocation48_spill] sm:$0xff] %v6455_v1  ;;  %v6458_v15 = vld [vmem:[#allocation7 + $0xd8] sm:$0xff]  ;;  %v6464_v53 = vld [vmem:[#allocation7 + $0xa8] sm:$0xff] }
 0x7b1   :  { %v2458_v59 = vmul.f32 %v2436_v51, %v6262_v21  ;;  %v2446_v46 = vmul.f32 %v3670_v10, %v2445_v19  ;;  %v6341_v21 = vld [vmem:[#allocation7 + $0x1e0] sm:$0xff]  ;;  %7348 = vst [vmem:[#allocation35_spill] sm:$0xff] %v6458_v15  ;;  %v6467_v39 = vld [vmem:[#allocation7 + $0xb0] sm:$0xff]  ;;  %v6470_v50 = vld [vmem:[#allocation7 + $0xb8] sm:$0xff] }
 0x7b2   :  { %v6461_v12 = vld [vmem:[#allocation7 + $0xa0] sm:$0xff]  ;;  %7350 = vst [vmem:[#allocation36_spill] sm:$0xff] %v6464_v53  ;;  %v6476_v19 = vld [vmem:[#allocation7 + $0x88] sm:$0xff]  ;;  %v6479_v51 = vld [vmem:[#allocation7 + $0x90] sm:$0xff] }
 0x7b3   :  { %v6338_v2 = vadd.f32 %v2459_v41, %v2458_v59  ;;  %v2447_v0 = vadd.f32 %v3670_v10, %v2446_v46  ;;  %7349 = vst [vmem:[#allocation18_spill] sm:$0xff] %v6461_v12  ;;  %v6473_v45 = vld [vmem:[#allocation7 + $0x80] sm:$0xff]  ;;  %v6482_v41 = vld [vmem:[#allocation7 + $0x98] sm:$0xff]  ;;  %v6488_v46 = vld [vmem:[#allocation7 + $0x68] sm:$0xff] }
 0x7b4   :  { %7351 = vst [vmem:[#allocation56_spill] sm:$0xff] %v6467_v39  ;;  %v6485_v59 = vld [vmem:[#allocation7 + $0x60] sm:$0xff] }
 0x7b5   :  { %3673 = vtanh.f32 %v6338_v2  ;;  %v2451_v52 = vsel %vm2450_vm6, %v3670_v10, %v2447_v0  ;;  %v6446_v10 = vld [vmem:[#allocation7 + $0xf8] sm:$0xff]  ;;  %7352 = vst [vmem:[#allocation16_spill] sm:$0xff] %v6470_v50  ;;  %v6491_v0 = vld [vmem:[#allocation7 + $0x70] sm:$0xff] }
 0x7b6   :  { %v2456_v40 = vsel %vm2453_vm7, %v2455_v29, %v2451_v52  ;;  %7353 = vst [vmem:[#allocation47_spill] sm:$0xff] %v6473_v45  ;;  %v6500_v52 = vld [vmem:[#allocation7 + $0x48] sm:$0xff]  ;;  %v6503_v29 = vld [vmem:[#allocation7 + $0x50] sm:$0xff] }
 0x7b7   :  { %7354 = vst [vmem:[#allocation10_spill] sm:$0xff] %v6476_v19 }
 0x7b8   :  { %7355 = vst [vmem:[#allocation58_spill] sm:$0xff] %v6479_v51 }
 0x7b9   :  { %7356 = vst [vmem:[#allocation54_spill] sm:$0xff] %v6482_v41 }
 0x7ba   :  { %7357 = vst [vmem:[#allocation49_spill] sm:$0xff] %v6485_v59 }
 0x7bb   :  { %v3674_v37 = vpop.eup %3673  ;;  %7358 = vst [vmem:[#allocation55_spill] sm:$0xff] %v6488_v46 }
 0x7bc   :  { %v2462_v16 = vmul.f32 %v3674_v37, %v2456_v40  ;;  %7359 = vst [vmem:[#allocation60_spill] sm:$0xff] %v6491_v0  ;;  %v6506_v37 = vld [vmem:[#allocation7 + $0x58] sm:$0xff]  ;;  %v6509_v40 = vld [vmem:[#allocation7 + $0x20] sm:$0xff] }
 0x7bd   :  { %7362 = vst [vmem:[#allocation57_spill] sm:$0xff] %v6500_v52 }
 0x7be   :  { %2479 = vmatmul.f32.vlgmr.msra.gmra.mxu0 %v2462_v16  ;;  %2499 = vmatmul.f32.vlgmr.msra.gmra.mxu1 %v2462_v16  ;;  %7363 = vst [vmem:[#allocation40_spill] sm:$0xff] %v6503_v29 }
 0x7bf   :  { %2519 = vmatmul.f32.vlgmr.msrb.gmra.mxu2 %v2462_v16  ;;  %2539 = vmatmul.f32.vlgmr.msrb.gmra.mxu3 %v2462_v16  ;;  %7364 = vst [vmem:[#allocation59_spill] sm:$0xff] %v6506_v37  ;;  %v6512_v16 = vld [vmem:[#allocation7 + $0x28] sm:$0xff] }
 0x7c0   :  { %2757 = vmatpush.msra.mxu0 %v6341_v21  ;;  %2777 = vmatpush.msra.mxu1 %v6344_v56  ;;  %7365 = vst [vmem:[#allocation52_spill] sm:$0xff] %v6509_v40 }
 0x7c1   :  { %2797 = vmatpush.msrb.mxu2 %v6347_v57  ;;  %2817 = vmatpush.msrb.mxu3 %v6350_v55  ;;  %7366 = vst [vmem:[#allocation53_spill] sm:$0xff] %v6512_v16 }
 0x7c2   :  { %2758 = vmatpush.msra.mxu0 %v6353_v30  ;;  %2778 = vmatpush.msra.mxu1 %v6356_v17 }
 0x7c3   :  { %2798 = vmatpush.msrb.mxu2 %v6359_v13  ;;  %2818 = vmatpush.msrb.mxu3 %v6362_v32 }
 0x7c4   :  { %2759 = vmatpush.msra.mxu0 %v6365_v38  ;;  %2779 = vmatpush.msra.mxu1 %v6368_v27 }
 0x7c5   :  { %2799 = vmatpush.msrb.mxu2 %v6371_v4  ;;  %2819 = vmatpush.msrb.mxu3 %v6374_v62 }
 0x7c6   :  { %2760 = vmatpush.msra.mxu0 %v6377_v61  ;;  %2780 = vmatpush.msra.mxu1 %v6380_v35 }
 0x7c7   :  { %2800 = vmatpush.msrb.mxu2 %v6383_v26  ;;  %2820 = vmatpush.msrb.mxu3 %v6386_v33 }
 0x7c8   :  { %2761 = vmatpush.msra.mxu0 %v6389_v49  ;;  %2781 = vmatpush.msra.mxu1 %v6392_v36 }
 0x7c9   :  { %2801 = vmatpush.msrb.mxu2 %v6395_v8  ;;  %2821 = vmatpush.msrb.mxu3 %v6398_v60 }
 0x7ca   :  { %2762 = vmatpush.msra.mxu0 %v6401_v43  ;;  %2782 = vmatpush.msra.mxu1 %v6404_v34 }
 0x7cb   :  { %2802 = vmatpush.msrb.mxu2 %v6407_v58  ;;  %2822 = vmatpush.msrb.mxu3 %v6410_v63 }
 0x7cc   :  { %2763 = vmatpush.msra.mxu0 %v6413_v31  ;;  %2783 = vmatpush.msra.mxu1 %v6416_v54 }
 0x7cd   :  { %2803 = vmatpush.msrb.mxu2 %v6419_v22  ;;  %2823 = vmatpush.msrb.mxu3 %v6422_v42 }
 0x7ce   :  { %2764 = vmatpush.msra.mxu0 %v6425_v5  ;;  %2784 = vmatpush.msra.mxu1 %v6428_v14 }
 0x7cf   :  { %2804 = vmatpush.msrb.mxu2 %v6431_v48  ;;  %2824 = vmatpush.msrb.mxu3 %v6434_v11 }
 0x7d0   :  { %2765 = vmatpush.msra.mxu0 %v6437_v7  ;;  %2785 = vmatpush.msra.mxu1 %v6440_v20 }
 0x7d1   :  { %2805 = vmatpush.msrb.mxu2 %v6443_v24  ;;  %2825 = vmatpush.msrb.mxu3 %v6446_v10 }
 0x7d2   :  { %2766 = vmatpush.msra.mxu0 %v6449_v28  ;;  %2786 = vmatpush.msra.mxu1 %v6452_v18 }
 0x7d3   :  { %2806 = vmatpush.msrb.mxu2 %v6455_v1  ;;  %2826 = vmatpush.msrb.mxu3 %v6458_v15 }
 0x7d4   :  { %2767 = vmatpush.msra.mxu0 %v6461_v12  ;;  %2787 = vmatpush.msra.mxu1 %v6464_v53 }
 0x7d5   :  { %2807 = vmatpush.msrb.mxu2 %v6467_v39  ;;  %2827 = vmatpush.msrb.mxu3 %v6470_v50 }
 0x7d6   :  { %2768 = vmatpush.msra.mxu0 %v6473_v45  ;;  %2788 = vmatpush.msra.mxu1 %v6476_v19 }
 0x7d7   :  { %2808 = vmatpush.msrb.mxu2 %v6479_v51  ;;  %2828 = vmatpush.msrb.mxu3 %v6482_v41 }
 0x7d8   :  { %2769 = vmatpush.msra.mxu0 %v6485_v59  ;;  %2789 = vmatpush.msra.mxu1 %v6488_v46 }
 0x7d9   :  { %2809 = vmatpush.msrb.mxu2 %v6491_v0  ;;  %2829 = vmatpush.msrb.mxu3 %v6494_v3  ;;  %v7373_v3 = vld [vmem:[#allocation24_spill] sm:$0xff] }
 0x7da   :  { %2770 = vmatpush.msra.mxu0 %v6497_v6  ;;  %2790 = vmatpush.msra.mxu1 %v6500_v52  ;;  %v6515_v6 = vld [vmem:[#allocation7 + $0x30] sm:$0xff]  ;;  %v6518_v52 = vld [vmem:[#allocation7 + $0x38] sm:$0xff] }
 0x7db   :  { %2810 = vmatpush.msrb.mxu2 %v6503_v29  ;;  %2830 = vmatpush.msrb.mxu3 %v6506_v37  ;;  %7367 = vst [vmem:[#allocation12_spill] sm:$0xff] %v6515_v6  ;;  %v6521_v29 = vld [vmem:[#allocation7] sm:$0xff]  ;;  %v6524_v37 = vld [vmem:[#allocation7 + $0x8] sm:$0xff] }
 0x7dc   :  { %2771 = vmatpush.msra.mxu0 %v6509_v40  ;;  %2791 = vmatpush.msra.mxu1 %v6512_v16  ;;  %7368 = vst [vmem:[#allocation39_spill] sm:$0xff] %v6518_v52  ;;  %v6528_v40 = vld [vmem:[#allocation7 + $0x18] sm:$0xff] }
 0x7dd   :  { %2811 = vmatpush.msrb.mxu2 %v6515_v6  ;;  %2831 = vmatpush.msrb.mxu3 %v6518_v52  ;;  %7369 = vst [vmem:[#allocation21_spill] sm:$0xff] %v6521_v29  ;;  %v7372_v6 = vld [vmem:[#allocation30_spill] sm:$0xff]  ;;  %v2070_v52 = vadd.f32 %v7373_v3, %v7341_v47 }
 0x7de   :  { %2772 = vmatpush.msra.mxu0 %v6521_v29  ;;  %7370 = vst [vmem:[#allocation22_spill] sm:$0xff] %v6524_v37  ;;  %2792 = vmatpush.msra.mxu1 %v6524_v37  ;;  %v2029_v16 = vadd.f32 %v7372_v6, %v7339_v9  ;;  %v7374_v37 = vld [vmem:[#allocation42_spill] sm:$0xff] }
 0x7df   :  { %2812 = vmatpush.msrb.mxu2 %v7337_v44  ;;  %7371 = vst [vmem:[#allocation61_spill] sm:$0xff] %v6528_v40  ;;  %2832 = vmatpush.msrb.mxu3 %v6528_v40  ;;  %v2152_v44 = vadd.f32 %v7374_v37, %v7343_v23 }
 0x83b   :  { %v2480_v0 = vpop.f32.mrf.mxu0  ;;  %v2500_v46 = vpop.f32.mrf.mxu1 }
 0x83c   :  { %v2543_v59 = vadd.f32 %v2480_v0, %v2029_v16  ;;  %v2544_v29 = vadd.f32 %v2500_v46, %v2070_v52 }
 0x83e   :  { %v3454_v41 = vmul.f32 -1.442695, %v2543_v59  ;;  %v3455_v51 = vmul.f32 -1.442695, %v2544_v29  ;;  %v7375_v59 = vld [vmem:[#allocation25_spill] sm:$0xff] }
 0x83f   :  { %v2111_v46 = vadd.f32 %v7375_v59, %v7345_v25 }
 0x840   :  { %3675 = vpow2.f32 %v3454_v41 }
 0x841   :  { %3677 = vpow2.f32 %v3455_v51 }
 0x842   :  { %v2540_v19 = vpop.f32.mrf.mxu3  ;;  %v2520_v3 = vpop.f32.mrf.mxu2 }
 0x843   :  { %v2546_v45 = vadd.f32 %v2540_v19, %v2152_v44  ;;  %v2545_v29 = vadd.f32 %v2520_v3, %v2111_v46 }
 0x845   :  { %v3456_v40 = vmul.f32 -1.442695, %v2546_v45 }
 0x846   :  { %v3676_v50 = vpop.eup %3675 }
 0x847   :  { %v3678_v39 = vpop.eup %3677  ;;  %v2550_v6 = vadd.f32 1.0, %v3676_v50  ;;  %3679 = vpow2.f32 %v3456_v40 }
 0x848   :  { %v2569_v9 = vadd.f32 1.0, %v3678_v39 }
 0x849   :  { %3681 = vrcp.f32 %v2550_v6  ;;  %v2562_v44 = vand.u32 2147483648, %v2550_v6  ;;  %v2560_v40 = vand.u32 2147483647, %v2550_v6  ;;  %vm2556_vm10 = vweird.f32 %v2550_v6 }
 0x84a   :  { %3683 = vrcp.f32 %v2569_v9  ;;  %v2581_v50 = vand.u32 2147483648, %v2569_v9  ;;  %v2579_v47 = vand.u32 2147483647, %v2569_v9  ;;  %vm2575_vm11 = vweird.f32 %v2569_v9 }
 0x84b   :  { %v2563_v3 = vor.u32 1.1754944e-38, %v2562_v44  ;;  %vm2561_vm14 = vcmp.eq.f32.partialorder %v2560_v40, 8.507059e+37 }
 0x84c   :  { %vm2580_vm15 = vcmp.eq.f32.partialorder %v2579_v47, 8.507059e+37 }
 0x84d   :  { %v3680_v0 = vpop.eup %3679 }
 0x84e   :  { %v2589_v41 = vadd.f32 1.0, %v3680_v0 }
 0x84f   :  { %v3682_v52 = vpop.eup %3681 }
 0x850   :  { %v3684_v37 = vpop.eup %3683  ;;  %v2552_v51 = vmul.f32 %v3682_v52, %v2550_v6  ;;  %3685 = vrcp.f32 %v2589_v41  ;;  %vm2557_vm8 = vweird.f32 %v3682_v52  ;;  %vm2595_vm1 = vweird.f32 %v2589_v41 }
 0x851   :  { %v2571_v19 = vmul.f32 %v3684_v37, %v2569_v9  ;;  %3687 = vtanh.f32 %v2545_v29  ;;  %vm2576_vm9 = vweird.f32 %v3684_v37  ;;  %vm2558_vm12 = vmor %vm2556_vm10, %vm2557_vm8 }
 0x852   :  { %v2553_v45 = vsub.f32 1.0, %v2552_v51  ;;  %vm2577_vm13 = vmor %vm2575_vm11, %vm2576_vm9  ;;  %v2582_v51 = vor.u32 1.1754944e-38, %v2581_v50 }
 0x853   :  { %v2572_v16 = vsub.f32 1.0, %v2571_v19 }
 0x854   :  { %v2554_v39 = vmul.f32 %v3682_v52, %v2553_v45 }
 0x855   :  { %v2573_v23 = vmul.f32 %v3684_v37, %v2572_v16 }
 0x856   :  { %v3686_v53 = vpop.eup %3685  ;;  %v2555_v59 = vadd.f32 %v3682_v52, %v2554_v39 }
 0x857   :  { %v2574_v0 = vadd.f32 %v3684_v37, %v2573_v23  ;;  %v2591_v46 = vmul.f32 %v3686_v53, %v2589_v41  ;;  %v3688_v29 = vpop.eup %3687  ;;  %vm2596_vm0 = vweird.f32 %v3686_v53  ;;  %v2601_v23 = vand.u32 2147483648, %v2589_v41 }
 0x858   :  { %v2559_v19 = vsel %vm2558_vm12, %v3682_v52, %v2555_v59  ;;  %v2599_v52 = vand.u32 2147483647, %v2589_v41  ;;  %vm2597_vm2 = vmor %vm2595_vm1, %vm2596_vm0  ;;  %v7382_v41 = vld [vmem:[#allocation47_spill] sm:$0xff]  ;;  %v7383_v59 = vld [vmem:[#allocation10_spill] sm:$0xff] }
 0x859   :  { %v2564_v25 = vsel %vm2561_vm14, %v2563_v3, %v2559_v19  ;;  %v2578_v45 = vsel %vm2577_vm13, %v3684_v37, %v2574_v0  ;;  %v2592_v12 = vsub.f32 1.0, %v2591_v46  ;;  %v2602_v50 = vor.u32 1.1754944e-38, %v2601_v23  ;;  %v7384_v3 = vld [vmem:[#allocation58_spill] sm:$0xff]  ;;  %v7386_v46 = vld [vmem:[#allocation49_spill] sm:$0xff]  ;;  %v7388_v19 = vld [vmem:[#allocation60_spill] sm:$0xff] }
 0x85a   :  { %v2583_v16 = vsel %vm2580_vm15, %v2582_v51, %v2578_v45  ;;  %v2606_v15 = vmul.f32 %v3688_v29, %v2564_v25  ;;  %vm2600_vm3 = vcmp.eq.f32.partialorder %v2599_v52, 8.507059e+37  ;;  %v7376_v25 = vld [vmem:[#allocation48_spill] sm:$0xff]  ;;  %v7385_v0 = vld [vmem:[#allocation54_spill] sm:$0xff]  ;;  %v7387_v51 = vld [vmem:[#allocation55_spill] sm:$0xff] }
 0x85b   :  { %v2605_v1 = vmul.f32 %v2583_v16, %v6338_v2  ;;  %v2593_v39 = vmul.f32 %v3686_v53, %v2592_v12  ;;  %v7377_v2 = vld [vmem:[#allocation35_spill] sm:$0xff]  ;;  %v7380_v12 = vld [vmem:[#allocation56_spill] sm:$0xff]  ;;  %v7389_v29 = vld [vmem:[#allocation50_spill] sm:$0xff] }
 0x85c   :  { %v7390_v45 = vld [vmem:[#allocation51_spill] sm:$0xff]  ;;  %v7391_v16 = vld [vmem:[#allocation57_spill] sm:$0xff]  ;;  %v7394_v23 = vld [vmem:[#allocation52_spill] sm:$0xff] }
 0x85d   :  { %v6540_v6 = vadd.f32 %v2606_v15, %v2605_v1  ;;  %v2594_v9 = vadd.f32 %v3686_v53, %v2593_v39  ;;  %v7378_v1 = vld [vmem:[#allocation18_spill] sm:$0xff]  ;;  %v7379_v15 = vld [vmem:[#allocation36_spill] sm:$0xff]  ;;  %v7395_v52 = vld [vmem:[#allocation53_spill] sm:$0xff] }
 0x85e   :  { %v7392_v39 = vld [vmem:[#allocation40_spill] sm:$0xff] }
 0x85f   :  { %3689 = vtanh.f32 %v6540_v6  ;;  %v2598_v44 = vsel %vm2597_vm2, %v3686_v53, %v2594_v9  ;;  %v7381_v53 = vld [vmem:[#allocation16_spill] sm:$0xff]  ;;  %v7393_v9 = vld [vmem:[#allocation59_spill] sm:$0xff] }
 0x860   :  { %v2603_v37 = vsel %vm2600_vm3, %v2602_v50, %v2598_v44  ;;  %v7396_v44 = vld [vmem:[#allocation12_spill] sm:$0xff]  ;;  %v7397_v50 = vld [vmem:[#allocation39_spill] sm:$0xff] }
 0x865   :  { %v3690_v47 = vpop.eup %3689 }
 0x866   :  { %v2609_v40 = vmul.f32 %v3690_v47, %v2603_v37  ;;  %v7398_v47 = vld [vmem:[#allocation21_spill] sm:$0xff]  ;;  %v7399_v37 = vld [vmem:[#allocation22_spill] sm:$0xff] }
 0x868   :  { %2626 = vmatmul.f32.vlgmr.msrb.gmra.mxu0 %v2609_v40  ;;  %2646 = vmatmul.f32.vlgmr.msrb.gmra.mxu1 %v2609_v40 }
 0x869   :  { %2666 = vmatmul.f32.vlgmr.msra.gmra.mxu2 %v2609_v40  ;;  %2686 = vmatmul.f32.vlgmr.msra.gmra.mxu3 %v2609_v40  ;;  %v6605_v40 = vld [vmem:[#allocation7 + $0x10] sm:$0xff] }
 0x86a   :  { %2904 = vmatpush.msrb.mxu0 %v6341_v21  ;;  %2924 = vmatpush.msrb.mxu1 %v6344_v56  ;;  %7400 = vst [vmem:[#allocation11_spill] sm:$0xff] %v6605_v40 }
 0x86b   :  { %2944 = vmatpush.msra.mxu2 %v6347_v57  ;;  %2964 = vmatpush.msra.mxu3 %v6350_v55 }
 0x86c   :  { %2905 = vmatpush.msrb.mxu0 %v6353_v30  ;;  %2925 = vmatpush.msrb.mxu1 %v6356_v17 }
 0x86d   :  { %2945 = vmatpush.msra.mxu2 %v6359_v13  ;;  %2965 = vmatpush.msra.mxu3 %v6362_v32 }
 0x86e   :  { %2906 = vmatpush.msrb.mxu0 %v6365_v38  ;;  %2926 = vmatpush.msrb.mxu1 %v6368_v27 }
 0x86f   :  { %2946 = vmatpush.msra.mxu2 %v6371_v4  ;;  %2966 = vmatpush.msra.mxu3 %v6374_v62 }
 0x870   :  { %2907 = vmatpush.msrb.mxu0 %v6377_v61  ;;  %2927 = vmatpush.msrb.mxu1 %v6380_v35 }
 0x871   :  { %2947 = vmatpush.msra.mxu2 %v6383_v26  ;;  %2967 = vmatpush.msra.mxu3 %v6386_v33 }
 0x872   :  { %2908 = vmatpush.msrb.mxu0 %v6389_v49  ;;  %2928 = vmatpush.msrb.mxu1 %v6392_v36 }
 0x873   :  { %2948 = vmatpush.msra.mxu2 %v6395_v8  ;;  %2968 = vmatpush.msra.mxu3 %v6398_v60 }
 0x874   :  { %2909 = vmatpush.msrb.mxu0 %v6401_v43  ;;  %2929 = vmatpush.msrb.mxu1 %v6404_v34 }
 0x875   :  { %2949 = vmatpush.msra.mxu2 %v6407_v58  ;;  %2969 = vmatpush.msra.mxu3 %v6410_v63 }
 0x876   :  { %2910 = vmatpush.msrb.mxu0 %v6413_v31  ;;  %2930 = vmatpush.msrb.mxu1 %v6416_v54 }
 0x877   :  { %2950 = vmatpush.msra.mxu2 %v6419_v22  ;;  %2970 = vmatpush.msra.mxu3 %v6422_v42 }
 0x878   :  { %2911 = vmatpush.msrb.mxu0 %v6425_v5  ;;  %2931 = vmatpush.msrb.mxu1 %v6428_v14 }
 0x879   :  { %2951 = vmatpush.msra.mxu2 %v6431_v48  ;;  %2971 = vmatpush.msra.mxu3 %v6434_v11 }
 0x87a   :  { %2912 = vmatpush.msrb.mxu0 %v6437_v7  ;;  %2932 = vmatpush.msrb.mxu1 %v6440_v20 }
 0x87b   :  { %2952 = vmatpush.msra.mxu2 %v6443_v24  ;;  %2972 = vmatpush.msra.mxu3 %v6446_v10 }
 0x87c   :  { %2913 = vmatpush.msrb.mxu0 %v6449_v28  ;;  %2933 = vmatpush.msrb.mxu1 %v6452_v18 }
 0x87d   :  { %2953 = vmatpush.msra.mxu2 %v7376_v25  ;;  %2973 = vmatpush.msra.mxu3 %v7377_v2 }
 0x87e   :  { %2914 = vmatpush.msrb.mxu0 %v7378_v1  ;;  %2934 = vmatpush.msrb.mxu1 %v7379_v15 }
 0x87f   :  { %2954 = vmatpush.msra.mxu2 %v7380_v12  ;;  %2974 = vmatpush.msra.mxu3 %v7381_v53 }
 0x880   :  { %2915 = vmatpush.msrb.mxu0 %v7382_v41  ;;  %2935 = vmatpush.msrb.mxu1 %v7383_v59 }
 0x881   :  { %2955 = vmatpush.msra.mxu2 %v7384_v3  ;;  %2975 = vmatpush.msra.mxu3 %v7385_v0  ;;  %v7407_v0 = vld [vmem:[#allocation26_spill] sm:$0xff] }
 0x882   :  { %2916 = vmatpush.msrb.mxu0 %v7386_v46  ;;  %2936 = vmatpush.msrb.mxu1 %v7387_v51 }
 0x883   :  { %2956 = vmatpush.msra.mxu2 %v7388_v19  ;;  %2976 = vmatpush.msra.mxu3 %v7389_v29  ;;  %v7405_v29 = vld [vmem:[#allocation41_spill] sm:$0xff] }
 0x884   :  { %2917 = vmatpush.msrb.mxu0 %v7390_v45  ;;  %2937 = vmatpush.msrb.mxu1 %v7391_v16  ;;  %v7401_v16 = vld [vmem:[#allocation61_spill] sm:$0xff] }
 0x885   :  { %2957 = vmatpush.msra.mxu2 %v7392_v39  ;;  %2977 = vmatpush.msra.mxu3 %v7393_v9  ;;  %v7402_v39 = vld [vmem:[#allocation17_spill] sm:$0xff]  ;;  %v7403_v9 = vld [vmem:[#allocation32_spill] sm:$0xff] }
 0x886   :  { %2918 = vmatpush.msrb.mxu0 %v7394_v23  ;;  %2938 = vmatpush.msrb.mxu1 %v7395_v52  ;;  %v2032_v45 = vadd.f32 %v7403_v9, %v7402_v39  ;;  %v7404_v23 = vld [vmem:[#allocation34_spill] sm:$0xff] }
 0x887   :  { %2958 = vmatpush.msra.mxu2 %v7396_v44  ;;  %2978 = vmatpush.msra.mxu3 %v7397_v50  ;;  %v2073_v52 = vadd.f32 %v7405_v29, %v7404_v23 }
 0x888   :  { %2919 = vmatpush.msrb.mxu0 %v7398_v47  ;;  %2939 = vmatpush.msrb.mxu1 %v7399_v37  ;;  %v7406_v37 = vld [vmem:[#allocation65_spill] sm:$0xff] }
 0x889   :  { %2959 = vmatpush.msra.mxu2 %v6605_v40  ;;  %2979 = vmatpush.msra.mxu3 %v7401_v16  ;;  %v2155_v3 = vadd.f32 %v7407_v0, %v7406_v37 }
 0x8e5   :  { %v2627_v19 = vpop.f32.mrf.mxu0  ;;  %v2647_v44 = vpop.f32.mrf.mxu1 }
 0x8e6   :  { %v2690_v51 = vadd.f32 %v2627_v19, %v2032_v45  ;;  %v2691_v50 = vadd.f32 %v2647_v44, %v2073_v52  ;;  %v7408_v45 = vld [vmem:[#allocation67_spill] sm:$0xff] }
 0x8e8   :  { %v3457_v46 = vmul.f32 -1.442695, %v2690_v51  ;;  %v3458_v47 = vmul.f32 -1.442695, %v2691_v50  ;;  %v7409_v51 = vld [vmem:[#allocation33_spill] sm:$0xff] }
 0x8e9   :  { %v2114_v52 = vadd.f32 %v7409_v51, %v7408_v45 }
 0x8ea   :  { %3691 = vpow2.f32 %v3457_v46 }
 0x8eb   :  { %3693 = vpow2.f32 %v3458_v47 }
 0x8ec   :  { %v2687_v40 = vpop.f32.mrf.mxu3  ;;  %v2667_v29 = vpop.f32.mrf.mxu2 }
 0x8ed   :  { %v2693_v59 = vadd.f32 %v2687_v40, %v2155_v3  ;;  %v2692_v50 = vadd.f32 %v2667_v29, %v2114_v52 }
 0x8ef   :  { %v3459_v16 = vmul.f32 -1.442695, %v2693_v59 }
 0x8f0   :  { %v3692_v41 = vpop.eup %3691 }
 0x8f1   :  { %v3694_v53 = vpop.eup %3693  ;;  %v2697_v9 = vadd.f32 1.0, %v3692_v41  ;;  %3695 = vpow2.f32 %v3459_v16 }
 0x8f2   :  { %v2716_v39 = vadd.f32 1.0, %v3694_v53 }
 0x8f3   :  { %3697 = vrcp.f32 %v2697_v9  ;;  %v2709_v37 = vand.u32 2147483648, %v2697_v9  ;;  %v2707_v16 = vand.u32 2147483647, %v2697_v9  ;;  %vm2703_vm6 = vweird.f32 %v2697_v9 }
 0x8f4   :  { %3699 = vrcp.f32 %v2716_v39  ;;  %v2728_v41 = vand.u32 2147483648, %v2716_v39  ;;  %v2726_v12 = vand.u32 2147483647, %v2716_v39  ;;  %vm2722_vm7 = vweird.f32 %v2716_v39 }
 0x8f5   :  { %v2710_v29 = vor.u32 1.1754944e-38, %v2709_v37  ;;  %vm2708_vm10 = vcmp.eq.f32.partialorder %v2707_v16, 8.507059e+37 }
 0x8f6   :  { %vm2727_vm11 = vcmp.eq.f32.partialorder %v2726_v12, 8.507059e+37 }
 0x8f7   :  { %v3696_v19 = vpop.eup %3695 }
 0x8f8   :  { %v2736_v46 = vadd.f32 1.0, %v3696_v19 }
 0x8f9   :  { %v3698_v44 = vpop.eup %3697 }
 0x8fa   :  { %v3700_v0 = vpop.eup %3699  ;;  %v2699_v47 = vmul.f32 %v3698_v44, %v2697_v9  ;;  %3701 = vrcp.f32 %v2736_v46  ;;  %vm2704_vm4 = vweird.f32 %v3698_v44  ;;  %vm2742_vm13 = vweird.f32 %v2736_v46 }
 0x8fb   :  { %v2718_v3 = vmul.f32 %v3700_v0, %v2716_v39  ;;  %3703 = vtanh.f32 %v2692_v50  ;;  %vm2723_vm5 = vweird.f32 %v3700_v0  ;;  %vm2705_vm8 = vmor %vm2703_vm6, %vm2704_vm4  ;;  %v2746_v37 = vand.u32 2147483647, %v2736_v46 }
 0x8fc   :  { %v2700_v59 = vsub.f32 1.0, %v2699_v47  ;;  %vm2724_vm9 = vmor %vm2722_vm7, %vm2723_vm5  ;;  %v2729_v47 = vor.u32 1.1754944e-38, %v2728_v41 }
 0x8fd   :  { %v2719_v40 = vsub.f32 1.0, %v2718_v3  ;;  %vm2747_vm15 = vcmp.eq.f32.partialorder %v2746_v37, 8.507059e+37  ;;  %v7429_v37 = vld [vmem:[#allocation53_spill] sm:$0xff] }
 0x8fe   :  { %v2701_v53 = vmul.f32 %v3698_v44, %v2700_v59 }
 0x8ff   :  { %v2720_v23 = vmul.f32 %v3700_v0, %v2719_v40 }
 0x900   :  { %v3702_v15 = vpop.eup %3701  ;;  %v2702_v51 = vadd.f32 %v3698_v44, %v2701_v53 }
 0x901   :  { %v2721_v19 = vadd.f32 %v3700_v0, %v2720_v23  ;;  %v2738_v52 = vmul.f32 %v3702_v15, %v2736_v46  ;;  %v3704_v50 = vpop.eup %3703  ;;  %vm2743_vm12 = vweird.f32 %v3702_v15  ;;  %v2748_v23 = vand.u32 2147483648, %v2736_v46  ;;  %v7416_v46 = vld [vmem:[#allocation47_spill] sm:$0xff] }
 0x902   :  { %v2706_v3 = vsel %vm2705_vm8, %v3698_v44, %v2702_v51  ;;  %vm2744_vm14 = vmor %vm2742_vm13, %vm2743_vm12  ;;  %v7417_v51 = vld [vmem:[#allocation10_spill] sm:$0xff] }
 0x903   :  { %v2711_v45 = vsel %vm2708_vm10, %v2710_v29, %v2706_v3  ;;  %v2725_v59 = vsel %vm2724_vm9, %v3700_v0, %v2721_v19  ;;  %v2739_v1 = vsub.f32 1.0, %v2738_v52  ;;  %v2749_v41 = vor.u32 1.1754944e-38, %v2748_v23  ;;  %v7418_v29 = vld [vmem:[#allocation58_spill] sm:$0xff]  ;;  %v7420_v52 = vld [vmem:[#allocation49_spill] sm:$0xff]  ;;  %v7422_v3 = vld [vmem:[#allocation60_spill] sm:$0xff] }
 0x904   :  { %v2730_v40 = vsel %vm2727_vm11, %v2729_v47, %v2725_v59  ;;  %v2753_v2 = vmul.f32 %v3704_v50, %v2711_v45  ;;  %v7415_v45 = vld [vmem:[#allocation16_spill] sm:$0xff]  ;;  %v7419_v19 = vld [vmem:[#allocation54_spill] sm:$0xff]  ;;  %v7421_v47 = vld [vmem:[#allocation55_spill] sm:$0xff] }
 0x905   :  { %v2752_v25 = vmul.f32 %v2730_v40, %v6540_v6  ;;  %v2740_v53 = vmul.f32 %v3702_v15, %v2739_v1  ;;  %v7410_v6 = vld [vmem:[#allocation48_spill] sm:$0xff]  ;;  %v7423_v50 = vld [vmem:[#allocation50_spill] sm:$0xff]  ;;  %v7424_v59 = vld [vmem:[#allocation51_spill] sm:$0xff] }
 0x906   :  { %v7413_v1 = vld [vmem:[#allocation36_spill] sm:$0xff]  ;;  %v7425_v40 = vld [vmem:[#allocation57_spill] sm:$0xff] }
 0x907   :  { %v6618_v9 = vadd.f32 %v2753_v2, %v2752_v25  ;;  %v2741_v39 = vadd.f32 %v3702_v15, %v2740_v53  ;;  %v7411_v25 = vld [vmem:[#allocation35_spill] sm:$0xff]  ;;  %v7412_v2 = vld [vmem:[#allocation18_spill] sm:$0xff]  ;;  %v7426_v53 = vld [vmem:[#allocation40_spill] sm:$0xff] }
 0x908   :  { %v7428_v23 = vld [vmem:[#allocation52_spill] sm:$0xff] }
 0x909   :  { %3705 = vtanh.f32 %v6618_v9  ;;  %v2745_v44 = vsel %vm2744_vm14, %v3702_v15, %v2741_v39  ;;  %v7414_v15 = vld [vmem:[#allocation56_spill] sm:$0xff]  ;;  %v7427_v39 = vld [vmem:[#allocation59_spill] sm:$0xff] }
 0x90a   :  { %v2750_v0 = vsel %vm2747_vm15, %v2749_v41, %v2745_v44  ;;  %v7430_v44 = vld [vmem:[#allocation12_spill] sm:$0xff]  ;;  %v7431_v41 = vld [vmem:[#allocation39_spill] sm:$0xff] }
 0x90f   :  { %v3706_v12 = vpop.eup %3705 }
 0x910   :  { %v2756_v16 = vmul.f32 %v3706_v12, %v2750_v0  ;;  %v7432_v12 = vld [vmem:[#allocation21_spill] sm:$0xff]  ;;  %v7433_v0 = vld [vmem:[#allocation22_spill] sm:$0xff] }
 0x912   :  { %2773 = vmatmul.f32.vlgmr.msra.gmra.mxu0 %v2756_v16  ;;  %2793 = vmatmul.f32.vlgmr.msra.gmra.mxu1 %v2756_v16 }
 0x913   :  { %2813 = vmatmul.f32.vlgmr.msrb.gmra.mxu2 %v2756_v16  ;;  %2833 = vmatmul.f32.vlgmr.msrb.gmra.mxu3 %v2756_v16  ;;  %v7434_v16 = vld [vmem:[#allocation11_spill] sm:$0xff] }
 0x914   :  { %3051 = vmatpush.msra.mxu0 %v6341_v21  ;;  %3071 = vmatpush.msra.mxu1 %v6344_v56 }
 0x915   :  { %3091 = vmatpush.msrb.mxu2 %v6347_v57  ;;  %3111 = vmatpush.msrb.mxu3 %v6350_v55 }
 0x916   :  { %3052 = vmatpush.msra.mxu0 %v6353_v30  ;;  %3072 = vmatpush.msra.mxu1 %v6356_v17 }
 0x917   :  { %3092 = vmatpush.msrb.mxu2 %v6359_v13  ;;  %3112 = vmatpush.msrb.mxu3 %v6362_v32 }
 0x918   :  { %3053 = vmatpush.msra.mxu0 %v6365_v38  ;;  %3073 = vmatpush.msra.mxu1 %v6368_v27 }
 0x919   :  { %3093 = vmatpush.msrb.mxu2 %v6371_v4  ;;  %3113 = vmatpush.msrb.mxu3 %v6374_v62 }
 0x91a   :  { %3054 = vmatpush.msra.mxu0 %v6377_v61  ;;  %3074 = vmatpush.msra.mxu1 %v6380_v35 }
 0x91b   :  { %3094 = vmatpush.msrb.mxu2 %v6383_v26  ;;  %3114 = vmatpush.msrb.mxu3 %v6386_v33 }
 0x91c   :  { %3055 = vmatpush.msra.mxu0 %v6389_v49  ;;  %3075 = vmatpush.msra.mxu1 %v6392_v36 }
 0x91d   :  { %3095 = vmatpush.msrb.mxu2 %v6395_v8  ;;  %3115 = vmatpush.msrb.mxu3 %v6398_v60 }
 0x91e   :  { %3056 = vmatpush.msra.mxu0 %v6401_v43  ;;  %3076 = vmatpush.msra.mxu1 %v6404_v34 }
 0x91f   :  { %3096 = vmatpush.msrb.mxu2 %v6407_v58  ;;  %3116 = vmatpush.msrb.mxu3 %v6410_v63 }
 0x920   :  { %3057 = vmatpush.msra.mxu0 %v6413_v31  ;;  %3077 = vmatpush.msra.mxu1 %v6416_v54 }
 0x921   :  { %3097 = vmatpush.msrb.mxu2 %v6419_v22  ;;  %3117 = vmatpush.msrb.mxu3 %v6422_v42 }
 0x922   :  { %3058 = vmatpush.msra.mxu0 %v6425_v5  ;;  %3078 = vmatpush.msra.mxu1 %v6428_v14 }
 0x923   :  { %3098 = vmatpush.msrb.mxu2 %v6431_v48  ;;  %3118 = vmatpush.msrb.mxu3 %v6434_v11 }
 0x924   :  { %3059 = vmatpush.msra.mxu0 %v6437_v7  ;;  %3079 = vmatpush.msra.mxu1 %v6440_v20 }
 0x925   :  { %3099 = vmatpush.msrb.mxu2 %v6443_v24  ;;  %3119 = vmatpush.msrb.mxu3 %v6446_v10 }
 0x926   :  { %3060 = vmatpush.msra.mxu0 %v6449_v28  ;;  %3080 = vmatpush.msra.mxu1 %v6452_v18 }
 0x927   :  { %3100 = vmatpush.msrb.mxu2 %v7410_v6  ;;  %3120 = vmatpush.msrb.mxu3 %v7411_v25 }
 0x928   :  { %3061 = vmatpush.msra.mxu0 %v7412_v2  ;;  %3081 = vmatpush.msra.mxu1 %v7413_v1 }
 0x929   :  { %3101 = vmatpush.msrb.mxu2 %v7414_v15  ;;  %3121 = vmatpush.msrb.mxu3 %v7415_v45 }
 0x92a   :  { %3062 = vmatpush.msra.mxu0 %v7416_v46  ;;  %3082 = vmatpush.msra.mxu1 %v7417_v51 }
 0x92b   :  { %3102 = vmatpush.msrb.mxu2 %v7418_v29  ;;  %3122 = vmatpush.msrb.mxu3 %v7419_v19  ;;  %v7441_v29 = vld [vmem:[#allocation15_spill] sm:$0xff] }
 0x92c   :  { %3063 = vmatpush.msra.mxu0 %v7420_v52  ;;  %3083 = vmatpush.msra.mxu1 %v7421_v47 }
 0x92d   :  { %3103 = vmatpush.msrb.mxu2 %v7422_v3  ;;  %3123 = vmatpush.msrb.mxu3 %v7423_v50  ;;  %v7439_v3 = vld [vmem:[#allocation43_spill] sm:$0xff] }
 0x92e   :  { %3064 = vmatpush.msra.mxu0 %v7424_v59  ;;  %3084 = vmatpush.msra.mxu1 %v7425_v40  ;;  %v7435_v59 = vld [vmem:[#allocation61_spill] sm:$0xff] }
 0x92f   :  { %3104 = vmatpush.msrb.mxu2 %v7426_v53  ;;  %3124 = vmatpush.msrb.mxu3 %v7427_v39  ;;  %v7436_v40 = vld [vmem:[#allocation17_spill] sm:$0xff]  ;;  %v7437_v53 = vld [vmem:[#allocation44_spill] sm:$0xff]  ;;  %v7438_v39 = vld [vmem:[#allocation34_spill] sm:$0xff] }
 0x930   :  { %3065 = vmatpush.msra.mxu0 %v7428_v23  ;;  %3085 = vmatpush.msra.mxu1 %v7429_v37  ;;  %v2035_v50 = vadd.f32 %v7437_v53, %v7436_v40  ;;  %v2076_v23 = vadd.f32 %v7439_v3, %v7438_v39 }
 0x931   :  { %3105 = vmatpush.msrb.mxu2 %v7430_v44  ;;  %3125 = vmatpush.msrb.mxu3 %v7431_v41 }
 0x932   :  { %3066 = vmatpush.msra.mxu0 %v7432_v12  ;;  %3086 = vmatpush.msra.mxu1 %v7433_v0  ;;  %v7440_v12 = vld [vmem:[#allocation65_spill] sm:$0xff] }
 0x933   :  { %3106 = vmatpush.msrb.mxu2 %v7434_v16  ;;  %3126 = vmatpush.msrb.mxu3 %v7435_v59  ;;  %v2158_v0 = vadd.f32 %v7441_v29, %v7440_v12 }
 0x98f   :  { %v2774_v47 = vpop.f32.mrf.mxu0  ;;  %v2794_v37 = vpop.f32.mrf.mxu1 }
 0x990   :  { %v2837_v52 = vadd.f32 %v2774_v47, %v2035_v50  ;;  %v2838_v44 = vadd.f32 %v2794_v37, %v2076_v23  ;;  %v7442_v50 = vld [vmem:[#allocation67_spill] sm:$0xff] }
 0x992   :  { %v3460_v19 = vmul.f32 -1.442695, %v2837_v52  ;;  %v3461_v41 = vmul.f32 -1.442695, %v2838_v44  ;;  %v7443_v52 = vld [vmem:[#allocation27_spill] sm:$0xff] }
 0x993   :  { %v2117_v23 = vadd.f32 %v7443_v52, %v7442_v50 }
 0x994   :  { %3707 = vpow2.f32 %v3460_v19 }
 0x995   :  { %3709 = vpow2.f32 %v3461_v41 }
 0x996   :  { %v2834_v16 = vpop.f32.mrf.mxu3  ;;  %v2814_v3 = vpop.f32.mrf.mxu2 }
 0x997   :  { %v2840_v51 = vadd.f32 %v2834_v16, %v2158_v0  ;;  %v2839_v44 = vadd.f32 %v2814_v3, %v2117_v23 }
 0x999   :  { %v3462_v59 = vmul.f32 -1.442695, %v2840_v51 }
 0x99a   :  { %v3708_v46 = vpop.eup %3707 }
 0x99b   :  { %v3710_v45 = vpop.eup %3709  ;;  %v2844_v53 = vadd.f32 1.0, %v3708_v46  ;;  %3711 = vpow2.f32 %v3462_v59 }
 0x99c   :  { %v2863_v40 = vadd.f32 1.0, %v3710_v45 }
 0x99d   :  { %3713 = vrcp.f32 %v2844_v53  ;;  %v2856_v12 = vand.u32 2147483648, %v2844_v53  ;;  %v2854_v59 = vand.u32 2147483647, %v2844_v53  ;;  %vm2850_vm2 = vweird.f32 %v2844_v53 }
 0x99e   :  { %3715 = vrcp.f32 %v2863_v40  ;;  %v2875_v46 = vand.u32 2147483648, %v2863_v40  ;;  %v2873_v15 = vand.u32 2147483647, %v2863_v40  ;;  %vm2869_vm3 = vweird.f32 %v2863_v40 }
 0x99f   :  { %v2857_v3 = vor.u32 1.1754944e-38, %v2856_v12  ;;  %vm2855_vm6 = vcmp.eq.f32.partialorder %v2854_v59, 8.507059e+37 }
 0x9a0   :  { %vm2874_vm7 = vcmp.eq.f32.partialorder %v2873_v15, 8.507059e+37 }
 0x9a1   :  { %v3712_v47 = vpop.eup %3711 }
 0x9a2   :  { %v2883_v19 = vadd.f32 1.0, %v3712_v47 }
 0x9a3   :  { %v3714_v37 = vpop.eup %3713 }
 0x9a4   :  { %v3716_v29 = vpop.eup %3715  ;;  %v2846_v41 = vmul.f32 %v3714_v37, %v2844_v53  ;;  %3717 = vrcp.f32 %v2883_v19  ;;  %vm2851_vm0 = vweird.f32 %v3714_v37  ;;  %vm2889_vm9 = vweird.f32 %v2883_v19 }
 0x9a5   :  { %v2865_v0 = vmul.f32 %v3716_v29, %v2863_v40  ;;  %3719 = vtanh.f32 %v2839_v44  ;;  %vm2870_vm1 = vweird.f32 %v3716_v29  ;;  %vm2852_vm4 = vmor %vm2850_vm2, %vm2851_vm0  ;;  %v2893_v12 = vand.u32 2147483647, %v2883_v19 }
 0x9a6   :  { %v2847_v51 = vsub.f32 1.0, %v2846_v41  ;;  %vm2871_vm5 = vmor %vm2869_vm3, %vm2870_vm1  ;;  %v2876_v41 = vor.u32 1.1754944e-38, %v2875_v46 }
 0x9a7   :  { %v2866_v16 = vsub.f32 1.0, %v2865_v0  ;;  %vm2894_vm11 = vcmp.eq.f32.partialorder %v2893_v12, 8.507059e+37 }
 0x9a8   :  { %v2848_v45 = vmul.f32 %v3714_v37, %v2847_v51 }
 0x9a9   :  { %v2867_v39 = vmul.f32 %v3716_v29, %v2866_v16 }
 0x9aa   :  { %v3718_v1 = vpop.eup %3717  ;;  %v2849_v52 = vadd.f32 %v3714_v37, %v2848_v45 }
 0x9ab   :  { %v2868_v47 = vadd.f32 %v3716_v29, %v2867_v39  ;;  %v2885_v23 = vmul.f32 %v3718_v1, %v2883_v19  ;;  %v3720_v44 = vpop.eup %3719  ;;  %vm2890_vm8 = vweird.f32 %v3718_v1  ;;  %v2895_v39 = vand.u32 2147483648, %v2883_v19 }
 0x9ac   :  { %v2853_v0 = vsel %vm2852_vm4, %v3714_v37, %v2849_v52  ;;  %vm2891_vm10 = vmor %vm2889_vm9, %vm2890_vm8 }
 0x9ad   :  { %v2858_v50 = vsel %vm2855_vm6, %v2857_v3, %v2853_v0  ;;  %v2872_v51 = vsel %vm2871_vm5, %v3716_v29, %v2868_v47  ;;  %v2886_v2 = vsub.f32 1.0, %v2885_v23  ;;  %v2896_v46 = vor.u32 1.1754944e-38, %v2895_v39  ;;  %v7476_v0 = vld [vmem:[#allocation67_spill] sm:$0xff] }
 0x9ae   :  { %v2877_v16 = vsel %vm2874_vm7, %v2876_v41, %v2872_v51  ;;  %v2900_v25 = vmul.f32 %v3720_v44, %v2858_v50  ;;  %v7477_v44 = vld [vmem:[#allocation20_spill] sm:$0xff] }
 0x9af   :  { %v2899_v6 = vmul.f32 %v2877_v16, %v6618_v9  ;;  %v2887_v45 = vmul.f32 %v3718_v1, %v2886_v2  ;;  %v7474_v9 = vld [vmem:[#allocation65_spill] sm:$0xff]  ;;  %v2120_v51 = vadd.f32 %v7477_v44, %v7476_v0 }
 0x9b1   :  { %v6694_v53 = vadd.f32 %v2900_v25, %v2899_v6  ;;  %v2888_v40 = vadd.f32 %v3718_v1, %v2887_v45  ;;  %v7475_v6 = vld [vmem:[#allocation28_spill] sm:$0xff] }
 0x9b2   :  { %v2161_v25 = vadd.f32 %v7475_v6, %v7474_v9 }
 0x9b3   :  { %3721 = vtanh.f32 %v6694_v53  ;;  %v2892_v37 = vsel %vm2891_vm10, %v3718_v1, %v2888_v40 }
 0x9b4   :  { %v2897_v29 = vsel %vm2894_vm11, %v2896_v46, %v2892_v37 }
 0x9b9   :  { %v3722_v15 = vpop.eup %3721 }
 0x9ba   :  { %v2903_v59 = vmul.f32 %v3722_v15, %v2897_v29 }
 0x9bc   :  { %2920 = vmatmul.f32.vlgmr.msrb.gmra.mxu0 %v2903_v59  ;;  %2940 = vmatmul.f32.vlgmr.msrb.gmra.mxu1 %v2903_v59 }
 0x9bd   :  { %2960 = vmatmul.f32.vlgmr.msra.gmra.mxu2 %v2903_v59  ;;  %2980 = vmatmul.f32.vlgmr.msra.gmra.mxu3 %v2903_v59 }
 0x9be   :  { %3198 = vmatpush.msrb.mxu0 %v6341_v21  ;;  %3218 = vmatpush.msrb.mxu1 %v6344_v56  ;;  %v7444_v21 = vld [vmem:[#allocation48_spill] sm:$0xff]  ;;  %v7445_v56 = vld [vmem:[#allocation35_spill] sm:$0xff] }
 0x9bf   :  { %3238 = vmatpush.msra.mxu2 %v6347_v57  ;;  %3258 = vmatpush.msra.mxu3 %v6350_v55  ;;  %v7446_v57 = vld [vmem:[#allocation18_spill] sm:$0xff]  ;;  %v7447_v55 = vld [vmem:[#allocation36_spill] sm:$0xff] }
 0x9c0   :  { %3199 = vmatpush.msrb.mxu0 %v6353_v30  ;;  %3219 = vmatpush.msrb.mxu1 %v6356_v17  ;;  %v7448_v30 = vld [vmem:[#allocation56_spill] sm:$0xff] }
 0x9c1   :  { %3239 = vmatpush.msra.mxu2 %v6359_v13  ;;  %3259 = vmatpush.msra.mxu3 %v6362_v32  ;;  %v7449_v17 = vld [vmem:[#allocation16_spill] sm:$0xff]  ;;  %v7450_v13 = vld [vmem:[#allocation47_spill] sm:$0xff]  ;;  %v7451_v32 = vld [vmem:[#allocation10_spill] sm:$0xff] }
 0x9c2   :  { %3200 = vmatpush.msrb.mxu0 %v6365_v38  ;;  %3220 = vmatpush.msrb.mxu1 %v6368_v27  ;;  %v7452_v38 = vld [vmem:[#allocation58_spill] sm:$0xff] }
 0x9c3   :  { %3240 = vmatpush.msra.mxu2 %v6371_v4  ;;  %3260 = vmatpush.msra.mxu3 %v6374_v62  ;;  %v7453_v27 = vld [vmem:[#allocation54_spill] sm:$0xff]  ;;  %v7454_v4 = vld [vmem:[#allocation49_spill] sm:$0xff]  ;;  %v7455_v62 = vld [vmem:[#allocation55_spill] sm:$0xff] }
 0x9c4   :  { %3201 = vmatpush.msrb.mxu0 %v6377_v61  ;;  %3221 = vmatpush.msrb.mxu1 %v6380_v35  ;;  %v7456_v61 = vld [vmem:[#allocation60_spill] sm:$0xff]  ;;  %v7457_v35 = vld [vmem:[#allocation50_spill] sm:$0xff] }
 0x9c5   :  { %3241 = vmatpush.msra.mxu2 %v6383_v26  ;;  %3261 = vmatpush.msra.mxu3 %v6386_v33  ;;  %v7458_v26 = vld [vmem:[#allocation51_spill] sm:$0xff]  ;;  %v7459_v33 = vld [vmem:[#allocation57_spill] sm:$0xff] }
 0x9c6   :  { %3202 = vmatpush.msrb.mxu0 %v6389_v49  ;;  %3222 = vmatpush.msrb.mxu1 %v6392_v36  ;;  %v7460_v49 = vld [vmem:[#allocation40_spill] sm:$0xff]  ;;  %v7461_v36 = vld [vmem:[#allocation59_spill] sm:$0xff] }
 0x9c7   :  { %3242 = vmatpush.msra.mxu2 %v6395_v8  ;;  %3262 = vmatpush.msra.mxu3 %v6398_v60  ;;  %v7462_v8 = vld [vmem:[#allocation52_spill] sm:$0xff]  ;;  %v7463_v60 = vld [vmem:[#allocation53_spill] sm:$0xff] }
 0x9c8   :  { %3203 = vmatpush.msrb.mxu0 %v6401_v43  ;;  %3223 = vmatpush.msrb.mxu1 %v6404_v34  ;;  %v7464_v43 = vld [vmem:[#allocation12_spill] sm:$0xff]  ;;  %v7465_v34 = vld [vmem:[#allocation39_spill] sm:$0xff] }
 0x9c9   :  { %3243 = vmatpush.msra.mxu2 %v6407_v58  ;;  %3263 = vmatpush.msra.mxu3 %v6410_v63  ;;  %v7466_v58 = vld [vmem:[#allocation21_spill] sm:$0xff]  ;;  %v7467_v63 = vld [vmem:[#allocation22_spill] sm:$0xff] }
 0x9ca   :  { %3204 = vmatpush.msrb.mxu0 %v6413_v31  ;;  %3224 = vmatpush.msrb.mxu1 %v6416_v54  ;;  %v7468_v31 = vld [vmem:[#allocation11_spill] sm:$0xff]  ;;  %v7469_v54 = vld [vmem:[#allocation61_spill] sm:$0xff] }
 0x9cb   :  { %3244 = vmatpush.msra.mxu2 %v6419_v22  ;;  %3264 = vmatpush.msra.mxu3 %v6422_v42  ;;  %v7470_v22 = vld [vmem:[#allocation17_spill] sm:$0xff] }
 0x9cc   :  { %3205 = vmatpush.msrb.mxu0 %v6425_v5  ;;  %3225 = vmatpush.msrb.mxu1 %v6428_v14  ;;  %v7471_v42 = vld [vmem:[#allocation13_spill] sm:$0xff]  ;;  %v7472_v14 = vld [vmem:[#allocation34_spill] sm:$0xff] }
 0x9cd   :  { %3245 = vmatpush.msra.mxu2 %v6431_v48  ;;  %3265 = vmatpush.msra.mxu3 %v6434_v11  ;;  %v2038_v5 = vadd.f32 %v7471_v42, %v7470_v22  ;;  %v7473_v48 = vld [vmem:[#allocation19_spill] sm:$0xff] }
 0x9ce   :  { %3206 = vmatpush.msrb.mxu0 %v6437_v7  ;;  %3226 = vmatpush.msrb.mxu1 %v6440_v20  ;;  %v2079_v11 = vadd.f32 %v7473_v48, %v7472_v14 }
 0x9cf   :  { %3246 = vmatpush.msra.mxu2 %v6443_v24  ;;  %3266 = vmatpush.msra.mxu3 %v6446_v10 }
 0x9d0   :  { %3207 = vmatpush.msrb.mxu0 %v6449_v28  ;;  %3227 = vmatpush.msrb.mxu1 %v6452_v18 }
 0x9d1   :  { %3247 = vmatpush.msra.mxu2 %v7444_v21  ;;  %3267 = vmatpush.msra.mxu3 %v7445_v56 }
 0x9d2   :  { %3208 = vmatpush.msrb.mxu0 %v7446_v57  ;;  %3228 = vmatpush.msrb.mxu1 %v7447_v55 }
 0x9d3   :  { %3248 = vmatpush.msra.mxu2 %v7448_v30  ;;  %3268 = vmatpush.msra.mxu3 %v7449_v17 }
 0x9d4   :  { %3209 = vmatpush.msrb.mxu0 %v7450_v13  ;;  %3229 = vmatpush.msrb.mxu1 %v7451_v32 }
 0x9d5   :  { %3249 = vmatpush.msra.mxu2 %v7452_v38  ;;  %3269 = vmatpush.msra.mxu3 %v7453_v27 }
 0x9d6   :  { %3210 = vmatpush.msrb.mxu0 %v7454_v4  ;;  %3230 = vmatpush.msrb.mxu1 %v7455_v62 }
 0x9d7   :  { %3250 = vmatpush.msra.mxu2 %v7456_v61  ;;  %3270 = vmatpush.msra.mxu3 %v7457_v35 }
 0x9d8   :  { %3211 = vmatpush.msrb.mxu0 %v7458_v26  ;;  %3231 = vmatpush.msrb.mxu1 %v7459_v33 }
 0x9d9   :  { %3251 = vmatpush.msra.mxu2 %v7460_v49  ;;  %3271 = vmatpush.msra.mxu3 %v7461_v36 }
 0x9da   :  { %3212 = vmatpush.msrb.mxu0 %v7462_v8  ;;  %3232 = vmatpush.msrb.mxu1 %v7463_v60 }
 0x9db   :  { %3252 = vmatpush.msra.mxu2 %v7464_v43  ;;  %3272 = vmatpush.msra.mxu3 %v7465_v34 }
 0x9dc   :  { %3213 = vmatpush.msrb.mxu0 %v7466_v58  ;;  %3233 = vmatpush.msrb.mxu1 %v7467_v63 }
 0x9dd   :  { %3253 = vmatpush.msra.mxu2 %v7468_v31  ;;  %3273 = vmatpush.msra.mxu3 %v7469_v54 }
 0xa39   :  { %v2921_v7 = vpop.f32.mrf.mxu0  ;;  %v2941_v20 = vpop.f32.mrf.mxu1 }
 0xa3a   :  { %v2984_v24 = vadd.f32 %v2921_v7, %v2038_v5  ;;  %v2985_v10 = vadd.f32 %v2941_v20, %v2079_v11  ;;  %v7479_v11 = vld [vmem:[#allocation45_spill] sm:$0xff] }
 0xa3b   :  { %v2082_v7 = vadd.f32 %v7479_v11, %v7472_v14  ;;  %v3360_v11 = vld [vmem:[%s6860_s9 + $0x70] sm:$0xff] }
 0xa3c   :  { %v3463_v28 = vmul.f32 -1.442695, %v2984_v24  ;;  %v3464_v18 = vmul.f32 -1.442695, %v2985_v10 }
 0xa3e   :  { %3723 = vpow2.f32 %v3463_v28 }
 0xa3f   :  { %3725 = vpow2.f32 %v3464_v18 }
 0xa40   :  { %v2981_v2 = vpop.f32.mrf.mxu3  ;;  %v2961_v23 = vpop.f32.mrf.mxu2 }
 0xa41   :  { %v2987_v1 = vadd.f32 %v2981_v2, %v2161_v25  ;;  %v2986_v40 = vadd.f32 %v2961_v23, %v2120_v51  ;;  %v7480_v25 = vld [vmem:[#allocation38_spill] sm:$0xff]  ;;  %v7481_v51 = vld [vmem:[#allocation63_spill] sm:$0xff] }
 0xa42   :  { %v2164_v2 = vadd.f32 %v7480_v25, %v7474_v9  ;;  %v7482_v25 = vld [vmem:[#allocation14_spill] sm:$0xff] }
 0xa43   :  { %v3465_v50 = vmul.f32 -1.442695, %v2987_v1 }
 0xa44   :  { %v3724_v19 = vpop.eup %3723 }
 0xa45   :  { %v3726_v52 = vpop.eup %3725  ;;  %v2991_v3 = vadd.f32 1.0, %v3724_v19  ;;  %3727 = vpow2.f32 %v3465_v50 }
 0xa46   :  { %v3010_v47 = vadd.f32 1.0, %v3726_v52 }
 0xa47   :  { %3729 = vrcp.f32 %v2991_v3  ;;  %v3003_v29 = vand.u32 2147483648, %v2991_v3  ;;  %v3001_v56 = vand.u32 2147483647, %v2991_v3  ;;  %vm2997_vm14 = vweird.f32 %v2991_v3 }
 0xa48   :  { %3731 = vrcp.f32 %v3010_v47  ;;  %v3022_v59 = vand.u32 2147483648, %v3010_v47  ;;  %v3020_v55 = vand.u32 2147483647, %v3010_v47  ;;  %vm3016_vm15 = vweird.f32 %v3010_v47 }
 0xa49   :  { %v3004_v13 = vor.u32 1.1754944e-38, %v3003_v29  ;;  %vm3002_vm2 = vcmp.eq.f32.partialorder %v3001_v56, 8.507059e+37 }
 0xa4a   :  { %v3023_v27 = vor.u32 1.1754944e-38, %v3022_v59  ;;  %vm3021_vm3 = vcmp.eq.f32.partialorder %v3020_v55, 8.507059e+37 }
 0xa4b   :  { %v3728_v41 = vpop.eup %3727 }
 0xa4c   :  { %v3030_v16 = vadd.f32 1.0, %v3728_v41 }
 0xa4d   :  { %v3730_v45 = vpop.eup %3729 }
 0xa4e   :  { %v3732_v39 = vpop.eup %3731  ;;  %v2993_v12 = vmul.f32 %v3730_v45, %v2991_v3  ;;  %3733 = vrcp.f32 %v3030_v16  ;;  %vm2998_vm12 = vweird.f32 %v3730_v45  ;;  %v3042_v34 = vand.u32 2147483648, %v3030_v16 }
 0xa4f   :  { %v3012_v37 = vmul.f32 %v3732_v39, %v3010_v47  ;;  %3735 = vtanh.f32 %v2986_v40  ;;  %vm3017_vm13 = vweird.f32 %v3732_v39  ;;  %vm2999_vm0 = vmor %vm2997_vm14, %vm2998_vm12  ;;  %vm3036_vm5 = vweird.f32 %v3030_v16 }
 0xa50   :  { %v2994_v46 = vsub.f32 1.0, %v2993_v12  ;;  %vm3018_vm1 = vmor %vm3016_vm15, %vm3017_vm13  ;;  %v3040_v58 = vand.u32 2147483647, %v3030_v16  ;;  %v3043_v31 = vor.u32 1.1754944e-38, %v3042_v34 }
 0xa51   :  { %v3013_v15 = vsub.f32 1.0, %v3012_v37 }
 0xa52   :  { %v2995_v21 = vmul.f32 %v3730_v45, %v2994_v46  ;;  %vm3041_vm7 = vcmp.eq.f32.partialorder %v3040_v58, 8.507059e+37 }
 0xa53   :  { %v3014_v57 = vmul.f32 %v3732_v39, %v3013_v15 }
 0xa54   :  { %v3734_v30 = vpop.eup %3733  ;;  %v2996_v17 = vadd.f32 %v3730_v45, %v2995_v21 }
 0xa55   :  { %v3015_v32 = vadd.f32 %v3732_v39, %v3014_v57  ;;  %v3032_v38 = vmul.f32 %v3734_v30, %v3030_v16  ;;  %v3736_v62 = vpop.eup %3735  ;;  %vm3037_vm4 = vweird.f32 %v3734_v30  ;;  %v2123_v16 = vadd.f32 %v7481_v51, %v7476_v0 }
 0xa56   :  { %v3000_v4 = vsel %vm2999_vm0, %v3730_v45, %v2996_v17  ;;  %vm3038_vm6 = vmor %vm3036_vm5, %vm3037_vm4 }
 0xa57   :  { %v3005_v61 = vsel %vm3002_vm2, %v3004_v13, %v3000_v4  ;;  %v3019_v35 = vsel %vm3018_vm1, %v3732_v39, %v3015_v32  ;;  %v3033_v26 = vsub.f32 1.0, %v3032_v38 }
 0xa58   :  { %v3024_v33 = vsel %vm3021_vm3, %v3023_v27, %v3019_v35  ;;  %v3047_v49 = vmul.f32 %v3736_v62, %v3005_v61 }
 0xa59   :  { %v3046_v36 = vmul.f32 %v3024_v33, %v6694_v53  ;;  %v3034_v8 = vmul.f32 %v3734_v30, %v3033_v26  ;;  %v7478_v53 = vld [vmem:[#allocation46_spill] sm:$0xff] }
 0xa5a   :  { %v2041_v48 = vadd.f32 %v7478_v53, %v7470_v22 }
 0xa5b   :  { %v6770_v60 = vadd.f32 %v3047_v49, %v3046_v36  ;;  %v3035_v43 = vadd.f32 %v3734_v30, %v3034_v8 }
 0xa5d   :  { %3737 = vtanh.f32 %v6770_v60  ;;  %v3039_v63 = vsel %vm3038_vm6, %v3734_v30, %v3035_v43 }
 0xa5e   :  { %v3044_v42 = vsel %vm3041_vm7, %v3043_v31, %v3039_v63 }
 0xa63   :  { %v3738_v54 = vpop.eup %3737 }
 0xa64   :  { %v3050_v5 = vmul.f32 %v3738_v54, %v3044_v42 }
 0xa66   :  { %3067 = vmatmul.f32.vlgmr.msra.gmra.mxu0 %v3050_v5  ;;  %3087 = vmatmul.f32.vlgmr.msra.gmra.mxu1 %v3050_v5 }
 0xa67   :  { %3107 = vmatmul.f32.vlgmr.msrb.gmra.mxu2 %v3050_v5  ;;  %3127 = vmatmul.f32.vlgmr.msrb.gmra.mxu3 %v3050_v5 }
 0xae3   :  { %v3068_v20 = vpop.f32.mrf.mxu0  ;;  %v3088_v24 = vpop.f32.mrf.mxu1 }
 0xae4   :  { %v3131_v10 = vadd.f32 %v3068_v20, %v2041_v48  ;;  %v3132_v28 = vadd.f32 %v3088_v24, %v2082_v7  ;;  %v3359_v7 = vld [vmem:[%s6860_s9 + $0x68] sm:$0xff]  ;;  %v3358_v20 = vld [vmem:[%s6860_s9 + $0x60] sm:$0xff]  ;;  %v3357_v24 = vld [vmem:[%s6860_s9 + $0x58] sm:$0xff] }
 0xae6   :  { %v3466_v18 = vmul.f32 -1.442695, %v3131_v10  ;;  %v3467_v6 = vmul.f32 -1.442695, %v3132_v28  ;;  %v3356_v10 = vld [vmem:[%s6860_s9 + $0x50] sm:$0xff]  ;;  %v3355_v28 = vld [vmem:[%s6860_s9 + $0x48] sm:$0xff] }
 0xae8   :  { %3739 = vpow2.f32 %v3466_v18  ;;  %v3354_v18 = vld [vmem:[%s6860_s9 + $0x40] sm:$0xff] }
 0xae9   :  { %3741 = vpow2.f32 %v3467_v6  ;;  %v3353_v6 = vld [vmem:[%s6860_s9 + $0x38] sm:$0xff] }
 0xaea   :  { %v3128_v1 = vpop.f32.mrf.mxu3  ;;  %v3108_v41 = vpop.f32.mrf.mxu2 }
 0xaeb   :  { %v3134_v50 = vadd.f32 %v3128_v1, %v2164_v2  ;;  %v3133_v39 = vadd.f32 %v3108_v41, %v2123_v16  ;;  %v2044_v2 = vadd.f32 %v7482_v25, %v7470_v22  ;;  %v7483_v1 = vld [vmem:[#allocation37_spill] sm:$0xff]  ;;  %v3351_v41 = vld [vmem:[%s6860_s9 + $0x28] sm:$0xff]  ;;  %v3350_v22 = vld [vmem:[%s6860_s9 + $0x20] sm:$0xff] }
 0xaec   :  { %v7484_v16 = vld [vmem:[#allocation64_spill] sm:$0xff] }
 0xaed   :  { %v3468_v19 = vmul.f32 -1.442695, %v3134_v50  ;;  %v2085_v50 = vadd.f32 %v7483_v1, %v7472_v14  ;;  %v3349_v14 = vld [vmem:[%s6860_s9 + $0x18] sm:$0xff] }
 0xaee   :  { %v3740_v52 = vpop.eup %3739 }
 0xaef   :  { %v3742_v3 = vpop.eup %3741  ;;  %v3138_v47 = vadd.f32 1.0, %v3740_v52  ;;  %3743 = vpow2.f32 %v3468_v19 }
 0xaf0   :  { %v3157_v23 = vadd.f32 1.0, %v3742_v3  ;;  %v3352_v3 = vld [vmem:[%s6860_s9 + $0x30] sm:$0xff] }
 0xaf1   :  { %3745 = vrcp.f32 %v3138_v47  ;;  %v3150_v59 = vand.u32 2147483648, %v3138_v47  ;;  %v3148_v57 = vand.u32 2147483647, %v3138_v47  ;;  %vm3144_vm10 = vweird.f32 %v3138_v47 }
 0xaf2   :  { %3747 = vrcp.f32 %v3157_v23  ;;  %v3169_v21 = vand.u32 2147483648, %v3157_v23  ;;  %v3167_v30 = vand.u32 2147483647, %v3157_v23  ;;  %vm3163_vm11 = vweird.f32 %v3157_v23 }
 0xaf3   :  { %v3151_v32 = vor.u32 1.1754944e-38, %v3150_v59  ;;  %vm3149_vm14 = vcmp.eq.f32.partialorder %v3148_v57, 8.507059e+37 }
 0xaf4   :  { %v3170_v4 = vor.u32 1.1754944e-38, %v3169_v21  ;;  %vm3168_vm15 = vcmp.eq.f32.partialorder %v3167_v30, 8.507059e+37 }
 0xaf5   :  { %v3744_v44 = vpop.eup %3743 }
 0xaf6   :  { %v3177_v45 = vadd.f32 1.0, %v3744_v44 }
 0xaf7   :  { %v3746_v40 = vpop.eup %3745 }
 0xaf8   :  { %v3748_v12 = vpop.eup %3747  ;;  %v3140_v37 = vmul.f32 %v3746_v40, %v3138_v47  ;;  %3749 = vrcp.f32 %v3177_v45  ;;  %vm3145_vm8 = vweird.f32 %v3746_v40  ;;  %v3189_v63 = vand.u32 2147483648, %v3177_v45 }
 0xaf9   :  { %v3159_v46 = vmul.f32 %v3748_v12, %v3157_v23  ;;  %3751 = vtanh.f32 %v3133_v39  ;;  %vm3164_vm9 = vweird.f32 %v3748_v12  ;;  %vm3146_vm12 = vmor %vm3144_vm10, %vm3145_vm8  ;;  %vm3183_vm1 = vweird.f32 %v3177_v45 }
 0xafa   :  { %v3141_v15 = vsub.f32 1.0, %v3140_v37  ;;  %vm3165_vm13 = vmor %vm3163_vm11, %vm3164_vm9  ;;  %v3187_v31 = vand.u32 2147483647, %v3177_v45  ;;  %v3190_v42 = vor.u32 1.1754944e-38, %v3189_v63  ;;  %v3347_v37 = vld [vmem:[%s6860_s9 + $0x8] sm:$0xff] }
 0xafb   :  { %v3160_v29 = vsub.f32 1.0, %v3159_v46 }
 0xafc   :  { %v3142_v56 = vmul.f32 %v3746_v40, %v3141_v15  ;;  %vm3188_vm3 = vcmp.eq.f32.partialorder %v3187_v31, 8.507059e+37  ;;  %v3346_v15 = vld [vmem:[%s6860_s9] sm:$0xff] }
 0xafd   :  { %v3161_v55 = vmul.f32 %v3748_v12, %v3160_v29 }
 0xafe   :  { %v3750_v17 = vpop.eup %3749  ;;  %v3143_v13 = vadd.f32 %v3746_v40, %v3142_v56 }
 0xaff   :  { %v3162_v38 = vadd.f32 %v3748_v12, %v3161_v55  ;;  %v3179_v27 = vmul.f32 %v3750_v17, %v3177_v45  ;;  %v3752_v61 = vpop.eup %3751  ;;  %vm3184_vm0 = vweird.f32 %v3750_v17  ;;  %v2167_v45 = vadd.f32 %v7484_v16, %v7474_v9  ;;  %v7485_v55 = vld [vmem:[#allocation66_spill] sm:$0xff] }
 0xb00   :  { %v3147_v62 = vsel %vm3146_vm12, %v3746_v40, %v3143_v13  ;;  %vm3185_vm2 = vmor %vm3183_vm1, %vm3184_vm0  ;;  %v3348_v40 = vld [vmem:[%s6860_s9 + $0x10] sm:$0xff]  ;;  %v2126_v30 = vadd.f32 %v7485_v55, %v7476_v0 }
 0xb01   :  { %v3152_v35 = vsel %vm3149_vm14, %v3151_v32, %v3147_v62  ;;  %v3166_v26 = vsel %vm3165_vm13, %v3748_v12, %v3162_v38  ;;  %v3180_v33 = vsub.f32 1.0, %v3179_v27 }
 0xb02   :  { %v3171_v49 = vsel %vm3168_vm15, %v3170_v4, %v3166_v26  ;;  %v3194_v36 = vmul.f32 %v3752_v61, %v3152_v35 }
 0xb03   :  { %v3193_v8 = vmul.f32 %v3171_v49, %v6770_v60  ;;  %v3181_v43 = vmul.f32 %v3750_v17, %v3180_v33  ;;  %v3361_v60 = vld [vmem:[%s6860_s9 + $0x78] sm:$0xff] }
 0xb04   :  { %3366 = vmatpush.msra.mxu0 %v3361_v60 }
 0xb05   :  { %v6782_v34 = vadd.f32 %v3194_v36, %v3193_v8  ;;  %v3182_v58 = vadd.f32 %v3750_v17, %v3181_v43 }
 0xb06   :  { %3367 = vmatpush.msra.mxu0 %v3360_v11 }
 0xb07   :  { %3753 = vtanh.f32 %v6782_v34  ;;  %v3186_v54 = vsel %vm3185_vm2, %v3750_v17, %v3182_v58 }
 0xb08   :  { %v3191_v53 = vsel %vm3188_vm3, %v3190_v42, %v3186_v54  ;;  %3368 = vmatpush.msra.mxu0 %v3359_v7 }
 0xb0a   :  { %3369 = vmatpush.msra.mxu0 %v3358_v20 }
 0xb0c   :  { %3370 = vmatpush.msra.mxu0 %v3357_v24 }
 0xb0d   :  { %v3754_v5 = vpop.eup %3753 }
 0xb0e   :  { %v3197_v48 = vmul.f32 %v3754_v5, %v3191_v53  ;;  %3371 = vmatpush.msra.mxu0 %v3356_v10 }
 0xb10   :  { %3214 = vmatmul.f32.vlgmr.msrb.gmra.mxu0 %v3197_v48  ;;  %3234 = vmatmul.f32.vlgmr.msrb.gmra.mxu1 %v3197_v48 }
 0xb11   :  { %3254 = vmatmul.f32.vlgmr.msra.gmra.mxu2 %v3197_v48  ;;  %3274 = vmatmul.f32.vlgmr.msra.gmra.mxu3 %v3197_v48 }
 0xb12   :  { %3372 = vmatpush.msra.mxu0 %v3355_v28 }
 0xb14   :  { %3373 = vmatpush.msra.mxu0 %v3354_v18 }
 0xb16   :  { %3374 = vmatpush.msra.mxu0 %v3353_v6 }
 0xb18   :  { %3375 = vmatpush.msra.mxu0 %v3352_v3 }
 0xb1a   :  { %3376 = vmatpush.msra.mxu0 %v3351_v41 }
 0xb1c   :  { %3377 = vmatpush.msra.mxu0 %v3350_v22 }
 0xb1e   :  { %3378 = vmatpush.msra.mxu0 %v3349_v14 }
 0xb20   :  { %3379 = vmatpush.msra.mxu0 %v3348_v40 }
 0xb22   :  { %3380 = vmatpush.msra.mxu0 %v3347_v37 }
 0xb24   :  { %3381 = vmatpush.msra.mxu0 %v3346_v15 }
 0xb8d   :  { %v3215_v19 = vpop.f32.mrf.mxu0  ;;  %v3235_v52 = vpop.f32.mrf.mxu1 }
 0xb8e   :  { %v3278_v47 = vadd.f32 %v3215_v19, %v2044_v2  ;;  %v3279_v23 = vadd.f32 %v3235_v52, %v2085_v50 }
 0xb90   :  { %v3469_v44 = vmul.f32 -1.442695, %v3278_v47  ;;  %v3470_v51 = vmul.f32 -1.442695, %v3279_v23 }
 0xb92   :  { %3755 = vpow2.f32 %v3469_v44 }
 0xb93   :  { %3757 = vpow2.f32 %v3470_v51 }
 0xb94   :  { %v3275_v39 = vpop.f32.mrf.mxu3  ;;  %v3255_v56 = vpop.f32.mrf.mxu2 }
 0xb95   :  { %v3281_v12 = vadd.f32 %v3275_v39, %v2167_v45  ;;  %v3280_v32 = vadd.f32 %v3255_v56, %v2126_v30 }
 0xb97   :  { %v3471_v46 = vmul.f32 -1.442695, %v3281_v12 }
 0xb98   :  { %v3756_v29 = vpop.eup %3755 }
 0xb99   :  { %v3758_v9 = vpop.eup %3757  ;;  %v3285_v59 = vadd.f32 1.0, %v3756_v29  ;;  %3759 = vpow2.f32 %v3471_v46 }
 0xb9a   :  { %v3304_v21 = vadd.f32 1.0, %v3758_v9 }
 0xb9b   :  { %3761 = vrcp.f32 %v3285_v59  ;;  %v3297_v35 = vand.u32 2147483648, %v3285_v59  ;;  %v3295_v49 = vand.u32 2147483647, %v3285_v59  ;;  %vm3291_vm6 = vweird.f32 %v3285_v59 }
 0xb9c   :  { %3763 = vrcp.f32 %v3304_v21  ;;  %v3316_v26 = vand.u32 2147483648, %v3304_v21  ;;  %v3314_v8 = vand.u32 2147483647, %v3304_v21  ;;  %vm3310_vm7 = vweird.f32 %v3304_v21 }
 0xb9d   :  { %v3298_v58 = vor.u32 1.1754944e-38, %v3297_v35  ;;  %vm3296_vm10 = vcmp.eq.f32.partialorder %v3295_v49, 8.507059e+37 }
 0xb9e   :  { %v3317_v54 = vor.u32 1.1754944e-38, %v3316_v26  ;;  %vm3315_vm11 = vcmp.eq.f32.partialorder %v3314_v8, 8.507059e+37 }
 0xb9f   :  { %v3760_v57 = vpop.eup %3759 }
 0xba0   :  { %v3324_v17 = vadd.f32 1.0, %v3760_v57 }
 0xba1   :  { %v3762_v13 = vpop.eup %3761 }
 0xba2   :  { %v3764_v38 = vpop.eup %3763  ;;  %v3287_v27 = vmul.f32 %v3762_v13, %v3285_v59  ;;  %3765 = vrcp.f32 %v3324_v17  ;;  %vm3292_vm4 = vweird.f32 %v3762_v13  ;;  %v3336_v18 = vand.u32 2147483648, %v3324_v17 }
 0xba3   :  { %v3306_v4 = vmul.f32 %v3764_v38, %v3304_v21  ;;  %3767 = vtanh.f32 %v3280_v32  ;;  %vm3311_vm5 = vweird.f32 %v3764_v38  ;;  %vm3293_vm8 = vmor %vm3291_vm6, %vm3292_vm4  ;;  %vm3330_vm13 = vweird.f32 %v3324_v17 }
 0xba4   :  { %v3288_v62 = vsub.f32 1.0, %v3287_v27  ;;  %vm3312_vm9 = vmor %vm3310_vm7, %vm3311_vm5  ;;  %v3334_v6 = vand.u32 2147483647, %v3324_v17  ;;  %v3337_v2 = vor.u32 1.1754944e-38, %v3336_v18 }
 0xba5   :  { %v3307_v61 = vsub.f32 1.0, %v3306_v4 }
 0xba6   :  { %v3289_v33 = vmul.f32 %v3762_v13, %v3288_v62  ;;  %vm3335_vm15 = vcmp.eq.f32.partialorder %v3334_v6, 8.507059e+37 }
 0xba7   :  { %v3308_v36 = vmul.f32 %v3764_v38, %v3307_v61 }
 0xba8   :  { %v3766_v43 = vpop.eup %3765  ;;  %v3290_v0 = vadd.f32 %v3762_v13, %v3289_v33 }
 0xba9   :  { %v3309_v63 = vadd.f32 %v3764_v38, %v3308_v36  ;;  %v3326_v31 = vmul.f32 %v3766_v43, %v3324_v17  ;;  %v3768_v5 = vpop.eup %3767  ;;  %vm3331_vm12 = vweird.f32 %v3766_v43 }
 0xbaa   :  { %v3294_v42 = vsel %vm3293_vm8, %v3762_v13, %v3290_v0  ;;  %vm3332_vm14 = vmor %vm3330_vm13, %vm3331_vm12 }
 0xbab   :  { %v3299_v53 = vsel %vm3296_vm10, %v3298_v58, %v3294_v42  ;;  %v3313_v48 = vsel %vm3312_vm9, %v3764_v38, %v3309_v63  ;;  %v3327_v60 = vsub.f32 1.0, %v3326_v31 }
 0xbac   :  { %v3318_v11 = vsel %vm3315_vm11, %v3317_v54, %v3313_v48  ;;  %v3341_v7 = vmul.f32 %v3768_v5, %v3299_v53 }
 0xbad   :  { %v3340_v20 = vmul.f32 %v3318_v11, %v6782_v34  ;;  %v3328_v24 = vmul.f32 %v3766_v43, %v3327_v60  ;;  %v3482_v34 = vld [vmem:[%s6861_s10] ss:$0 sm:$0xff] }
 0xbaf   :  { %v3342_v10 = vadd.f32 %v3341_v7, %v3340_v20  ;;  %v3329_v28 = vadd.f32 %v3766_v43, %v3328_v24 }
 0xbb1   :  { %3769 = vtanh.f32 %v3342_v10  ;;  %v3333_v25 = vsel %vm3332_vm14, %v3766_v43, %v3329_v28 }
 0xbb2   :  { %v3338_v50 = vsel %vm3335_vm15, %v3337_v2, %v3333_v25 }
 0xbb7   :  { %v3770_v1 = vpop.eup %3769 }
 0xbb8   :  { %v3344_v19 = vmul.f32 %v3770_v1, %v3338_v50 }
 0xbba   :  { %3345 = vst [vmem:[%s6863_s12] sm:$0xff] %v3344_v19  ;;  %3382 = vmatmul.f32.vlgmr.msra.gmra.mxu0 %v3344_v19 }
 0xc37   :  { %v3383_v52 = vpop.f32.mrf.mxu0 }
 0xc38   :  { %v3384_v3 = vadd.f32 %v3482_v34, %v3383_v52 }
 0xc3a   :  { %v3472_v47 = vmul.f32 -1.442695, %v3384_v3 }
 0xc3c   :  { %3771 = vpow2.f32 %v3472_v47 }
 0xc42   :  { %v3772_v23 = vpop.eup %3771 }
 0xc43   :  { %v3389_v41 = vadd.f32 1.0, %v3772_v23 }
 0xc45   :  { %3773 = vrcp.f32 %v3389_v41  ;;  %v3401_v14 = vand.u32 2147483648, %v3389_v41  ;;  %v3399_v45 = vand.u32 2147483647, %v3389_v41  ;;  %vm3395_vm1 = vweird.f32 %v3389_v41 }
 0xc47   :  { %v3402_v39 = vor.u32 1.1754944e-38, %v3401_v14  ;;  %vm3400_vm3 = vcmp.eq.f32.partialorder %v3399_v45, 8.507059e+37 }
 0xc4b   :  { %v3774_v44 = vpop.eup %3773 }
 0xc4c   :  { %v3391_v51 = vmul.f32 %v3774_v44, %v3389_v41  ;;  %vm3396_vm0 = vweird.f32 %v3774_v44 }
 0xc4d   :  { %vm3397_vm2 = vmor %vm3395_vm1, %vm3396_vm0 }
 0xc4e   :  { %v3392_v22 = vsub.f32 1.0, %v3391_v51 }
 0xc50   :  { %v3393_v16 = vmul.f32 %v3774_v44, %v3392_v22 }
 0xc52   :  { %v3394_v40 = vadd.f32 %v3774_v44, %v3393_v16 }
 0xc54   :  { %v3398_v12 = vsel %vm3397_vm2, %v3774_v44, %v3394_v40 }
 0xc55   :  { %v3403_v37 = vsel %vm3400_vm3, %v3402_v39, %v3398_v12 }
 0xc56   :  { %3405 = vst [vmem:[%s6862_s11] sm:$0xff] %v3403_v37 }
 0xc57   :  { %3414 = vsyncpa [#allocation4], 1 }
 0xc58   :  { %3415 = vsyncpa [#allocation6], 1 }

</bundles_post_ra>
